<compile_context>
chip_gen: v5e
topology: v5e:2x2
jax: 0.10.0
libtpu: 0.0.40
codegen_flags: <defaults>
</compile_context>

<pallas_src>
import functools

import jax
import jax.numpy as jnp
from jax import lax
from jax.experimental import pallas as pl
from jax.experimental.pallas import tpu as pltpu

EPS = 1e-6


# ---------------------------------------------------------------------------
# Shared math helpers (pure jnp/lax; used inside the Pallas kernel AND by the
# plain-JAX reference, except for the softmax normalization which is swapped).
# ---------------------------------------------------------------------------
def _layer_norm(x, g, b):
    mu = jnp.mean(x, axis=-1, keepdims=True)
    var = jnp.mean((x - mu) ** 2, axis=-1, keepdims=True)
    return (x - mu) * lax.rsqrt(var + EPS) * g + b


def _softmax_exact(x):
    m = jnp.max(x, axis=-1, keepdims=True)
    e = jnp.exp(x - m)
    return e / jnp.sum(e, axis=-1, keepdims=True)


def _softmax_fast(x):
    # In-kernel softmax: approximate reciprocal lands on the otherwise idle EUP.
    m = jnp.max(x, axis=-1, keepdims=True)
    e = jnp.exp(x - m)
    return e * pl.reciprocal(jnp.sum(e, axis=-1, keepdims=True), approx=True)


def _attention(q, k, v, wfc, bfc, n_heads, d_q, d_v, softmax):
    """Multi-head attention core.  q: (Vq, H*dq), k/v: (Vk, H*dq / H*dv)."""
    inv_norm = 1.0 / (d_q ** 0.5)
    heads = []
    for h in range(n_heads):
        qh = q[:, h * d_q:(h + 1) * d_q]
        kh = k[:, h * d_q:(h + 1) * d_q]
        vh = v[:, h * d_v:(h + 1) * d_v]
        # q @ k^T without an explicit transpose (contract last dims of both).
        s = lax.dot_general(qh, kh, (((1,), (1,)), ((), ())),
                            preferred_element_type=jnp.float32) * inv_norm
        p = softmax(s)
        heads.append(lax.dot_general(p, vh, (((1,), (0,)), ((), ())),
                                     preferred_element_type=jnp.float32))
    out = jnp.concatenate(heads, axis=-1)                    # (Vq, H*dv)
    # Single fused output projection.
    return jnp.dot(out, wfc, preferred_element_type=jnp.float32) + bfc


def _ff_res(x, lng, lnb, w1, b1, w2, b2):
    """MLP_res_block: x + fc2(relu(fc1(layer_norm(x))))."""
    h = _layer_norm(x, lng, lnb)
    h = jnp.maximum(jnp.dot(h, w1, preferred_element_type=jnp.float32) + b1, 0.0)
    return x + jnp.dot(h, w2, preferred_element_type=jnp.float32) + b2


# Packed parameter layouts (all column widths == F because
# n_heads*d_q == n_heads*d_v == hid_dim == f_dim in this module):
#   SelfAttn  W: (F, 6F) = [w_qs | w_ks | w_vs | fc | ff.fc1 | ff.fc2]
#             B: (10, F) = [ln_g, ln_b, b_q, b_k, b_v, b_fc,
#                           ff.ln_g, ff.ln_b, ff.b1, ff.b2]
#   InterAttn W: (F, 8F) = [w_qs | w_ks | w_vs | fc |
#                           ffL.fc1 | ffL.fc2 | ffR.fc1 | ffR.fc2]
#             B: (16, F) = [ln1_g, ln1_b, ln2_g, ln2_b, b_q, b_k, b_v, b_fc,
#                           ffL.ln_g, ffL.ln_b, ffL.b1, ffL.b2,
#                           ffR.ln_g, ffR.ln_b, ffR.b1, ffR.b2]
def _self_attn_block(x, W, B, n_heads, d_q, d_v, softmax):
    F = x.shape[-1]
    xn = _layer_norm(x, B[0:1], B[1:2])
    # Fused Q/K/V projection: one (V, F) @ (F, 3F) matmul.
    qkv = jnp.dot(xn, W[:, 0:3 * F], preferred_element_type=jnp.float32)
    q = qkv[:, 0 * F:1 * F] + B[2:3]
    k = qkv[:, 1 * F:2 * F] + B[3:4]
    v = qkv[:, 2 * F:3 * F] + B[4:5]
    x = x + _attention(q, k, v, W[:, 3 * F:4 * F], B[5:6],
                       n_heads, d_q, d_v, softmax)
    return _ff_res(x, B[6:7], B[7:8], W[:, 4 * F:5 * F], B[8:9],
                   W[:, 5 * F:6 * F], B[9:10])


def _inter_block(Lf, Rf, W, B, n_heads, d_q, d_v, softmax):
    V, F = Lf.shape
    Lf2 = _layer_norm(Lf, B[0:1], B[1:2])
    Rf2 = _layer_norm(Rf, B[2:3], B[3:4])
    # Both directions share w_qs/w_ks/w_vs: stack L/R rows and project once.
    qkv = jnp.dot(jnp.concatenate([Lf2, Rf2], axis=0), W[:, 0:3 * F],
                  preferred_element_type=jnp.float32)        # (2V, 3F)
    Lq = qkv[:V, 0 * F:1 * F] + B[4:5]
    Lk = qkv[:V, 1 * F:2 * F] + B[5:6]
    Lv = qkv[:V, 2 * F:3 * F] + B[6:7]
    Rq = qkv[V:, 0 * F:1 * F] + B[4:5]
    Rk = qkv[V:, 1 * F:2 * F] + B[5:6]
    Rv = qkv[V:, 2 * F:3 * F] + B[6:7]
    wfc, bfc = W[:, 3 * F:4 * F], B[7:8]
    # attn_R2L: query = Lf2, key/value = Rf2 ; attn_L2R: query = Rf2, kv = Lf2.
    feat_R2L = _attention(Lq, Rk, Rv, wfc, bfc, n_heads, d_q, d_v, softmax)
    feat_L2R = _attention(Rq, Lk, Lv, wfc, bfc, n_heads, d_q, d_v, softmax)
    Lo = _ff_res(Lf + feat_R2L, B[8:9], B[9:10], W[:, 4 * F:5 * F], B[10:11],
                 W[:, 5 * F:6 * F], B[11:12])
    Ro = _ff_res(Rf + feat_L2R, B[12:13], B[13:14], W[:, 6 * F:7 * F], B[14:15],
                 W[:, 7 * F:8 * F], B[15:16])
    return Lo, Ro


# ---------------------------------------------------------------------------
# Fused Pallas kernel: one grid step == one batch element, full module forward.
# ---------------------------------------------------------------------------
def fused_kernel(n_heads, d_q, d_v,
                 Lf_ref, Rf_ref,
                 WL_ref, BL_ref, WR_ref, BR_ref, WI_ref, BI_ref,
                 Lo_ref, Ro_ref):
    Lf = _self_attn_block(Lf_ref[...], WL_ref[...], BL_ref[...],
                          n_heads, d_q, d_v, _softmax_fast)
    Rf = _self_attn_block(Rf_ref[...], WR_ref[...], BR_ref[...],
                          n_heads, d_q, d_v, _softmax_fast)
    Lo, Ro = _inter_block(Lf, Rf, WI_ref[...], BI_ref[...],
                          n_heads, d_q, d_v, _softmax_fast)
    Lo_ref[...] = Lo
    Ro_ref[...] = Ro


def inter_attn_forward(Lf, Rf, pL, pR, pI, n_heads, d_q, d_v):
    BS, V, F = Lf.shape
    WL, BL = pL
    WR, BR = pR
    WI, BI = pI
    data_spec = pl.BlockSpec((None, V, F), lambda b: (b, 0, 0))

    def param_spec(a):
        return pl.BlockSpec(a.shape, lambda b: (0, 0))

    kern = functools.partial(fused_kernel, n_heads, d_q, d_v)
    return pl.pallas_call(
        kern,
        out_shape=(jax.ShapeDtypeStruct((BS, V, F), Lf.dtype),
                   jax.ShapeDtypeStruct((BS, V, F), Rf.dtype)),
        grid=(BS,),
        in_specs=[data_spec, data_spec,
                  param_spec(WL), param_spec(BL),
                  param_spec(WR), param_spec(BR),
                  param_spec(WI), param_spec(BI)],
        out_specs=(data_spec, data_spec),
        compiler_params=pltpu.CompilerParams(
            dimension_semantics=("parallel",)),
    )(Lf, Rf, WL, BL, WR, BR, WI, BI)


# ---------------------------------------------------------------------------
# Deterministic parameter init + host-side packing.
# (The real module uses xavier weights, zero biases, unit LN gains; random
#  biases/LN rows are used here only to make the correctness check sensitive
#  to any packing/indexing mistake — forward math is identical.)
# ---------------------------------------------------------------------------
def _xavier(key, in_dim, out_dim):
    a = (6.0 / (in_dim + out_dim)) ** 0.5
    return jax.random.uniform(key, (in_dim, out_dim), jnp.float32, -a, a)


def init_selfattn_packed(key, F, n_heads, d_q, d_v, hid):
    assert n_heads * d_q == F and n_heads * d_v == F and hid == F
    kw, kb = jax.random.split(key)
    ws = jax.random.split(kw, 6)
    W = jnp.concatenate([
        _xavier(ws[0], F, n_heads * d_q),   # w_qs
        _xavier(ws[1], F, n_heads * d_q),   # w_ks
        _xavier(ws[2], F, n_heads * d_v),   # w_vs
        _xavier(ws[3], n_heads * d_v, F),   # fc
        _xavier(ws[4], F, hid),             # ff.fc1
        _xavier(ws[5], hid, F),             # ff.fc2
    ], axis=1)                              # (F, 6F)
    B = 0.1 * jax.random.normal(kb, (10, F), jnp.float32)
    B = B.at[0].add(1.0).at[6].add(1.0)     # LayerNorm gains ~ 1
    return W, B


def init_inter_packed(key, F, n_heads, d_q, d_v):
    assert n_heads * d_q == F and n_heads * d_v == F
    kw, kb = jax.random.split(key)
    ws = jax.random.split(kw, 8)
    W = jnp.concatenate([
        _xavier(ws[0], F, n_heads * d_q),   # w_qs
        _xavier(ws[1], F, n_heads * d_q),   # w_ks
        _xavier(ws[2], F, n_heads * d_v),   # w_vs
        _xavier(ws[3], n_heads * d_v, F),   # fc
        _xavier(ws[4], F, F),               # ffL.fc1
        _xavier(ws[5], F, F),               # ffL.fc2
        _xavier(ws[6], F, F),               # ffR.fc1
        _xavier(ws[7], F, F),               # ffR.fc2
    ], axis=1)                              # (F, 8F)
    B = 0.1 * jax.random.normal(kb, (16, F), jnp.float32)
    B = B.at[0].add(1.0).at[2].add(1.0).at[8].add(1.0).at[12].add(1.0)
    return W, B


# ---------------------------------------------------------------------------
# Plain-JAX reference (exact softmax) for validation.
# ---------------------------------------------------------------------------
def ref_forward(Lf, Rf, pL, pR, pI, n_heads, d_q, d_v):
    WL, BL = pL
    WR, BR = pR
    WI, BI = pI
    Ls, Rs = [], []
    for b in range(Lf.shape[0]):
        l = _self_attn_block(Lf[b], WL, BL, n_heads, d_q, d_v, _softmax_exact)
        r = _self_attn_block(Rf[b], WR, BR, n_heads, d_q, d_v, _softmax_exact)
        lo, ro = _inter_block(l, r, WI, BI, n_heads, d_q, d_v, _softmax_exact)
        Ls.append(lo)
        Rs.append(ro)
    return jnp.stack(Ls), jnp.stack(Rs)


# ---------------------------------------------------------------------------
if __name__ == "__main__":
    BS, V, F_DIM = 2, 8, 32
    N_HEADS = 4
    D_Q = F_DIM // N_HEADS
    D_V = F_DIM // N_HEADS

    key = jax.random.PRNGKey(0)
    k_lf, k_rf, k_pl, k_pr, k_pi = jax.random.split(key, 5)

    Lf = jax.random.normal(k_lf, (BS, V, F_DIM), jnp.float32)
    Rf = jax.random.normal(k_rf, (BS, V, F_DIM), jnp.float32)

    pL = init_selfattn_packed(k_pl, F_DIM, N_HEADS, D_Q, D_V, hid=F_DIM)
    pR = init_selfattn_packed(k_pr, F_DIM, N_HEADS, D_Q, D_V, hid=F_DIM)
    pI = init_inter_packed(k_pi, F_DIM, N_HEADS, D_Q, D_V)

    Lo, Ro = inter_attn_forward(Lf, Rf, pL, pR, pI, N_HEADS, D_Q, D_V)
    jax.block_until_ready((Lo, Ro))

    Lo_ref, Ro_ref = ref_forward(Lf, Rf, pL, pR, pI, N_HEADS, D_Q, D_V)
    # Tolerance accounts for the approximate-reciprocal softmax normalization
    # inside the kernel (pl.reciprocal(approx=True)); wiring errors would be O(1).
    assert jnp.allclose(Lo, Lo_ref, atol=1e-2, rtol=1e-2), "L output mismatch"
    assert jnp.allclose(Ro, Ro_ref, atol=1e-2, rtol=1e-2), "R output mismatch"

    print("KERNEL_OK")
</pallas_src>

<mosaic_0001>
module attributes {stable_mosaic.version = 11 : i64} {
  func.func @fused_kernel(%arg0: i32, %arg1: memref<1x8x32xf32, #tpu.memory_space<vmem>>, %arg2: memref<1x8x32xf32, #tpu.memory_space<vmem>>, %arg3: memref<32x192xf32, #tpu.memory_space<vmem>>, %arg4: memref<10x32xf32, #tpu.memory_space<vmem>>, %arg5: memref<32x192xf32, #tpu.memory_space<vmem>>, %arg6: memref<10x32xf32, #tpu.memory_space<vmem>>, %arg7: memref<32x256xf32, #tpu.memory_space<vmem>>, %arg8: memref<16x32xf32, #tpu.memory_space<vmem>>, %arg9: memref<1x8x32xf32, #tpu.memory_space<vmem>>, %arg10: memref<1x8x32xf32, #tpu.memory_space<vmem>>) attributes {dimension_semantics = [#tpu.dimension_semantics<parallel>], iteration_bounds = array<i64: 2>, scalar_prefetch = 0 : i64, scratch_operands = 0 : i64, tpu.core_type = #tpu.core_type<tc>, window_params = [{transform_indices = @transform_0, window_bounds = array<i64: 1, 8, 32>}, {transform_indices = @transform_1, window_bounds = array<i64: 1, 8, 32>}, {pipeline_mode = #tpu.pipeline_mode<synchronous>, transform_indices = @transform_2, window_bounds = array<i64: 32, 192>}, {pipeline_mode = #tpu.pipeline_mode<synchronous>, transform_indices = @transform_3, window_bounds = array<i64: 10, 32>}, {pipeline_mode = #tpu.pipeline_mode<synchronous>, transform_indices = @transform_4, window_bounds = array<i64: 32, 192>}, {pipeline_mode = #tpu.pipeline_mode<synchronous>, transform_indices = @transform_5, window_bounds = array<i64: 10, 32>}, {pipeline_mode = #tpu.pipeline_mode<synchronous>, transform_indices = @transform_6, window_bounds = array<i64: 32, 256>}, {pipeline_mode = #tpu.pipeline_mode<synchronous>, transform_indices = @transform_7, window_bounds = array<i64: 16, 32>}, {transform_indices = @transform_8, window_bounds = array<i64: 1, 8, 32>}, {transform_indices = @transform_9, window_bounds = array<i64: 1, 8, 32>}]} {
    %c0 = arith.constant 0 : index
    %c0_0 = arith.constant 0 : index
    %c0_1 = arith.constant 0 : index
    %0 = vector.load %arg1[%c0, %c0_0, %c0_1] : memref<1x8x32xf32, #tpu.memory_space<vmem>>, vector<1x8x32xf32>
    %1 = vector.shape_cast %0 : vector<1x8x32xf32> to vector<8x32xf32>
    %c0_2 = arith.constant 0 : index
    %c0_3 = arith.constant 0 : index
    %2 = vector.load %arg3[%c0_2, %c0_3] : memref<32x192xf32, #tpu.memory_space<vmem>>, vector<32x192xf32>
    %c0_4 = arith.constant 0 : index
    %c0_5 = arith.constant 0 : index
    %3 = vector.load %arg4[%c0_4, %c0_5] : memref<10x32xf32, #tpu.memory_space<vmem>>, vector<10x32xf32>
    %4 = vector.extract_strided_slice %3 {offsets = [0, 0], sizes = [1, 32], strides = [1, 1]} : vector<10x32xf32> to vector<1x32xf32>
    %5 = vector.extract_strided_slice %3 {offsets = [1, 0], sizes = [1, 32], strides = [1, 1]} : vector<10x32xf32> to vector<1x32xf32>
    %cst = arith.constant dense<0.000000e+00> : vector<8xf32>
    %6 = vector.multi_reduction <add>, %1, %cst [1] : vector<8x32xf32> to vector<8xf32>
    %7 = vector.shape_cast %6 : vector<8xf32> to vector<8x1xf32>
    %cst_6 = arith.constant 3.200000e+01 : f32
    %8 = vector.broadcast %cst_6 : f32 to vector<8x1xf32>
    %9 = arith.divf %7, %8 : vector<8x1xf32>
    %10 = vector.broadcast %9 : vector<8x1xf32> to vector<8x32xf32>
    %11 = arith.subf %1, %10 : vector<8x32xf32>
    %12 = arith.mulf %11, %11 : vector<8x32xf32>
    %cst_7 = arith.constant dense<0.000000e+00> : vector<8xf32>
    %13 = vector.multi_reduction <add>, %12, %cst_7 [1] : vector<8x32xf32> to vector<8xf32>
    %14 = vector.shape_cast %13 : vector<8xf32> to vector<8x1xf32>
    %cst_8 = arith.constant 3.200000e+01 : f32
    %15 = vector.broadcast %cst_8 : f32 to vector<8x1xf32>
    %16 = arith.divf %14, %15 : vector<8x1xf32>
    %17 = vector.broadcast %9 : vector<8x1xf32> to vector<8x32xf32>
    %18 = arith.subf %1, %17 : vector<8x32xf32>
    %cst_9 = arith.constant 9.99999997E-7 : f32
    %19 = vector.broadcast %cst_9 : f32 to vector<8x1xf32>
    %20 = arith.addf %16, %19 : vector<8x1xf32>
    %21 = math.rsqrt %20 : vector<8x1xf32>
    %22 = vector.broadcast %21 : vector<8x1xf32> to vector<8x32xf32>
    %23 = arith.mulf %18, %22 : vector<8x32xf32>
    %24 = vector.broadcast %4 : vector<1x32xf32> to vector<8x32xf32>
    %25 = arith.mulf %23, %24 : vector<8x32xf32>
    %26 = vector.broadcast %5 : vector<1x32xf32> to vector<8x32xf32>
    %27 = arith.addf %25, %26 : vector<8x32xf32>
    %28 = vector.extract_strided_slice %2 {offsets = [0, 0], sizes = [32, 96], strides = [1, 1]} : vector<32x192xf32> to vector<32x96xf32>
    %cst_10 = arith.constant dense<0.000000e+00> : vector<8x96xf32>
    %29 = tpu.matmul %27, %28, %cst_10 {dimension_numbers = #tpu.dot_dimension_numbers<[1], [0], [0], [1], [0, 0, 1, 1], [], []>} : vector<8x32xf32>, vector<32x96xf32>, vector<8x96xf32> -> vector<8x96xf32>
    %30 = vector.extract_strided_slice %29 {offsets = [0, 0], sizes = [8, 32], strides = [1, 1]} : vector<8x96xf32> to vector<8x32xf32>
    %31 = vector.extract_strided_slice %3 {offsets = [2, 0], sizes = [1, 32], strides = [1, 1]} : vector<10x32xf32> to vector<1x32xf32>
    %32 = vector.broadcast %31 : vector<1x32xf32> to vector<8x32xf32>
    %33 = arith.addf %30, %32 : vector<8x32xf32>
    %34 = vector.extract_strided_slice %29 {offsets = [0, 32], sizes = [8, 32], strides = [1, 1]} : vector<8x96xf32> to vector<8x32xf32>
    %35 = vector.extract_strided_slice %3 {offsets = [3, 0], sizes = [1, 32], strides = [1, 1]} : vector<10x32xf32> to vector<1x32xf32>
    %36 = vector.broadcast %35 : vector<1x32xf32> to vector<8x32xf32>
    %37 = arith.addf %34, %36 : vector<8x32xf32>
    %38 = vector.extract_strided_slice %29 {offsets = [0, 64], sizes = [8, 32], strides = [1, 1]} : vector<8x96xf32> to vector<8x32xf32>
    %39 = vector.extract_strided_slice %3 {offsets = [4, 0], sizes = [1, 32], strides = [1, 1]} : vector<10x32xf32> to vector<1x32xf32>
    %40 = vector.broadcast %39 : vector<1x32xf32> to vector<8x32xf32>
    %41 = arith.addf %38, %40 : vector<8x32xf32>
    %42 = vector.extract_strided_slice %2 {offsets = [0, 96], sizes = [32, 32], strides = [1, 1]} : vector<32x192xf32> to vector<32x32xf32>
    %43 = vector.extract_strided_slice %3 {offsets = [5, 0], sizes = [1, 32], strides = [1, 1]} : vector<10x32xf32> to vector<1x32xf32>
    %44 = vector.extract_strided_slice %33 {offsets = [0, 0], sizes = [8, 8], strides = [1, 1]} : vector<8x32xf32> to vector<8x8xf32>
    %45 = vector.extract_strided_slice %37 {offsets = [0, 0], sizes = [8, 8], strides = [1, 1]} : vector<8x32xf32> to vector<8x8xf32>
    %46 = vector.extract_strided_slice %41 {offsets = [0, 0], sizes = [8, 8], strides = [1, 1]} : vector<8x32xf32> to vector<8x8xf32>
    %cst_11 = arith.constant dense<0.000000e+00> : vector<8x8xf32>
    %47 = tpu.matmul %44, %45, %cst_11 {dimension_numbers = #tpu.dot_dimension_numbers<[1], [1], [0], [0], [0, 0, 1, 0], [], []>} : vector<8x8xf32>, vector<8x8xf32>, vector<8x8xf32> -> vector<8x8xf32>
    %cst_12 = arith.constant 0.353553385 : f32
    %48 = vector.broadcast %cst_12 : f32 to vector<8x8xf32>
    %49 = arith.mulf %47, %48 : vector<8x8xf32>
    %cst_13 = arith.constant dense<0xFF800000> : vector<8xf32>
    %50 = vector.multi_reduction <maximumf>, %49, %cst_13 [1] : vector<8x8xf32> to vector<8xf32>
    %51 = vector.shape_cast %50 : vector<8xf32> to vector<8x1xf32>
    %52 = vector.broadcast %51 : vector<8x1xf32> to vector<8x8xf32>
    %53 = arith.subf %49, %52 : vector<8x8xf32>
    %54 = math.exp %53 : vector<8x8xf32>
    %cst_14 = arith.constant dense<0.000000e+00> : vector<8xf32>
    %55 = vector.multi_reduction <add>, %54, %cst_14 [1] : vector<8x8xf32> to vector<8xf32>
    %56 = vector.shape_cast %55 : vector<8xf32> to vector<8x1xf32>
    %57 = tpu.reciprocal %56 {approx = true} : vector<8x1xf32> -> vector<8x1xf32>
    %58 = vector.broadcast %57 : vector<8x1xf32> to vector<8x8xf32>
    %59 = arith.mulf %54, %58 : vector<8x8xf32>
    %cst_15 = arith.constant dense<0.000000e+00> : vector<8x8xf32>
    %60 = tpu.matmul %59, %46, %cst_15 {dimension_numbers = #tpu.dot_dimension_numbers<[1], [0], [0], [1], [0, 0, 1, 1], [], []>} : vector<8x8xf32>, vector<8x8xf32>, vector<8x8xf32> -> vector<8x8xf32>
    %61 = vector.extract_strided_slice %33 {offsets = [0, 8], sizes = [8, 8], strides = [1, 1]} : vector<8x32xf32> to vector<8x8xf32>
    %62 = vector.extract_strided_slice %37 {offsets = [0, 8], sizes = [8, 8], strides = [1, 1]} : vector<8x32xf32> to vector<8x8xf32>
    %63 = vector.extract_strided_slice %41 {offsets = [0, 8], sizes = [8, 8], strides = [1, 1]} : vector<8x32xf32> to vector<8x8xf32>
    %cst_16 = arith.constant dense<0.000000e+00> : vector<8x8xf32>
    %64 = tpu.matmul %61, %62, %cst_16 {dimension_numbers = #tpu.dot_dimension_numbers<[1], [1], [0], [0], [0, 0, 1, 0], [], []>} : vector<8x8xf32>, vector<8x8xf32>, vector<8x8xf32> -> vector<8x8xf32>
    %cst_17 = arith.constant 0.353553385 : f32
    %65 = vector.broadcast %cst_17 : f32 to vector<8x8xf32>
    %66 = arith.mulf %64, %65 : vector<8x8xf32>
    %cst_18 = arith.constant dense<0xFF800000> : vector<8xf32>
    %67 = vector.multi_reduction <maximumf>, %66, %cst_18 [1] : vector<8x8xf32> to vector<8xf32>
    %68 = vector.shape_cast %67 : vector<8xf32> to vector<8x1xf32>
    %69 = vector.broadcast %68 : vector<8x1xf32> to vector<8x8xf32>
    %70 = arith.subf %66, %69 : vector<8x8xf32>
    %71 = math.exp %70 : vector<8x8xf32>
    %cst_19 = arith.constant dense<0.000000e+00> : vector<8xf32>
    %72 = vector.multi_reduction <add>, %71, %cst_19 [1] : vector<8x8xf32> to vector<8xf32>
    %73 = vector.shape_cast %72 : vector<8xf32> to vector<8x1xf32>
    %74 = tpu.reciprocal %73 {approx = true} : vector<8x1xf32> -> vector<8x1xf32>
    %75 = vector.broadcast %74 : vector<8x1xf32> to vector<8x8xf32>
    %76 = arith.mulf %71, %75 : vector<8x8xf32>
    %cst_20 = arith.constant dense<0.000000e+00> : vector<8x8xf32>
    %77 = tpu.matmul %76, %63, %cst_20 {dimension_numbers = #tpu.dot_dimension_numbers<[1], [0], [0], [1], [0, 0, 1, 1], [], []>} : vector<8x8xf32>, vector<8x8xf32>, vector<8x8xf32> -> vector<8x8xf32>
    %78 = vector.extract_strided_slice %33 {offsets = [0, 16], sizes = [8, 8], strides = [1, 1]} : vector<8x32xf32> to vector<8x8xf32>
    %79 = vector.extract_strided_slice %37 {offsets = [0, 16], sizes = [8, 8], strides = [1, 1]} : vector<8x32xf32> to vector<8x8xf32>
    %80 = vector.extract_strided_slice %41 {offsets = [0, 16], sizes = [8, 8], strides = [1, 1]} : vector<8x32xf32> to vector<8x8xf32>
    %cst_21 = arith.constant dense<0.000000e+00> : vector<8x8xf32>
    %81 = tpu.matmul %78, %79, %cst_21 {dimension_numbers = #tpu.dot_dimension_numbers<[1], [1], [0], [0], [0, 0, 1, 0], [], []>} : vector<8x8xf32>, vector<8x8xf32>, vector<8x8xf32> -> vector<8x8xf32>
    %cst_22 = arith.constant 0.353553385 : f32
    %82 = vector.broadcast %cst_22 : f32 to vector<8x8xf32>
    %83 = arith.mulf %81, %82 : vector<8x8xf32>
    %cst_23 = arith.constant dense<0xFF800000> : vector<8xf32>
    %84 = vector.multi_reduction <maximumf>, %83, %cst_23 [1] : vector<8x8xf32> to vector<8xf32>
    %85 = vector.shape_cast %84 : vector<8xf32> to vector<8x1xf32>
    %86 = vector.broadcast %85 : vector<8x1xf32> to vector<8x8xf32>
    %87 = arith.subf %83, %86 : vector<8x8xf32>
    %88 = math.exp %87 : vector<8x8xf32>
    %cst_24 = arith.constant dense<0.000000e+00> : vector<8xf32>
    %89 = vector.multi_reduction <add>, %88, %cst_24 [1] : vector<8x8xf32> to vector<8xf32>
    %90 = vector.shape_cast %89 : vector<8xf32> to vector<8x1xf32>
    %91 = tpu.reciprocal %90 {approx = true} : vector<8x1xf32> -> vector<8x1xf32>
    %92 = vector.broadcast %91 : vector<8x1xf32> to vector<8x8xf32>
    %93 = arith.mulf %88, %92 : vector<8x8xf32>
    %cst_25 = arith.constant dense<0.000000e+00> : vector<8x8xf32>
    %94 = tpu.matmul %93, %80, %cst_25 {dimension_numbers = #tpu.dot_dimension_numbers<[1], [0], [0], [1], [0, 0, 1, 1], [], []>} : vector<8x8xf32>, vector<8x8xf32>, vector<8x8xf32> -> vector<8x8xf32>
    %95 = vector.extract_strided_slice %33 {offsets = [0, 24], sizes = [8, 8], strides = [1, 1]} : vector<8x32xf32> to vector<8x8xf32>
    %96 = vector.extract_strided_slice %37 {offsets = [0, 24], sizes = [8, 8], strides = [1, 1]} : vector<8x32xf32> to vector<8x8xf32>
    %97 = vector.extract_strided_slice %41 {offsets = [0, 24], sizes = [8, 8], strides = [1, 1]} : vector<8x32xf32> to vector<8x8xf32>
    %cst_26 = arith.constant dense<0.000000e+00> : vector<8x8xf32>
    %98 = tpu.matmul %95, %96, %cst_26 {dimension_numbers = #tpu.dot_dimension_numbers<[1], [1], [0], [0], [0, 0, 1, 0], [], []>} : vector<8x8xf32>, vector<8x8xf32>, vector<8x8xf32> -> vector<8x8xf32>
    %cst_27 = arith.constant 0.353553385 : f32
    %99 = vector.broadcast %cst_27 : f32 to vector<8x8xf32>
    %100 = arith.mulf %98, %99 : vector<8x8xf32>
    %cst_28 = arith.constant dense<0xFF800000> : vector<8xf32>
    %101 = vector.multi_reduction <maximumf>, %100, %cst_28 [1] : vector<8x8xf32> to vector<8xf32>
    %102 = vector.shape_cast %101 : vector<8xf32> to vector<8x1xf32>
    %103 = vector.broadcast %102 : vector<8x1xf32> to vector<8x8xf32>
    %104 = arith.subf %100, %103 : vector<8x8xf32>
    %105 = math.exp %104 : vector<8x8xf32>
    %cst_29 = arith.constant dense<0.000000e+00> : vector<8xf32>
    %106 = vector.multi_reduction <add>, %105, %cst_29 [1] : vector<8x8xf32> to vector<8xf32>
    %107 = vector.shape_cast %106 : vector<8xf32> to vector<8x1xf32>
    %108 = tpu.reciprocal %107 {approx = true} : vector<8x1xf32> -> vector<8x1xf32>
    %109 = vector.broadcast %108 : vector<8x1xf32> to vector<8x8xf32>
    %110 = arith.mulf %105, %109 : vector<8x8xf32>
    %cst_30 = arith.constant dense<0.000000e+00> : vector<8x8xf32>
    %111 = tpu.matmul %110, %97, %cst_30 {dimension_numbers = #tpu.dot_dimension_numbers<[1], [0], [0], [1], [0, 0, 1, 1], [], []>} : vector<8x8xf32>, vector<8x8xf32>, vector<8x8xf32> -> vector<8x8xf32>
    %112 = tpu.concatenate %60, %77, %94, %111 in 1 : vector<8x8xf32>, vector<8x8xf32>, vector<8x8xf32>, vector<8x8xf32> -> vector<8x32xf32>
    %cst_31 = arith.constant dense<0.000000e+00> : vector<8x32xf32>
    %113 = tpu.matmul %112, %42, %cst_31 {dimension_numbers = #tpu.dot_dimension_numbers<[1], [0], [0], [1], [0, 0, 1, 1], [], []>} : vector<8x32xf32>, vector<32x32xf32>, vector<8x32xf32> -> vector<8x32xf32>
    %114 = vector.broadcast %43 : vector<1x32xf32> to vector<8x32xf32>
    %115 = arith.addf %113, %114 : vector<8x32xf32>
    %116 = arith.addf %1, %115 : vector<8x32xf32>
    %117 = vector.extract_strided_slice %3 {offsets = [6, 0], sizes = [1, 32], strides = [1, 1]} : vector<10x32xf32> to vector<1x32xf32>
    %118 = vector.extract_strided_slice %3 {offsets = [7, 0], sizes = [1, 32], strides = [1, 1]} : vector<10x32xf32> to vector<1x32xf32>
    %119 = vector.extract_strided_slice %2 {offsets = [0, 128], sizes = [32, 32], strides = [1, 1]} : vector<32x192xf32> to vector<32x32xf32>
    %120 = vector.extract_strided_slice %3 {offsets = [8, 0], sizes = [1, 32], strides = [1, 1]} : vector<10x32xf32> to vector<1x32xf32>
    %121 = vector.extract_strided_slice %2 {offsets = [0, 160], sizes = [32, 32], strides = [1, 1]} : vector<32x192xf32> to vector<32x32xf32>
    %122 = vector.extract_strided_slice %3 {offsets = [9, 0], sizes = [1, 32], strides = [1, 1]} : vector<10x32xf32> to vector<1x32xf32>
    %cst_32 = arith.constant dense<0.000000e+00> : vector<8xf32>
    %123 = vector.multi_reduction <add>, %116, %cst_32 [1] : vector<8x32xf32> to vector<8xf32>
    %124 = vector.shape_cast %123 : vector<8xf32> to vector<8x1xf32>
    %cst_33 = arith.constant 3.200000e+01 : f32
    %125 = vector.broadcast %cst_33 : f32 to vector<8x1xf32>
    %126 = arith.divf %124, %125 : vector<8x1xf32>
    %127 = vector.broadcast %126 : vector<8x1xf32> to vector<8x32xf32>
    %128 = arith.subf %116, %127 : vector<8x32xf32>
    %129 = arith.mulf %128, %128 : vector<8x32xf32>
    %cst_34 = arith.constant dense<0.000000e+00> : vector<8xf32>
    %130 = vector.multi_reduction <add>, %129, %cst_34 [1] : vector<8x32xf32> to vector<8xf32>
    %131 = vector.shape_cast %130 : vector<8xf32> to vector<8x1xf32>
    %cst_35 = arith.constant 3.200000e+01 : f32
    %132 = vector.broadcast %cst_35 : f32 to vector<8x1xf32>
    %133 = arith.divf %131, %132 : vector<8x1xf32>
    %134 = vector.broadcast %126 : vector<8x1xf32> to vector<8x32xf32>
    %135 = arith.subf %116, %134 : vector<8x32xf32>
    %cst_36 = arith.constant 9.99999997E-7 : f32
    %136 = vector.broadcast %cst_36 : f32 to vector<8x1xf32>
    %137 = arith.addf %133, %136 : vector<8x1xf32>
    %138 = math.rsqrt %137 : vector<8x1xf32>
    %139 = vector.broadcast %138 : vector<8x1xf32> to vector<8x32xf32>
    %140 = arith.mulf %135, %139 : vector<8x32xf32>
    %141 = vector.broadcast %117 : vector<1x32xf32> to vector<8x32xf32>
    %142 = arith.mulf %140, %141 : vector<8x32xf32>
    %143 = vector.broadcast %118 : vector<1x32xf32> to vector<8x32xf32>
    %144 = arith.addf %142, %143 : vector<8x32xf32>
    %cst_37 = arith.constant dense<0.000000e+00> : vector<8x32xf32>
    %145 = tpu.matmul %144, %119, %cst_37 {dimension_numbers = #tpu.dot_dimension_numbers<[1], [0], [0], [1], [0, 0, 1, 1], [], []>} : vector<8x32xf32>, vector<32x32xf32>, vector<8x32xf32> -> vector<8x32xf32>
    %146 = vector.broadcast %120 : vector<1x32xf32> to vector<8x32xf32>
    %147 = arith.addf %145, %146 : vector<8x32xf32>
    %cst_38 = arith.constant 0.000000e+00 : f32
    %148 = vector.broadcast %cst_38 : f32 to vector<8x32xf32>
    %149 = arith.maximumf %147, %148 : vector<8x32xf32>
    %cst_39 = arith.constant dense<0.000000e+00> : vector<8x32xf32>
    %150 = tpu.matmul %149, %121, %cst_39 {dimension_numbers = #tpu.dot_dimension_numbers<[1], [0], [0], [1], [0, 0, 1, 1], [], []>} : vector<8x32xf32>, vector<32x32xf32>, vector<8x32xf32> -> vector<8x32xf32>
    %151 = arith.addf %116, %150 : vector<8x32xf32>
    %152 = vector.broadcast %122 : vector<1x32xf32> to vector<8x32xf32>
    %153 = arith.addf %151, %152 : vector<8x32xf32>
    %c0_40 = arith.constant 0 : index
    %c0_41 = arith.constant 0 : index
    %c0_42 = arith.constant 0 : index
    %154 = vector.load %arg2[%c0_40, %c0_41, %c0_42] : memref<1x8x32xf32, #tpu.memory_space<vmem>>, vector<1x8x32xf32>
    %155 = vector.shape_cast %154 : vector<1x8x32xf32> to vector<8x32xf32>
    %c0_43 = arith.constant 0 : index
    %c0_44 = arith.constant 0 : index
    %156 = vector.load %arg5[%c0_43, %c0_44] : memref<32x192xf32, #tpu.memory_space<vmem>>, vector<32x192xf32>
    %c0_45 = arith.constant 0 : index
    %c0_46 = arith.constant 0 : index
    %157 = vector.load %arg6[%c0_45, %c0_46] : memref<10x32xf32, #tpu.memory_space<vmem>>, vector<10x32xf32>
    %158 = vector.extract_strided_slice %157 {offsets = [0, 0], sizes = [1, 32], strides = [1, 1]} : vector<10x32xf32> to vector<1x32xf32>
    %159 = vector.extract_strided_slice %157 {offsets = [1, 0], sizes = [1, 32], strides = [1, 1]} : vector<10x32xf32> to vector<1x32xf32>
    %cst_47 = arith.constant dense<0.000000e+00> : vector<8xf32>
    %160 = vector.multi_reduction <add>, %155, %cst_47 [1] : vector<8x32xf32> to vector<8xf32>
    %161 = vector.shape_cast %160 : vector<8xf32> to vector<8x1xf32>
    %cst_48 = arith.constant 3.200000e+01 : f32
    %162 = vector.broadcast %cst_48 : f32 to vector<8x1xf32>
    %163 = arith.divf %161, %162 : vector<8x1xf32>
    %164 = vector.broadcast %163 : vector<8x1xf32> to vector<8x32xf32>
    %165 = arith.subf %155, %164 : vector<8x32xf32>
    %166 = arith.mulf %165, %165 : vector<8x32xf32>
    %cst_49 = arith.constant dense<0.000000e+00> : vector<8xf32>
    %167 = vector.multi_reduction <add>, %166, %cst_49 [1] : vector<8x32xf32> to vector<8xf32>
    %168 = vector.shape_cast %167 : vector<8xf32> to vector<8x1xf32>
    %cst_50 = arith.constant 3.200000e+01 : f32
    %169 = vector.broadcast %cst_50 : f32 to vector<8x1xf32>
    %170 = arith.divf %168, %169 : vector<8x1xf32>
    %171 = vector.broadcast %163 : vector<8x1xf32> to vector<8x32xf32>
    %172 = arith.subf %155, %171 : vector<8x32xf32>
    %cst_51 = arith.constant 9.99999997E-7 : f32
    %173 = vector.broadcast %cst_51 : f32 to vector<8x1xf32>
    %174 = arith.addf %170, %173 : vector<8x1xf32>
    %175 = math.rsqrt %174 : vector<8x1xf32>
    %176 = vector.broadcast %175 : vector<8x1xf32> to vector<8x32xf32>
    %177 = arith.mulf %172, %176 : vector<8x32xf32>
    %178 = vector.broadcast %158 : vector<1x32xf32> to vector<8x32xf32>
    %179 = arith.mulf %177, %178 : vector<8x32xf32>
    %180 = vector.broadcast %159 : vector<1x32xf32> to vector<8x32xf32>
    %181 = arith.addf %179, %180 : vector<8x32xf32>
    %182 = vector.extract_strided_slice %156 {offsets = [0, 0], sizes = [32, 96], strides = [1, 1]} : vector<32x192xf32> to vector<32x96xf32>
    %cst_52 = arith.constant dense<0.000000e+00> : vector<8x96xf32>
    %183 = tpu.matmul %181, %182, %cst_52 {dimension_numbers = #tpu.dot_dimension_numbers<[1], [0], [0], [1], [0, 0, 1, 1], [], []>} : vector<8x32xf32>, vector<32x96xf32>, vector<8x96xf32> -> vector<8x96xf32>
    %184 = vector.extract_strided_slice %183 {offsets = [0, 0], sizes = [8, 32], strides = [1, 1]} : vector<8x96xf32> to vector<8x32xf32>
    %185 = vector.extract_strided_slice %157 {offsets = [2, 0], sizes = [1, 32], strides = [1, 1]} : vector<10x32xf32> to vector<1x32xf32>
    %186 = vector.broadcast %185 : vector<1x32xf32> to vector<8x32xf32>
    %187 = arith.addf %184, %186 : vector<8x32xf32>
    %188 = vector.extract_strided_slice %183 {offsets = [0, 32], sizes = [8, 32], strides = [1, 1]} : vector<8x96xf32> to vector<8x32xf32>
    %189 = vector.extract_strided_slice %157 {offsets = [3, 0], sizes = [1, 32], strides = [1, 1]} : vector<10x32xf32> to vector<1x32xf32>
    %190 = vector.broadcast %189 : vector<1x32xf32> to vector<8x32xf32>
    %191 = arith.addf %188, %190 : vector<8x32xf32>
    %192 = vector.extract_strided_slice %183 {offsets = [0, 64], sizes = [8, 32], strides = [1, 1]} : vector<8x96xf32> to vector<8x32xf32>
    %193 = vector.extract_strided_slice %157 {offsets = [4, 0], sizes = [1, 32], strides = [1, 1]} : vector<10x32xf32> to vector<1x32xf32>
    %194 = vector.broadcast %193 : vector<1x32xf32> to vector<8x32xf32>
    %195 = arith.addf %192, %194 : vector<8x32xf32>
    %196 = vector.extract_strided_slice %156 {offsets = [0, 96], sizes = [32, 32], strides = [1, 1]} : vector<32x192xf32> to vector<32x32xf32>
    %197 = vector.extract_strided_slice %157 {offsets = [5, 0], sizes = [1, 32], strides = [1, 1]} : vector<10x32xf32> to vector<1x32xf32>
    %198 = vector.extract_strided_slice %187 {offsets = [0, 0], sizes = [8, 8], strides = [1, 1]} : vector<8x32xf32> to vector<8x8xf32>
    %199 = vector.extract_strided_slice %191 {offsets = [0, 0], sizes = [8, 8], strides = [1, 1]} : vector<8x32xf32> to vector<8x8xf32>
    %200 = vector.extract_strided_slice %195 {offsets = [0, 0], sizes = [8, 8], strides = [1, 1]} : vector<8x32xf32> to vector<8x8xf32>
    %cst_53 = arith.constant dense<0.000000e+00> : vector<8x8xf32>
    %201 = tpu.matmul %198, %199, %cst_53 {dimension_numbers = #tpu.dot_dimension_numbers<[1], [1], [0], [0], [0, 0, 1, 0], [], []>} : vector<8x8xf32>, vector<8x8xf32>, vector<8x8xf32> -> vector<8x8xf32>
    %cst_54 = arith.constant 0.353553385 : f32
    %202 = vector.broadcast %cst_54 : f32 to vector<8x8xf32>
    %203 = arith.mulf %201, %202 : vector<8x8xf32>
    %cst_55 = arith.constant dense<0xFF800000> : vector<8xf32>
    %204 = vector.multi_reduction <maximumf>, %203, %cst_55 [1] : vector<8x8xf32> to vector<8xf32>
    %205 = vector.shape_cast %204 : vector<8xf32> to vector<8x1xf32>
    %206 = vector.broadcast %205 : vector<8x1xf32> to vector<8x8xf32>
    %207 = arith.subf %203, %206 : vector<8x8xf32>
    %208 = math.exp %207 : vector<8x8xf32>
    %cst_56 = arith.constant dense<0.000000e+00> : vector<8xf32>
    %209 = vector.multi_reduction <add>, %208, %cst_56 [1] : vector<8x8xf32> to vector<8xf32>
    %210 = vector.shape_cast %209 : vector<8xf32> to vector<8x1xf32>
    %211 = tpu.reciprocal %210 {approx = true} : vector<8x1xf32> -> vector<8x1xf32>
    %212 = vector.broadcast %211 : vector<8x1xf32> to vector<8x8xf32>
    %213 = arith.mulf %208, %212 : vector<8x8xf32>
    %cst_57 = arith.constant dense<0.000000e+00> : vector<8x8xf32>
    %214 = tpu.matmul %213, %200, %cst_57 {dimension_numbers = #tpu.dot_dimension_numbers<[1], [0], [0], [1], [0, 0, 1, 1], [], []>} : vector<8x8xf32>, vector<8x8xf32>, vector<8x8xf32> -> vector<8x8xf32>
    %215 = vector.extract_strided_slice %187 {offsets = [0, 8], sizes = [8, 8], strides = [1, 1]} : vector<8x32xf32> to vector<8x8xf32>
    %216 = vector.extract_strided_slice %191 {offsets = [0, 8], sizes = [8, 8], strides = [1, 1]} : vector<8x32xf32> to vector<8x8xf32>
    %217 = vector.extract_strided_slice %195 {offsets = [0, 8], sizes = [8, 8], strides = [1, 1]} : vector<8x32xf32> to vector<8x8xf32>
    %cst_58 = arith.constant dense<0.000000e+00> : vector<8x8xf32>
    %218 = tpu.matmul %215, %216, %cst_58 {dimension_numbers = #tpu.dot_dimension_numbers<[1], [1], [0], [0], [0, 0, 1, 0], [], []>} : vector<8x8xf32>, vector<8x8xf32>, vector<8x8xf32> -> vector<8x8xf32>
    %cst_59 = arith.constant 0.353553385 : f32
    %219 = vector.broadcast %cst_59 : f32 to vector<8x8xf32>
    %220 = arith.mulf %218, %219 : vector<8x8xf32>
    %cst_60 = arith.constant dense<0xFF800000> : vector<8xf32>
    %221 = vector.multi_reduction <maximumf>, %220, %cst_60 [1] : vector<8x8xf32> to vector<8xf32>
    %222 = vector.shape_cast %221 : vector<8xf32> to vector<8x1xf32>
    %223 = vector.broadcast %222 : vector<8x1xf32> to vector<8x8xf32>
    %224 = arith.subf %220, %223 : vector<8x8xf32>
    %225 = math.exp %224 : vector<8x8xf32>
    %cst_61 = arith.constant dense<0.000000e+00> : vector<8xf32>
    %226 = vector.multi_reduction <add>, %225, %cst_61 [1] : vector<8x8xf32> to vector<8xf32>
    %227 = vector.shape_cast %226 : vector<8xf32> to vector<8x1xf32>
    %228 = tpu.reciprocal %227 {approx = true} : vector<8x1xf32> -> vector<8x1xf32>
    %229 = vector.broadcast %228 : vector<8x1xf32> to vector<8x8xf32>
    %230 = arith.mulf %225, %229 : vector<8x8xf32>
    %cst_62 = arith.constant dense<0.000000e+00> : vector<8x8xf32>
    %231 = tpu.matmul %230, %217, %cst_62 {dimension_numbers = #tpu.dot_dimension_numbers<[1], [0], [0], [1], [0, 0, 1, 1], [], []>} : vector<8x8xf32>, vector<8x8xf32>, vector<8x8xf32> -> vector<8x8xf32>
    %232 = vector.extract_strided_slice %187 {offsets = [0, 16], sizes = [8, 8], strides = [1, 1]} : vector<8x32xf32> to vector<8x8xf32>
    %233 = vector.extract_strided_slice %191 {offsets = [0, 16], sizes = [8, 8], strides = [1, 1]} : vector<8x32xf32> to vector<8x8xf32>
    %234 = vector.extract_strided_slice %195 {offsets = [0, 16], sizes = [8, 8], strides = [1, 1]} : vector<8x32xf32> to vector<8x8xf32>
    %cst_63 = arith.constant dense<0.000000e+00> : vector<8x8xf32>
    %235 = tpu.matmul %232, %233, %cst_63 {dimension_numbers = #tpu.dot_dimension_numbers<[1], [1], [0], [0], [0, 0, 1, 0], [], []>} : vector<8x8xf32>, vector<8x8xf32>, vector<8x8xf32> -> vector<8x8xf32>
    %cst_64 = arith.constant 0.353553385 : f32
    %236 = vector.broadcast %cst_64 : f32 to vector<8x8xf32>
    %237 = arith.mulf %235, %236 : vector<8x8xf32>
    %cst_65 = arith.constant dense<0xFF800000> : vector<8xf32>
    %238 = vector.multi_reduction <maximumf>, %237, %cst_65 [1] : vector<8x8xf32> to vector<8xf32>
    %239 = vector.shape_cast %238 : vector<8xf32> to vector<8x1xf32>
    %240 = vector.broadcast %239 : vector<8x1xf32> to vector<8x8xf32>
    %241 = arith.subf %237, %240 : vector<8x8xf32>
    %242 = math.exp %241 : vector<8x8xf32>
    %cst_66 = arith.constant dense<0.000000e+00> : vector<8xf32>
    %243 = vector.multi_reduction <add>, %242, %cst_66 [1] : vector<8x8xf32> to vector<8xf32>
    %244 = vector.shape_cast %243 : vector<8xf32> to vector<8x1xf32>
    %245 = tpu.reciprocal %244 {approx = true} : vector<8x1xf32> -> vector<8x1xf32>
    %246 = vector.broadcast %245 : vector<8x1xf32> to vector<8x8xf32>
    %247 = arith.mulf %242, %246 : vector<8x8xf32>
    %cst_67 = arith.constant dense<0.000000e+00> : vector<8x8xf32>
    %248 = tpu.matmul %247, %234, %cst_67 {dimension_numbers = #tpu.dot_dimension_numbers<[1], [0], [0], [1], [0, 0, 1, 1], [], []>} : vector<8x8xf32>, vector<8x8xf32>, vector<8x8xf32> -> vector<8x8xf32>
    %249 = vector.extract_strided_slice %187 {offsets = [0, 24], sizes = [8, 8], strides = [1, 1]} : vector<8x32xf32> to vector<8x8xf32>
    %250 = vector.extract_strided_slice %191 {offsets = [0, 24], sizes = [8, 8], strides = [1, 1]} : vector<8x32xf32> to vector<8x8xf32>
    %251 = vector.extract_strided_slice %195 {offsets = [0, 24], sizes = [8, 8], strides = [1, 1]} : vector<8x32xf32> to vector<8x8xf32>
    %cst_68 = arith.constant dense<0.000000e+00> : vector<8x8xf32>
    %252 = tpu.matmul %249, %250, %cst_68 {dimension_numbers = #tpu.dot_dimension_numbers<[1], [1], [0], [0], [0, 0, 1, 0], [], []>} : vector<8x8xf32>, vector<8x8xf32>, vector<8x8xf32> -> vector<8x8xf32>
    %cst_69 = arith.constant 0.353553385 : f32
    %253 = vector.broadcast %cst_69 : f32 to vector<8x8xf32>
    %254 = arith.mulf %252, %253 : vector<8x8xf32>
    %cst_70 = arith.constant dense<0xFF800000> : vector<8xf32>
    %255 = vector.multi_reduction <maximumf>, %254, %cst_70 [1] : vector<8x8xf32> to vector<8xf32>
    %256 = vector.shape_cast %255 : vector<8xf32> to vector<8x1xf32>
    %257 = vector.broadcast %256 : vector<8x1xf32> to vector<8x8xf32>
    %258 = arith.subf %254, %257 : vector<8x8xf32>
    %259 = math.exp %258 : vector<8x8xf32>
    %cst_71 = arith.constant dense<0.000000e+00> : vector<8xf32>
    %260 = vector.multi_reduction <add>, %259, %cst_71 [1] : vector<8x8xf32> to vector<8xf32>
    %261 = vector.shape_cast %260 : vector<8xf32> to vector<8x1xf32>
    %262 = tpu.reciprocal %261 {approx = true} : vector<8x1xf32> -> vector<8x1xf32>
    %263 = vector.broadcast %262 : vector<8x1xf32> to vector<8x8xf32>
    %264 = arith.mulf %259, %263 : vector<8x8xf32>
    %cst_72 = arith.constant dense<0.000000e+00> : vector<8x8xf32>
    %265 = tpu.matmul %264, %251, %cst_72 {dimension_numbers = #tpu.dot_dimension_numbers<[1], [0], [0], [1], [0, 0, 1, 1], [], []>} : vector<8x8xf32>, vector<8x8xf32>, vector<8x8xf32> -> vector<8x8xf32>
    %266 = tpu.concatenate %214, %231, %248, %265 in 1 : vector<8x8xf32>, vector<8x8xf32>, vector<8x8xf32>, vector<8x8xf32> -> vector<8x32xf32>
    %cst_73 = arith.constant dense<0.000000e+00> : vector<8x32xf32>
    %267 = tpu.matmul %266, %196, %cst_73 {dimension_numbers = #tpu.dot_dimension_numbers<[1], [0], [0], [1], [0, 0, 1, 1], [], []>} : vector<8x32xf32>, vector<32x32xf32>, vector<8x32xf32> -> vector<8x32xf32>
    %268 = vector.broadcast %197 : vector<1x32xf32> to vector<8x32xf32>
    %269 = arith.addf %267, %268 : vector<8x32xf32>
    %270 = arith.addf %155, %269 : vector<8x32xf32>
    %271 = vector.extract_strided_slice %157 {offsets = [6, 0], sizes = [1, 32], strides = [1, 1]} : vector<10x32xf32> to vector<1x32xf32>
    %272 = vector.extract_strided_slice %157 {offsets = [7, 0], sizes = [1, 32], strides = [1, 1]} : vector<10x32xf32> to vector<1x32xf32>
    %273 = vector.extract_strided_slice %156 {offsets = [0, 128], sizes = [32, 32], strides = [1, 1]} : vector<32x192xf32> to vector<32x32xf32>
    %274 = vector.extract_strided_slice %157 {offsets = [8, 0], sizes = [1, 32], strides = [1, 1]} : vector<10x32xf32> to vector<1x32xf32>
    %275 = vector.extract_strided_slice %156 {offsets = [0, 160], sizes = [32, 32], strides = [1, 1]} : vector<32x192xf32> to vector<32x32xf32>
    %276 = vector.extract_strided_slice %157 {offsets = [9, 0], sizes = [1, 32], strides = [1, 1]} : vector<10x32xf32> to vector<1x32xf32>
    %cst_74 = arith.constant dense<0.000000e+00> : vector<8xf32>
    %277 = vector.multi_reduction <add>, %270, %cst_74 [1] : vector<8x32xf32> to vector<8xf32>
    %278 = vector.shape_cast %277 : vector<8xf32> to vector<8x1xf32>
    %cst_75 = arith.constant 3.200000e+01 : f32
    %279 = vector.broadcast %cst_75 : f32 to vector<8x1xf32>
    %280 = arith.divf %278, %279 : vector<8x1xf32>
    %281 = vector.broadcast %280 : vector<8x1xf32> to vector<8x32xf32>
    %282 = arith.subf %270, %281 : vector<8x32xf32>
    %283 = arith.mulf %282, %282 : vector<8x32xf32>
    %cst_76 = arith.constant dense<0.000000e+00> : vector<8xf32>
    %284 = vector.multi_reduction <add>, %283, %cst_76 [1] : vector<8x32xf32> to vector<8xf32>
    %285 = vector.shape_cast %284 : vector<8xf32> to vector<8x1xf32>
    %cst_77 = arith.constant 3.200000e+01 : f32
    %286 = vector.broadcast %cst_77 : f32 to vector<8x1xf32>
    %287 = arith.divf %285, %286 : vector<8x1xf32>
    %288 = vector.broadcast %280 : vector<8x1xf32> to vector<8x32xf32>
    %289 = arith.subf %270, %288 : vector<8x32xf32>
    %cst_78 = arith.constant 9.99999997E-7 : f32
    %290 = vector.broadcast %cst_78 : f32 to vector<8x1xf32>
    %291 = arith.addf %287, %290 : vector<8x1xf32>
    %292 = math.rsqrt %291 : vector<8x1xf32>
    %293 = vector.broadcast %292 : vector<8x1xf32> to vector<8x32xf32>
    %294 = arith.mulf %289, %293 : vector<8x32xf32>
    %295 = vector.broadcast %271 : vector<1x32xf32> to vector<8x32xf32>
    %296 = arith.mulf %294, %295 : vector<8x32xf32>
    %297 = vector.broadcast %272 : vector<1x32xf32> to vector<8x32xf32>
    %298 = arith.addf %296, %297 : vector<8x32xf32>
    %cst_79 = arith.constant dense<0.000000e+00> : vector<8x32xf32>
    %299 = tpu.matmul %298, %273, %cst_79 {dimension_numbers = #tpu.dot_dimension_numbers<[1], [0], [0], [1], [0, 0, 1, 1], [], []>} : vector<8x32xf32>, vector<32x32xf32>, vector<8x32xf32> -> vector<8x32xf32>
    %300 = vector.broadcast %274 : vector<1x32xf32> to vector<8x32xf32>
    %301 = arith.addf %299, %300 : vector<8x32xf32>
    %cst_80 = arith.constant 0.000000e+00 : f32
    %302 = vector.broadcast %cst_80 : f32 to vector<8x32xf32>
    %303 = arith.maximumf %301, %302 : vector<8x32xf32>
    %cst_81 = arith.constant dense<0.000000e+00> : vector<8x32xf32>
    %304 = tpu.matmul %303, %275, %cst_81 {dimension_numbers = #tpu.dot_dimension_numbers<[1], [0], [0], [1], [0, 0, 1, 1], [], []>} : vector<8x32xf32>, vector<32x32xf32>, vector<8x32xf32> -> vector<8x32xf32>
    %305 = arith.addf %270, %304 : vector<8x32xf32>
    %306 = vector.broadcast %276 : vector<1x32xf32> to vector<8x32xf32>
    %307 = arith.addf %305, %306 : vector<8x32xf32>
    %c0_82 = arith.constant 0 : index
    %c0_83 = arith.constant 0 : index
    %308 = vector.load %arg7[%c0_82, %c0_83] : memref<32x256xf32, #tpu.memory_space<vmem>>, vector<32x256xf32>
    %c0_84 = arith.constant 0 : index
    %c0_85 = arith.constant 0 : index
    %309 = vector.load %arg8[%c0_84, %c0_85] : memref<16x32xf32, #tpu.memory_space<vmem>>, vector<16x32xf32>
    %310 = vector.extract_strided_slice %309 {offsets = [0, 0], sizes = [1, 32], strides = [1, 1]} : vector<16x32xf32> to vector<1x32xf32>
    %311 = vector.extract_strided_slice %309 {offsets = [1, 0], sizes = [1, 32], strides = [1, 1]} : vector<16x32xf32> to vector<1x32xf32>
    %cst_86 = arith.constant dense<0.000000e+00> : vector<8xf32>
    %312 = vector.multi_reduction <add>, %153, %cst_86 [1] : vector<8x32xf32> to vector<8xf32>
    %313 = vector.shape_cast %312 : vector<8xf32> to vector<8x1xf32>
    %cst_87 = arith.constant 3.200000e+01 : f32
    %314 = vector.broadcast %cst_87 : f32 to vector<8x1xf32>
    %315 = arith.divf %313, %314 : vector<8x1xf32>
    %316 = vector.broadcast %315 : vector<8x1xf32> to vector<8x32xf32>
    %317 = arith.subf %153, %316 : vector<8x32xf32>
    %318 = arith.mulf %317, %317 : vector<8x32xf32>
    %cst_88 = arith.constant dense<0.000000e+00> : vector<8xf32>
    %319 = vector.multi_reduction <add>, %318, %cst_88 [1] : vector<8x32xf32> to vector<8xf32>
    %320 = vector.shape_cast %319 : vector<8xf32> to vector<8x1xf32>
    %cst_89 = arith.constant 3.200000e+01 : f32
    %321 = vector.broadcast %cst_89 : f32 to vector<8x1xf32>
    %322 = arith.divf %320, %321 : vector<8x1xf32>
    %323 = vector.broadcast %315 : vector<8x1xf32> to vector<8x32xf32>
    %324 = arith.subf %153, %323 : vector<8x32xf32>
    %cst_90 = arith.constant 9.99999997E-7 : f32
    %325 = vector.broadcast %cst_90 : f32 to vector<8x1xf32>
    %326 = arith.addf %322, %325 : vector<8x1xf32>
    %327 = math.rsqrt %326 : vector<8x1xf32>
    %328 = vector.broadcast %327 : vector<8x1xf32> to vector<8x32xf32>
    %329 = arith.mulf %324, %328 : vector<8x32xf32>
    %330 = vector.broadcast %310 : vector<1x32xf32> to vector<8x32xf32>
    %331 = arith.mulf %329, %330 : vector<8x32xf32>
    %332 = vector.broadcast %311 : vector<1x32xf32> to vector<8x32xf32>
    %333 = arith.addf %331, %332 : vector<8x32xf32>
    %334 = vector.extract_strided_slice %309 {offsets = [2, 0], sizes = [1, 32], strides = [1, 1]} : vector<16x32xf32> to vector<1x32xf32>
    %335 = vector.extract_strided_slice %309 {offsets = [3, 0], sizes = [1, 32], strides = [1, 1]} : vector<16x32xf32> to vector<1x32xf32>
    %cst_91 = arith.constant dense<0.000000e+00> : vector<8xf32>
    %336 = vector.multi_reduction <add>, %307, %cst_91 [1] : vector<8x32xf32> to vector<8xf32>
    %337 = vector.shape_cast %336 : vector<8xf32> to vector<8x1xf32>
    %cst_92 = arith.constant 3.200000e+01 : f32
    %338 = vector.broadcast %cst_92 : f32 to vector<8x1xf32>
    %339 = arith.divf %337, %338 : vector<8x1xf32>
    %340 = vector.broadcast %339 : vector<8x1xf32> to vector<8x32xf32>
    %341 = arith.subf %307, %340 : vector<8x32xf32>
    %342 = arith.mulf %341, %341 : vector<8x32xf32>
    %cst_93 = arith.constant dense<0.000000e+00> : vector<8xf32>
    %343 = vector.multi_reduction <add>, %342, %cst_93 [1] : vector<8x32xf32> to vector<8xf32>
    %344 = vector.shape_cast %343 : vector<8xf32> to vector<8x1xf32>
    %cst_94 = arith.constant 3.200000e+01 : f32
    %345 = vector.broadcast %cst_94 : f32 to vector<8x1xf32>
    %346 = arith.divf %344, %345 : vector<8x1xf32>
    %347 = vector.broadcast %339 : vector<8x1xf32> to vector<8x32xf32>
    %348 = arith.subf %307, %347 : vector<8x32xf32>
    %cst_95 = arith.constant 9.99999997E-7 : f32
    %349 = vector.broadcast %cst_95 : f32 to vector<8x1xf32>
    %350 = arith.addf %346, %349 : vector<8x1xf32>
    %351 = math.rsqrt %350 : vector<8x1xf32>
    %352 = vector.broadcast %351 : vector<8x1xf32> to vector<8x32xf32>
    %353 = arith.mulf %348, %352 : vector<8x32xf32>
    %354 = vector.broadcast %334 : vector<1x32xf32> to vector<8x32xf32>
    %355 = arith.mulf %353, %354 : vector<8x32xf32>
    %356 = vector.broadcast %335 : vector<1x32xf32> to vector<8x32xf32>
    %357 = arith.addf %355, %356 : vector<8x32xf32>
    %358 = tpu.concatenate %333, %357 in 0 : vector<8x32xf32>, vector<8x32xf32> -> vector<16x32xf32>
    %359 = vector.extract_strided_slice %308 {offsets = [0, 0], sizes = [32, 96], strides = [1, 1]} : vector<32x256xf32> to vector<32x96xf32>
    %cst_96 = arith.constant dense<0.000000e+00> : vector<16x96xf32>
    %360 = tpu.matmul %358, %359, %cst_96 {dimension_numbers = #tpu.dot_dimension_numbers<[1], [0], [0], [1], [0, 0, 1, 1], [], []>} : vector<16x32xf32>, vector<32x96xf32>, vector<16x96xf32> -> vector<16x96xf32>
    %361 = vector.extract_strided_slice %360 {offsets = [0, 0], sizes = [8, 32], strides = [1, 1]} : vector<16x96xf32> to vector<8x32xf32>
    %362 = vector.extract_strided_slice %309 {offsets = [4, 0], sizes = [1, 32], strides = [1, 1]} : vector<16x32xf32> to vector<1x32xf32>
    %363 = vector.broadcast %362 : vector<1x32xf32> to vector<8x32xf32>
    %364 = arith.addf %361, %363 : vector<8x32xf32>
    %365 = vector.extract_strided_slice %360 {offsets = [0, 32], sizes = [8, 32], strides = [1, 1]} : vector<16x96xf32> to vector<8x32xf32>
    %366 = vector.extract_strided_slice %309 {offsets = [5, 0], sizes = [1, 32], strides = [1, 1]} : vector<16x32xf32> to vector<1x32xf32>
    %367 = vector.broadcast %366 : vector<1x32xf32> to vector<8x32xf32>
    %368 = arith.addf %365, %367 : vector<8x32xf32>
    %369 = vector.extract_strided_slice %360 {offsets = [0, 64], sizes = [8, 32], strides = [1, 1]} : vector<16x96xf32> to vector<8x32xf32>
    %370 = vector.extract_strided_slice %309 {offsets = [6, 0], sizes = [1, 32], strides = [1, 1]} : vector<16x32xf32> to vector<1x32xf32>
    %371 = vector.broadcast %370 : vector<1x32xf32> to vector<8x32xf32>
    %372 = arith.addf %369, %371 : vector<8x32xf32>
    %373 = vector.extract_strided_slice %360 {offsets = [8, 0], sizes = [8, 32], strides = [1, 1]} : vector<16x96xf32> to vector<8x32xf32>
    %374 = vector.extract_strided_slice %309 {offsets = [4, 0], sizes = [1, 32], strides = [1, 1]} : vector<16x32xf32> to vector<1x32xf32>
    %375 = vector.broadcast %374 : vector<1x32xf32> to vector<8x32xf32>
    %376 = arith.addf %373, %375 : vector<8x32xf32>
    %377 = vector.extract_strided_slice %360 {offsets = [8, 32], sizes = [8, 32], strides = [1, 1]} : vector<16x96xf32> to vector<8x32xf32>
    %378 = vector.extract_strided_slice %309 {offsets = [5, 0], sizes = [1, 32], strides = [1, 1]} : vector<16x32xf32> to vector<1x32xf32>
    %379 = vector.broadcast %378 : vector<1x32xf32> to vector<8x32xf32>
    %380 = arith.addf %377, %379 : vector<8x32xf32>
    %381 = vector.extract_strided_slice %360 {offsets = [8, 64], sizes = [8, 32], strides = [1, 1]} : vector<16x96xf32> to vector<8x32xf32>
    %382 = vector.extract_strided_slice %309 {offsets = [6, 0], sizes = [1, 32], strides = [1, 1]} : vector<16x32xf32> to vector<1x32xf32>
    %383 = vector.broadcast %382 : vector<1x32xf32> to vector<8x32xf32>
    %384 = arith.addf %381, %383 : vector<8x32xf32>
    %385 = vector.extract_strided_slice %308 {offsets = [0, 96], sizes = [32, 32], strides = [1, 1]} : vector<32x256xf32> to vector<32x32xf32>
    %386 = vector.extract_strided_slice %309 {offsets = [7, 0], sizes = [1, 32], strides = [1, 1]} : vector<16x32xf32> to vector<1x32xf32>
    %387 = vector.extract_strided_slice %364 {offsets = [0, 0], sizes = [8, 8], strides = [1, 1]} : vector<8x32xf32> to vector<8x8xf32>
    %388 = vector.extract_strided_slice %380 {offsets = [0, 0], sizes = [8, 8], strides = [1, 1]} : vector<8x32xf32> to vector<8x8xf32>
    %389 = vector.extract_strided_slice %384 {offsets = [0, 0], sizes = [8, 8], strides = [1, 1]} : vector<8x32xf32> to vector<8x8xf32>
    %cst_97 = arith.constant dense<0.000000e+00> : vector<8x8xf32>
    %390 = tpu.matmul %387, %388, %cst_97 {dimension_numbers = #tpu.dot_dimension_numbers<[1], [1], [0], [0], [0, 0, 1, 0], [], []>} : vector<8x8xf32>, vector<8x8xf32>, vector<8x8xf32> -> vector<8x8xf32>
    %cst_98 = arith.constant 0.353553385 : f32
    %391 = vector.broadcast %cst_98 : f32 to vector<8x8xf32>
    %392 = arith.mulf %390, %391 : vector<8x8xf32>
    %cst_99 = arith.constant dense<0xFF800000> : vector<8xf32>
    %393 = vector.multi_reduction <maximumf>, %392, %cst_99 [1] : vector<8x8xf32> to vector<8xf32>
    %394 = vector.shape_cast %393 : vector<8xf32> to vector<8x1xf32>
    %395 = vector.broadcast %394 : vector<8x1xf32> to vector<8x8xf32>
    %396 = arith.subf %392, %395 : vector<8x8xf32>
    %397 = math.exp %396 : vector<8x8xf32>
    %cst_100 = arith.constant dense<0.000000e+00> : vector<8xf32>
    %398 = vector.multi_reduction <add>, %397, %cst_100 [1] : vector<8x8xf32> to vector<8xf32>
    %399 = vector.shape_cast %398 : vector<8xf32> to vector<8x1xf32>
    %400 = tpu.reciprocal %399 {approx = true} : vector<8x1xf32> -> vector<8x1xf32>
    %401 = vector.broadcast %400 : vector<8x1xf32> to vector<8x8xf32>
    %402 = arith.mulf %397, %401 : vector<8x8xf32>
    %cst_101 = arith.constant dense<0.000000e+00> : vector<8x8xf32>
    %403 = tpu.matmul %402, %389, %cst_101 {dimension_numbers = #tpu.dot_dimension_numbers<[1], [0], [0], [1], [0, 0, 1, 1], [], []>} : vector<8x8xf32>, vector<8x8xf32>, vector<8x8xf32> -> vector<8x8xf32>
    %404 = vector.extract_strided_slice %364 {offsets = [0, 8], sizes = [8, 8], strides = [1, 1]} : vector<8x32xf32> to vector<8x8xf32>
    %405 = vector.extract_strided_slice %380 {offsets = [0, 8], sizes = [8, 8], strides = [1, 1]} : vector<8x32xf32> to vector<8x8xf32>
    %406 = vector.extract_strided_slice %384 {offsets = [0, 8], sizes = [8, 8], strides = [1, 1]} : vector<8x32xf32> to vector<8x8xf32>
    %cst_102 = arith.constant dense<0.000000e+00> : vector<8x8xf32>
    %407 = tpu.matmul %404, %405, %cst_102 {dimension_numbers = #tpu.dot_dimension_numbers<[1], [1], [0], [0], [0, 0, 1, 0], [], []>} : vector<8x8xf32>, vector<8x8xf32>, vector<8x8xf32> -> vector<8x8xf32>
    %cst_103 = arith.constant 0.353553385 : f32
    %408 = vector.broadcast %cst_103 : f32 to vector<8x8xf32>
    %409 = arith.mulf %407, %408 : vector<8x8xf32>
    %cst_104 = arith.constant dense<0xFF800000> : vector<8xf32>
    %410 = vector.multi_reduction <maximumf>, %409, %cst_104 [1] : vector<8x8xf32> to vector<8xf32>
    %411 = vector.shape_cast %410 : vector<8xf32> to vector<8x1xf32>
    %412 = vector.broadcast %411 : vector<8x1xf32> to vector<8x8xf32>
    %413 = arith.subf %409, %412 : vector<8x8xf32>
    %414 = math.exp %413 : vector<8x8xf32>
    %cst_105 = arith.constant dense<0.000000e+00> : vector<8xf32>
    %415 = vector.multi_reduction <add>, %414, %cst_105 [1] : vector<8x8xf32> to vector<8xf32>
    %416 = vector.shape_cast %415 : vector<8xf32> to vector<8x1xf32>
    %417 = tpu.reciprocal %416 {approx = true} : vector<8x1xf32> -> vector<8x1xf32>
    %418 = vector.broadcast %417 : vector<8x1xf32> to vector<8x8xf32>
    %419 = arith.mulf %414, %418 : vector<8x8xf32>
    %cst_106 = arith.constant dense<0.000000e+00> : vector<8x8xf32>
    %420 = tpu.matmul %419, %406, %cst_106 {dimension_numbers = #tpu.dot_dimension_numbers<[1], [0], [0], [1], [0, 0, 1, 1], [], []>} : vector<8x8xf32>, vector<8x8xf32>, vector<8x8xf32> -> vector<8x8xf32>
    %421 = vector.extract_strided_slice %364 {offsets = [0, 16], sizes = [8, 8], strides = [1, 1]} : vector<8x32xf32> to vector<8x8xf32>
    %422 = vector.extract_strided_slice %380 {offsets = [0, 16], sizes = [8, 8], strides = [1, 1]} : vector<8x32xf32> to vector<8x8xf32>
    %423 = vector.extract_strided_slice %384 {offsets = [0, 16], sizes = [8, 8], strides = [1, 1]} : vector<8x32xf32> to vector<8x8xf32>
    %cst_107 = arith.constant dense<0.000000e+00> : vector<8x8xf32>
    %424 = tpu.matmul %421, %422, %cst_107 {dimension_numbers = #tpu.dot_dimension_numbers<[1], [1], [0], [0], [0, 0, 1, 0], [], []>} : vector<8x8xf32>, vector<8x8xf32>, vector<8x8xf32> -> vector<8x8xf32>
    %cst_108 = arith.constant 0.353553385 : f32
    %425 = vector.broadcast %cst_108 : f32 to vector<8x8xf32>
    %426 = arith.mulf %424, %425 : vector<8x8xf32>
    %cst_109 = arith.constant dense<0xFF800000> : vector<8xf32>
    %427 = vector.multi_reduction <maximumf>, %426, %cst_109 [1] : vector<8x8xf32> to vector<8xf32>
    %428 = vector.shape_cast %427 : vector<8xf32> to vector<8x1xf32>
    %429 = vector.broadcast %428 : vector<8x1xf32> to vector<8x8xf32>
    %430 = arith.subf %426, %429 : vector<8x8xf32>
    %431 = math.exp %430 : vector<8x8xf32>
    %cst_110 = arith.constant dense<0.000000e+00> : vector<8xf32>
    %432 = vector.multi_reduction <add>, %431, %cst_110 [1] : vector<8x8xf32> to vector<8xf32>
    %433 = vector.shape_cast %432 : vector<8xf32> to vector<8x1xf32>
    %434 = tpu.reciprocal %433 {approx = true} : vector<8x1xf32> -> vector<8x1xf32>
    %435 = vector.broadcast %434 : vector<8x1xf32> to vector<8x8xf32>
    %436 = arith.mulf %431, %435 : vector<8x8xf32>
    %cst_111 = arith.constant dense<0.000000e+00> : vector<8x8xf32>
    %437 = tpu.matmul %436, %423, %cst_111 {dimension_numbers = #tpu.dot_dimension_numbers<[1], [0], [0], [1], [0, 0, 1, 1], [], []>} : vector<8x8xf32>, vector<8x8xf32>, vector<8x8xf32> -> vector<8x8xf32>
    %438 = vector.extract_strided_slice %364 {offsets = [0, 24], sizes = [8, 8], strides = [1, 1]} : vector<8x32xf32> to vector<8x8xf32>
    %439 = vector.extract_strided_slice %380 {offsets = [0, 24], sizes = [8, 8], strides = [1, 1]} : vector<8x32xf32> to vector<8x8xf32>
    %440 = vector.extract_strided_slice %384 {offsets = [0, 24], sizes = [8, 8], strides = [1, 1]} : vector<8x32xf32> to vector<8x8xf32>
    %cst_112 = arith.constant dense<0.000000e+00> : vector<8x8xf32>
    %441 = tpu.matmul %438, %439, %cst_112 {dimension_numbers = #tpu.dot_dimension_numbers<[1], [1], [0], [0], [0, 0, 1, 0], [], []>} : vector<8x8xf32>, vector<8x8xf32>, vector<8x8xf32> -> vector<8x8xf32>
    %cst_113 = arith.constant 0.353553385 : f32
    %442 = vector.broadcast %cst_113 : f32 to vector<8x8xf32>
    %443 = arith.mulf %441, %442 : vector<8x8xf32>
    %cst_114 = arith.constant dense<0xFF800000> : vector<8xf32>
    %444 = vector.multi_reduction <maximumf>, %443, %cst_114 [1] : vector<8x8xf32> to vector<8xf32>
    %445 = vector.shape_cast %444 : vector<8xf32> to vector<8x1xf32>
    %446 = vector.broadcast %445 : vector<8x1xf32> to vector<8x8xf32>
    %447 = arith.subf %443, %446 : vector<8x8xf32>
    %448 = math.exp %447 : vector<8x8xf32>
    %cst_115 = arith.constant dense<0.000000e+00> : vector<8xf32>
    %449 = vector.multi_reduction <add>, %448, %cst_115 [1] : vector<8x8xf32> to vector<8xf32>
    %450 = vector.shape_cast %449 : vector<8xf32> to vector<8x1xf32>
    %451 = tpu.reciprocal %450 {approx = true} : vector<8x1xf32> -> vector<8x1xf32>
    %452 = vector.broadcast %451 : vector<8x1xf32> to vector<8x8xf32>
    %453 = arith.mulf %448, %452 : vector<8x8xf32>
    %cst_116 = arith.constant dense<0.000000e+00> : vector<8x8xf32>
    %454 = tpu.matmul %453, %440, %cst_116 {dimension_numbers = #tpu.dot_dimension_numbers<[1], [0], [0], [1], [0, 0, 1, 1], [], []>} : vector<8x8xf32>, vector<8x8xf32>, vector<8x8xf32> -> vector<8x8xf32>
    %455 = tpu.concatenate %403, %420, %437, %454 in 1 : vector<8x8xf32>, vector<8x8xf32>, vector<8x8xf32>, vector<8x8xf32> -> vector<8x32xf32>
    %cst_117 = arith.constant dense<0.000000e+00> : vector<8x32xf32>
    %456 = tpu.matmul %455, %385, %cst_117 {dimension_numbers = #tpu.dot_dimension_numbers<[1], [0], [0], [1], [0, 0, 1, 1], [], []>} : vector<8x32xf32>, vector<32x32xf32>, vector<8x32xf32> -> vector<8x32xf32>
    %457 = vector.broadcast %386 : vector<1x32xf32> to vector<8x32xf32>
    %458 = arith.addf %456, %457 : vector<8x32xf32>
    %459 = vector.extract_strided_slice %376 {offsets = [0, 0], sizes = [8, 8], strides = [1, 1]} : vector<8x32xf32> to vector<8x8xf32>
    %460 = vector.extract_strided_slice %368 {offsets = [0, 0], sizes = [8, 8], strides = [1, 1]} : vector<8x32xf32> to vector<8x8xf32>
    %461 = vector.extract_strided_slice %372 {offsets = [0, 0], sizes = [8, 8], strides = [1, 1]} : vector<8x32xf32> to vector<8x8xf32>
    %cst_118 = arith.constant dense<0.000000e+00> : vector<8x8xf32>
    %462 = tpu.matmul %459, %460, %cst_118 {dimension_numbers = #tpu.dot_dimension_numbers<[1], [1], [0], [0], [0, 0, 1, 0], [], []>} : vector<8x8xf32>, vector<8x8xf32>, vector<8x8xf32> -> vector<8x8xf32>
    %cst_119 = arith.constant 0.353553385 : f32
    %463 = vector.broadcast %cst_119 : f32 to vector<8x8xf32>
    %464 = arith.mulf %462, %463 : vector<8x8xf32>
    %cst_120 = arith.constant dense<0xFF800000> : vector<8xf32>
    %465 = vector.multi_reduction <maximumf>, %464, %cst_120 [1] : vector<8x8xf32> to vector<8xf32>
    %466 = vector.shape_cast %465 : vector<8xf32> to vector<8x1xf32>
    %467 = vector.broadcast %466 : vector<8x1xf32> to vector<8x8xf32>
    %468 = arith.subf %464, %467 : vector<8x8xf32>
    %469 = math.exp %468 : vector<8x8xf32>
    %cst_121 = arith.constant dense<0.000000e+00> : vector<8xf32>
    %470 = vector.multi_reduction <add>, %469, %cst_121 [1] : vector<8x8xf32> to vector<8xf32>
    %471 = vector.shape_cast %470 : vector<8xf32> to vector<8x1xf32>
    %472 = tpu.reciprocal %471 {approx = true} : vector<8x1xf32> -> vector<8x1xf32>
    %473 = vector.broadcast %472 : vector<8x1xf32> to vector<8x8xf32>
    %474 = arith.mulf %469, %473 : vector<8x8xf32>
    %cst_122 = arith.constant dense<0.000000e+00> : vector<8x8xf32>
    %475 = tpu.matmul %474, %461, %cst_122 {dimension_numbers = #tpu.dot_dimension_numbers<[1], [0], [0], [1], [0, 0, 1, 1], [], []>} : vector<8x8xf32>, vector<8x8xf32>, vector<8x8xf32> -> vector<8x8xf32>
    %476 = vector.extract_strided_slice %376 {offsets = [0, 8], sizes = [8, 8], strides = [1, 1]} : vector<8x32xf32> to vector<8x8xf32>
    %477 = vector.extract_strided_slice %368 {offsets = [0, 8], sizes = [8, 8], strides = [1, 1]} : vector<8x32xf32> to vector<8x8xf32>
    %478 = vector.extract_strided_slice %372 {offsets = [0, 8], sizes = [8, 8], strides = [1, 1]} : vector<8x32xf32> to vector<8x8xf32>
    %cst_123 = arith.constant dense<0.000000e+00> : vector<8x8xf32>
    %479 = tpu.matmul %476, %477, %cst_123 {dimension_numbers = #tpu.dot_dimension_numbers<[1], [1], [0], [0], [0, 0, 1, 0], [], []>} : vector<8x8xf32>, vector<8x8xf32>, vector<8x8xf32> -> vector<8x8xf32>
    %cst_124 = arith.constant 0.353553385 : f32
    %480 = vector.broadcast %cst_124 : f32 to vector<8x8xf32>
    %481 = arith.mulf %479, %480 : vector<8x8xf32>
    %cst_125 = arith.constant dense<0xFF800000> : vector<8xf32>
    %482 = vector.multi_reduction <maximumf>, %481, %cst_125 [1] : vector<8x8xf32> to vector<8xf32>
    %483 = vector.shape_cast %482 : vector<8xf32> to vector<8x1xf32>
    %484 = vector.broadcast %483 : vector<8x1xf32> to vector<8x8xf32>
    %485 = arith.subf %481, %484 : vector<8x8xf32>
    %486 = math.exp %485 : vector<8x8xf32>
    %cst_126 = arith.constant dense<0.000000e+00> : vector<8xf32>
    %487 = vector.multi_reduction <add>, %486, %cst_126 [1] : vector<8x8xf32> to vector<8xf32>
    %488 = vector.shape_cast %487 : vector<8xf32> to vector<8x1xf32>
    %489 = tpu.reciprocal %488 {approx = true} : vector<8x1xf32> -> vector<8x1xf32>
    %490 = vector.broadcast %489 : vector<8x1xf32> to vector<8x8xf32>
    %491 = arith.mulf %486, %490 : vector<8x8xf32>
    %cst_127 = arith.constant dense<0.000000e+00> : vector<8x8xf32>
    %492 = tpu.matmul %491, %478, %cst_127 {dimension_numbers = #tpu.dot_dimension_numbers<[1], [0], [0], [1], [0, 0, 1, 1], [], []>} : vector<8x8xf32>, vector<8x8xf32>, vector<8x8xf32> -> vector<8x8xf32>
    %493 = vector.extract_strided_slice %376 {offsets = [0, 16], sizes = [8, 8], strides = [1, 1]} : vector<8x32xf32> to vector<8x8xf32>
    %494 = vector.extract_strided_slice %368 {offsets = [0, 16], sizes = [8, 8], strides = [1, 1]} : vector<8x32xf32> to vector<8x8xf32>
    %495 = vector.extract_strided_slice %372 {offsets = [0, 16], sizes = [8, 8], strides = [1, 1]} : vector<8x32xf32> to vector<8x8xf32>
    %cst_128 = arith.constant dense<0.000000e+00> : vector<8x8xf32>
    %496 = tpu.matmul %493, %494, %cst_128 {dimension_numbers = #tpu.dot_dimension_numbers<[1], [1], [0], [0], [0, 0, 1, 0], [], []>} : vector<8x8xf32>, vector<8x8xf32>, vector<8x8xf32> -> vector<8x8xf32>
    %cst_129 = arith.constant 0.353553385 : f32
    %497 = vector.broadcast %cst_129 : f32 to vector<8x8xf32>
    %498 = arith.mulf %496, %497 : vector<8x8xf32>
    %cst_130 = arith.constant dense<0xFF800000> : vector<8xf32>
    %499 = vector.multi_reduction <maximumf>, %498, %cst_130 [1] : vector<8x8xf32> to vector<8xf32>
    %500 = vector.shape_cast %499 : vector<8xf32> to vector<8x1xf32>
    %501 = vector.broadcast %500 : vector<8x1xf32> to vector<8x8xf32>
    %502 = arith.subf %498, %501 : vector<8x8xf32>
    %503 = math.exp %502 : vector<8x8xf32>
    %cst_131 = arith.constant dense<0.000000e+00> : vector<8xf32>
    %504 = vector.multi_reduction <add>, %503, %cst_131 [1] : vector<8x8xf32> to vector<8xf32>
    %505 = vector.shape_cast %504 : vector<8xf32> to vector<8x1xf32>
    %506 = tpu.reciprocal %505 {approx = true} : vector<8x1xf32> -> vector<8x1xf32>
    %507 = vector.broadcast %506 : vector<8x1xf32> to vector<8x8xf32>
    %508 = arith.mulf %503, %507 : vector<8x8xf32>
    %cst_132 = arith.constant dense<0.000000e+00> : vector<8x8xf32>
    %509 = tpu.matmul %508, %495, %cst_132 {dimension_numbers = #tpu.dot_dimension_numbers<[1], [0], [0], [1], [0, 0, 1, 1], [], []>} : vector<8x8xf32>, vector<8x8xf32>, vector<8x8xf32> -> vector<8x8xf32>
    %510 = vector.extract_strided_slice %376 {offsets = [0, 24], sizes = [8, 8], strides = [1, 1]} : vector<8x32xf32> to vector<8x8xf32>
    %511 = vector.extract_strided_slice %368 {offsets = [0, 24], sizes = [8, 8], strides = [1, 1]} : vector<8x32xf32> to vector<8x8xf32>
    %512 = vector.extract_strided_slice %372 {offsets = [0, 24], sizes = [8, 8], strides = [1, 1]} : vector<8x32xf32> to vector<8x8xf32>
    %cst_133 = arith.constant dense<0.000000e+00> : vector<8x8xf32>
    %513 = tpu.matmul %510, %511, %cst_133 {dimension_numbers = #tpu.dot_dimension_numbers<[1], [1], [0], [0], [0, 0, 1, 0], [], []>} : vector<8x8xf32>, vector<8x8xf32>, vector<8x8xf32> -> vector<8x8xf32>
    %cst_134 = arith.constant 0.353553385 : f32
    %514 = vector.broadcast %cst_134 : f32 to vector<8x8xf32>
    %515 = arith.mulf %513, %514 : vector<8x8xf32>
    %cst_135 = arith.constant dense<0xFF800000> : vector<8xf32>
    %516 = vector.multi_reduction <maximumf>, %515, %cst_135 [1] : vector<8x8xf32> to vector<8xf32>
    %517 = vector.shape_cast %516 : vector<8xf32> to vector<8x1xf32>
    %518 = vector.broadcast %517 : vector<8x1xf32> to vector<8x8xf32>
    %519 = arith.subf %515, %518 : vector<8x8xf32>
    %520 = math.exp %519 : vector<8x8xf32>
    %cst_136 = arith.constant dense<0.000000e+00> : vector<8xf32>
    %521 = vector.multi_reduction <add>, %520, %cst_136 [1] : vector<8x8xf32> to vector<8xf32>
    %522 = vector.shape_cast %521 : vector<8xf32> to vector<8x1xf32>
    %523 = tpu.reciprocal %522 {approx = true} : vector<8x1xf32> -> vector<8x1xf32>
    %524 = vector.broadcast %523 : vector<8x1xf32> to vector<8x8xf32>
    %525 = arith.mulf %520, %524 : vector<8x8xf32>
    %cst_137 = arith.constant dense<0.000000e+00> : vector<8x8xf32>
    %526 = tpu.matmul %525, %512, %cst_137 {dimension_numbers = #tpu.dot_dimension_numbers<[1], [0], [0], [1], [0, 0, 1, 1], [], []>} : vector<8x8xf32>, vector<8x8xf32>, vector<8x8xf32> -> vector<8x8xf32>
    %527 = tpu.concatenate %475, %492, %509, %526 in 1 : vector<8x8xf32>, vector<8x8xf32>, vector<8x8xf32>, vector<8x8xf32> -> vector<8x32xf32>
    %cst_138 = arith.constant dense<0.000000e+00> : vector<8x32xf32>
    %528 = tpu.matmul %527, %385, %cst_138 {dimension_numbers = #tpu.dot_dimension_numbers<[1], [0], [0], [1], [0, 0, 1, 1], [], []>} : vector<8x32xf32>, vector<32x32xf32>, vector<8x32xf32> -> vector<8x32xf32>
    %529 = vector.broadcast %386 : vector<1x32xf32> to vector<8x32xf32>
    %530 = arith.addf %528, %529 : vector<8x32xf32>
    %531 = arith.addf %153, %458 : vector<8x32xf32>
    %532 = vector.extract_strided_slice %309 {offsets = [8, 0], sizes = [1, 32], strides = [1, 1]} : vector<16x32xf32> to vector<1x32xf32>
    %533 = vector.extract_strided_slice %309 {offsets = [9, 0], sizes = [1, 32], strides = [1, 1]} : vector<16x32xf32> to vector<1x32xf32>
    %534 = vector.extract_strided_slice %308 {offsets = [0, 128], sizes = [32, 32], strides = [1, 1]} : vector<32x256xf32> to vector<32x32xf32>
    %535 = vector.extract_strided_slice %309 {offsets = [10, 0], sizes = [1, 32], strides = [1, 1]} : vector<16x32xf32> to vector<1x32xf32>
    %536 = vector.extract_strided_slice %308 {offsets = [0, 160], sizes = [32, 32], strides = [1, 1]} : vector<32x256xf32> to vector<32x32xf32>
    %537 = vector.extract_strided_slice %309 {offsets = [11, 0], sizes = [1, 32], strides = [1, 1]} : vector<16x32xf32> to vector<1x32xf32>
    %cst_139 = arith.constant dense<0.000000e+00> : vector<8xf32>
    %538 = vector.multi_reduction <add>, %531, %cst_139 [1] : vector<8x32xf32> to vector<8xf32>
    %539 = vector.shape_cast %538 : vector<8xf32> to vector<8x1xf32>
    %cst_140 = arith.constant 3.200000e+01 : f32
    %540 = vector.broadcast %cst_140 : f32 to vector<8x1xf32>
    %541 = arith.divf %539, %540 : vector<8x1xf32>
    %542 = vector.broadcast %541 : vector<8x1xf32> to vector<8x32xf32>
    %543 = arith.subf %531, %542 : vector<8x32xf32>
    %544 = arith.mulf %543, %543 : vector<8x32xf32>
    %cst_141 = arith.constant dense<0.000000e+00> : vector<8xf32>
    %545 = vector.multi_reduction <add>, %544, %cst_141 [1] : vector<8x32xf32> to vector<8xf32>
    %546 = vector.shape_cast %545 : vector<8xf32> to vector<8x1xf32>
    %cst_142 = arith.constant 3.200000e+01 : f32
    %547 = vector.broadcast %cst_142 : f32 to vector<8x1xf32>
    %548 = arith.divf %546, %547 : vector<8x1xf32>
    %549 = vector.broadcast %541 : vector<8x1xf32> to vector<8x32xf32>
    %550 = arith.subf %531, %549 : vector<8x32xf32>
    %cst_143 = arith.constant 9.99999997E-7 : f32
    %551 = vector.broadcast %cst_143 : f32 to vector<8x1xf32>
    %552 = arith.addf %548, %551 : vector<8x1xf32>
    %553 = math.rsqrt %552 : vector<8x1xf32>
    %554 = vector.broadcast %553 : vector<8x1xf32> to vector<8x32xf32>
    %555 = arith.mulf %550, %554 : vector<8x32xf32>
    %556 = vector.broadcast %532 : vector<1x32xf32> to vector<8x32xf32>
    %557 = arith.mulf %555, %556 : vector<8x32xf32>
    %558 = vector.broadcast %533 : vector<1x32xf32> to vector<8x32xf32>
    %559 = arith.addf %557, %558 : vector<8x32xf32>
    %cst_144 = arith.constant dense<0.000000e+00> : vector<8x32xf32>
    %560 = tpu.matmul %559, %534, %cst_144 {dimension_numbers = #tpu.dot_dimension_numbers<[1], [0], [0], [1], [0, 0, 1, 1], [], []>} : vector<8x32xf32>, vector<32x32xf32>, vector<8x32xf32> -> vector<8x32xf32>
    %561 = vector.broadcast %535 : vector<1x32xf32> to vector<8x32xf32>
    %562 = arith.addf %560, %561 : vector<8x32xf32>
    %cst_145 = arith.constant 0.000000e+00 : f32
    %563 = vector.broadcast %cst_145 : f32 to vector<8x32xf32>
    %564 = arith.maximumf %562, %563 : vector<8x32xf32>
    %cst_146 = arith.constant dense<0.000000e+00> : vector<8x32xf32>
    %565 = tpu.matmul %564, %536, %cst_146 {dimension_numbers = #tpu.dot_dimension_numbers<[1], [0], [0], [1], [0, 0, 1, 1], [], []>} : vector<8x32xf32>, vector<32x32xf32>, vector<8x32xf32> -> vector<8x32xf32>
    %566 = arith.addf %531, %565 : vector<8x32xf32>
    %567 = vector.broadcast %537 : vector<1x32xf32> to vector<8x32xf32>
    %568 = arith.addf %566, %567 : vector<8x32xf32>
    %569 = arith.addf %307, %530 : vector<8x32xf32>
    %570 = vector.extract_strided_slice %309 {offsets = [12, 0], sizes = [1, 32], strides = [1, 1]} : vector<16x32xf32> to vector<1x32xf32>
    %571 = vector.extract_strided_slice %309 {offsets = [13, 0], sizes = [1, 32], strides = [1, 1]} : vector<16x32xf32> to vector<1x32xf32>
    %572 = vector.extract_strided_slice %308 {offsets = [0, 192], sizes = [32, 32], strides = [1, 1]} : vector<32x256xf32> to vector<32x32xf32>
    %573 = vector.extract_strided_slice %309 {offsets = [14, 0], sizes = [1, 32], strides = [1, 1]} : vector<16x32xf32> to vector<1x32xf32>
    %574 = vector.extract_strided_slice %308 {offsets = [0, 224], sizes = [32, 32], strides = [1, 1]} : vector<32x256xf32> to vector<32x32xf32>
    %575 = vector.extract_strided_slice %309 {offsets = [15, 0], sizes = [1, 32], strides = [1, 1]} : vector<16x32xf32> to vector<1x32xf32>
    %cst_147 = arith.constant dense<0.000000e+00> : vector<8xf32>
    %576 = vector.multi_reduction <add>, %569, %cst_147 [1] : vector<8x32xf32> to vector<8xf32>
    %577 = vector.shape_cast %576 : vector<8xf32> to vector<8x1xf32>
    %cst_148 = arith.constant 3.200000e+01 : f32
    %578 = vector.broadcast %cst_148 : f32 to vector<8x1xf32>
    %579 = arith.divf %577, %578 : vector<8x1xf32>
    %580 = vector.broadcast %579 : vector<8x1xf32> to vector<8x32xf32>
    %581 = arith.subf %569, %580 : vector<8x32xf32>
    %582 = arith.mulf %581, %581 : vector<8x32xf32>
    %cst_149 = arith.constant dense<0.000000e+00> : vector<8xf32>
    %583 = vector.multi_reduction <add>, %582, %cst_149 [1] : vector<8x32xf32> to vector<8xf32>
    %584 = vector.shape_cast %583 : vector<8xf32> to vector<8x1xf32>
    %cst_150 = arith.constant 3.200000e+01 : f32
    %585 = vector.broadcast %cst_150 : f32 to vector<8x1xf32>
    %586 = arith.divf %584, %585 : vector<8x1xf32>
    %587 = vector.broadcast %579 : vector<8x1xf32> to vector<8x32xf32>
    %588 = arith.subf %569, %587 : vector<8x32xf32>
    %cst_151 = arith.constant 9.99999997E-7 : f32
    %589 = vector.broadcast %cst_151 : f32 to vector<8x1xf32>
    %590 = arith.addf %586, %589 : vector<8x1xf32>
    %591 = math.rsqrt %590 : vector<8x1xf32>
    %592 = vector.broadcast %591 : vector<8x1xf32> to vector<8x32xf32>
    %593 = arith.mulf %588, %592 : vector<8x32xf32>
    %594 = vector.broadcast %570 : vector<1x32xf32> to vector<8x32xf32>
    %595 = arith.mulf %593, %594 : vector<8x32xf32>
    %596 = vector.broadcast %571 : vector<1x32xf32> to vector<8x32xf32>
    %597 = arith.addf %595, %596 : vector<8x32xf32>
    %cst_152 = arith.constant dense<0.000000e+00> : vector<8x32xf32>
    %598 = tpu.matmul %597, %572, %cst_152 {dimension_numbers = #tpu.dot_dimension_numbers<[1], [0], [0], [1], [0, 0, 1, 1], [], []>} : vector<8x32xf32>, vector<32x32xf32>, vector<8x32xf32> -> vector<8x32xf32>
    %599 = vector.broadcast %573 : vector<1x32xf32> to vector<8x32xf32>
    %600 = arith.addf %598, %599 : vector<8x32xf32>
    %cst_153 = arith.constant 0.000000e+00 : f32
    %601 = vector.broadcast %cst_153 : f32 to vector<8x32xf32>
    %602 = arith.maximumf %600, %601 : vector<8x32xf32>
    %cst_154 = arith.constant dense<0.000000e+00> : vector<8x32xf32>
    %603 = tpu.matmul %602, %574, %cst_154 {dimension_numbers = #tpu.dot_dimension_numbers<[1], [0], [0], [1], [0, 0, 1, 1], [], []>} : vector<8x32xf32>, vector<32x32xf32>, vector<8x32xf32> -> vector<8x32xf32>
    %604 = arith.addf %569, %603 : vector<8x32xf32>
    %605 = vector.broadcast %575 : vector<1x32xf32> to vector<8x32xf32>
    %606 = arith.addf %604, %605 : vector<8x32xf32>
    %c0_155 = arith.constant 0 : index
    %c0_156 = arith.constant 0 : index
    %c0_157 = arith.constant 0 : index
    %607 = vector.load %arg9[%c0_155, %c0_156, %c0_157] : memref<1x8x32xf32, #tpu.memory_space<vmem>>, vector<1x8x32xf32>
    %608 = vector.shape_cast %607 : vector<1x8x32xf32> to vector<8x32xf32>
    %609 = vector.shape_cast %568 : vector<8x32xf32> to vector<1x8x32xf32>
    tpu.vector_store %arg9[%c0_155, %c0_156, %c0_157], %609 {strides = array<i32>} : memref<1x8x32xf32, #tpu.memory_space<vmem>>, vector<1x8x32xf32>,
    %c0_158 = arith.constant 0 : index
    %c0_159 = arith.constant 0 : index
    %c0_160 = arith.constant 0 : index
    %610 = vector.load %arg10[%c0_158, %c0_159, %c0_160] : memref<1x8x32xf32, #tpu.memory_space<vmem>>, vector<1x8x32xf32>
    %611 = vector.shape_cast %610 : vector<1x8x32xf32> to vector<8x32xf32>
    %612 = vector.shape_cast %606 : vector<8x32xf32> to vector<1x8x32xf32>
    tpu.vector_store %arg10[%c0_158, %c0_159, %c0_160], %612 {strides = array<i32>} : memref<1x8x32xf32, #tpu.memory_space<vmem>>, vector<1x8x32xf32>,
    return
  }
  func.func @transform_0(%arg0: i32) -> (i32, i32, i32) {
    %c0_i32 = arith.constant 0 : i32
    %c0_i32_0 = arith.constant 0 : i32
    %c0_i32_1 = arith.constant 0 : i32
    return %arg0, %c0_i32, %c0_i32_0 : i32, i32, i32
  }
  func.func @transform_1(%arg0: i32) -> (i32, i32, i32) {
    %c0_i32 = arith.constant 0 : i32
    %c0_i32_0 = arith.constant 0 : i32
    %c0_i32_1 = arith.constant 0 : i32
    return %arg0, %c0_i32, %c0_i32_0 : i32, i32, i32
  }
  func.func @transform_2(%arg0: i32) -> (i32, i32) {
    %c0_i32 = arith.constant 0 : i32
    %c0_i32_0 = arith.constant 0 : i32
    %c0_i32_1 = arith.constant 0 : i32
    return %c0_i32, %c0_i32_0 : i32, i32
  }
  func.func @transform_3(%arg0: i32) -> (i32, i32) {
    %c0_i32 = arith.constant 0 : i32
    %c0_i32_0 = arith.constant 0 : i32
    %c0_i32_1 = arith.constant 0 : i32
    return %c0_i32, %c0_i32_0 : i32, i32
  }
  func.func @transform_4(%arg0: i32) -> (i32, i32) {
    %c0_i32 = arith.constant 0 : i32
    %c0_i32_0 = arith.constant 0 : i32
    %c0_i32_1 = arith.constant 0 : i32
    return %c0_i32, %c0_i32_0 : i32, i32
  }
  func.func @transform_5(%arg0: i32) -> (i32, i32) {
    %c0_i32 = arith.constant 0 : i32
    %c0_i32_0 = arith.constant 0 : i32
    %c0_i32_1 = arith.constant 0 : i32
    return %c0_i32, %c0_i32_0 : i32, i32
  }
  func.func @transform_6(%arg0: i32) -> (i32, i32) {
    %c0_i32 = arith.constant 0 : i32
    %c0_i32_0 = arith.constant 0 : i32
    %c0_i32_1 = arith.constant 0 : i32
    return %c0_i32, %c0_i32_0 : i32, i32
  }
  func.func @transform_7(%arg0: i32) -> (i32, i32) {
    %c0_i32 = arith.constant 0 : i32
    %c0_i32_0 = arith.constant 0 : i32
    %c0_i32_1 = arith.constant 0 : i32
    return %c0_i32, %c0_i32_0 : i32, i32
  }
  func.func @transform_8(%arg0: i32) -> (i32, i32, i32) {
    %c0_i32 = arith.constant 0 : i32
    %c0_i32_0 = arith.constant 0 : i32
    %c0_i32_1 = arith.constant 0 : i32
    return %arg0, %c0_i32, %c0_i32_0 : i32, i32, i32
  }
  func.func @transform_9(%arg0: i32) -> (i32, i32, i32) {
    %c0_i32 = arith.constant 0 : i32
    %c0_i32_0 = arith.constant 0 : i32
    %c0_i32_1 = arith.constant 0 : i32
    return %arg0, %c0_i32, %c0_i32_0 : i32, i32, i32
  }
}

</mosaic_0001>

<bundles_post_ra>
// kernel: tpu_custom_call.1
= control target key start
LH: loop header
LB: loop body
LE: loop exit
PB: predicated region body
PF: predicated region fallthrough
CT: control target
= control target key end

     0   :  { %s4114_s0 = inlined_call_operand.hbm [shape: f32[2,8,32], index: 0, kind: input, shape index: {}]   ;;  %s4115_s1 = inlined_call_operand.hbm [shape: f32[2,8,32], index: 1, kind: input, shape index: {}]   ;;  %s4116_s2 = inlined_call_operand.hbm [shape: f32[32,192], index: 2, kind: input, shape index: {}]   ;;  %s4117_s3 = inlined_call_operand.hbm [shape: f32[10,32], index: 3, kind: input, shape index: {}]   ;;  %s4118_s4 = inlined_call_operand.hbm [shape: f32[32,192], index: 4, kind: input, shape index: {}]   ;;  %s4119_s5 = inlined_call_operand.hbm [shape: f32[10,32], index: 5, kind: input, shape index: {}]   ;;  %s4120_s6 = inlined_call_operand.hbm [shape: f32[32,256], index: 6, kind: input, shape index: {}]   ;;  %s4121_s7 = inlined_call_operand.hbm [shape: f32[16,32], index: 7, kind: input, shape index: {}]   ;;  %s4122_s8 = inlined_call_operand.hbm [shape: f32[2,8,32], index: 8, kind: output, shape index: {0}]   ;;  %s4123_s9 = inlined_call_operand.hbm [shape: f32[2,8,32], index: 9, kind: output, shape index: {1}]  }
   0x1   :  { %4125 = sst [smem:[#allocation29_spill]] %s4116_s2 }
   0x2   :  { %4126 = sst [smem:[#allocation30_spill]] %s4117_s3 }
   0x3   :  { %4127 = sst [smem:[#allocation31_spill]] %s4118_s4 }
   0x4   :  { %4128 = sst [smem:[#allocation32_spill]] %s4119_s5 }
   0x5   :  { %4129 = sst [smem:[#allocation33_spill]] %s4120_s6 }
   0x6   :  { %4130 = sst [smem:[#allocation34_spill]] %s4121_s7 }
   0x7   :  { %15 = vsyncpa [#allocation3], 0 }
   0x8   :  { %17 = vsyncpa [#allocation3 + $0x1], 0 }
   0x9   :  { %18 = vsyncpa [#allocation6], 0 }
   0xa   :  { %20 = vsyncpa [#allocation6 + $0x1], 0 }
   0xb   :  { %21 = vsyncpa [#allocation9], 0 }
   0xc   :  { %22 = vsyncpa [#allocation12], 0 }
   0xd   :  { %23 = vsyncpa [#allocation15], 0 }
   0xe   :  { %24 = vsyncpa [#allocation4], 0 }
   0xf   :  { %26 = vsyncpa [#allocation4 + $0x1], 0 }
  0x10   :  { %27 = vsyncpa [#allocation18], 0 }
  0x11   :  { %29 = vsyncpa [#allocation18 + $0x1], 0  ;;  %s3462_s30 = smov 0   ;;  %s3464_s10 = smov 0  }
  0x12   :  { %s3466_s11 = smov 0   ;;  %s3468_s12 = smov 0  }
  0x13 LB: > { %4131 = sst [smem:[#allocation27_spill]] %s3380_s11  ;;  %s3486_s16 = sadd.s32 4294967295, %s3384_s12   ;;  %s3384_s12 = sphi %s3468_s12, %s4151_s12   ;;  %s3380_s11 = sphi %s3466_s11, %s4148_s11   ;;  %s3376_s10 = sphi %s3464_s10, %s4150_s10   ;;  %s3372_s30 = sphi %s3462_s30, %s4149_s30  }
  0x14   : > { %s4132_s2 = sld [smem:[#allocation29_spill]]  ;;  %p2634_p0 = scmp.ge.s32.totalorder %s3384_s12, 1 }
  0x15   : > { %p56_p1 = scmp.eq.s32.totalorder %s3486_s16, 0  ;;  %p270_p2 = scmp.lt.s32.totalorder %s3384_s12, 3 }
  0x16   : > { %s3386_s18 = smov [#allocation7]   ;;  %s4134_s3 = sld [smem:[#allocation30_spill]] }
  0x17   : > { %p3491_p3 = pnand %p2634_p0, %p270_p2  ;;  %s283_s19 = sshll.u32 %s3386_s18, 4  ;;  %s284_s19 = int_to_ptr.vmem [resolvable:$true] %s283_s19 }
  0x18   : > { %s3387_s24 = smov [#allocation8]   ;;  %s3388_s26 = smov 256  }
  0x19   : > { %p2759_p4 = pneg %p3491_p3  ;;  %s297_s25 = sshll.u32 %s3387_s24, 4  ;;  %s298_s25 = int_to_ptr.vmem [resolvable:$true] %s297_s25 }
  0x1a   : > { %s281_s15 = sshll.u32 %s4132_s2, 4  ;;  %s3389_s27 = smov 16   ;;  %s282_s15 = int_to_ptr.hbm [resolvable:$true] %s281_s15 }
  0x1b   : > { %p3503_p6 = pnand %p2759_p4, %p56_p1  ;;  %s3390_s28 = smov 128  }
  0x1c   : > { %s295_s22 = sshll.u32 %s4134_s3, 4  ;;  %s3391_s29 = smov 8   ;;  %s296_s22 = int_to_ptr.hbm [resolvable:$true] %s295_s22 }
  0x1d   : > { %2762 = dma.hbm_to_vmem [thread:$0]  (!%p3503_p6), %s282_s15, 1024, %s284_s19, [#allocation6], %s3388_s26, %s3388_s26, %s3389_s27  }
  0x1e   : > { %2765 = dma.hbm_to_vmem [thread:$0]  (!%p3503_p6), %s296_s22, 256, %s298_s25, [#allocation9], %s3390_s28, %s3390_s28, %s3391_s29  }
  0x1f   : > { %s4136_s5 = sld [smem:[#allocation32_spill]]  ;;  %s3392_s20 = smov [#allocation11]  }
  0x20   : > { %s325_s21 = sshll.u32 %s3392_s20, 4  ;;  %s4137_s4 = sld [smem:[#allocation31_spill]]  ;;  %s326_s21 = int_to_ptr.vmem [resolvable:$true] %s325_s21 }
  0x21   : > { %s3393_s15 = smov [#allocation10]   ;;  %s4138_s6 = sld [smem:[#allocation33_spill]] }
  0x22   : > { %s311_s19 = sshll.u32 %s3393_s15, 4  ;;  %s4139_s7 = sld [smem:[#allocation34_spill]]  ;;  %s312_s19 = int_to_ptr.vmem [resolvable:$true] %s311_s19 }
  0x23   : > { %s3394_s20 = smov [#allocation13]   ;;  %s3395_s24 = smov [#allocation14]  }
  0x24   : > { %s2633_s15 = sadd.s32 4294967294, %s3384_s12   ;;  %s42_s25 = sadd.s32 1, %s3380_s11 }
  0x25   : > { %s323_s18 = sshll.u32 %s4136_s5, 4  ;;  %p49_p8 = scmp.ne.s32.totalorder %s3380_s11, %s3376_s10  ;;  %s324_s18 = int_to_ptr.hbm [resolvable:$true] %s323_s18 }
  0x26   : > { %s309_s3 = sshll.u32 %s4137_s4, 4  ;;  %p50_p9 = scmp.eq.s32.totalorder %s3384_s12, 0  ;;  %s310_s3 = int_to_ptr.hbm [resolvable:$true] %s309_s3 }
  0x27   : > { %2771 = dma.hbm_to_vmem [thread:$0]  (!%p3503_p6), %s324_s18, 256, %s326_s21, [#allocation12], %s3390_s28, %s3390_s28, %s3391_s29  }
  0x28   : > { %s337_s13 = sshll.u32 %s4138_s6, 4  ;;  %s351_s18 = sshll.u32 %s4139_s7, 4  ;;  %s338_s13 = int_to_ptr.hbm [resolvable:$true] %s337_s13  ;;  %s352_s18 = int_to_ptr.hbm [resolvable:$true] %s351_s18 }
  0x29   : > { %2768 = dma.hbm_to_vmem [thread:$0]  (!%p3503_p6), %s310_s3, 1024, %s312_s19, [#allocation9], %s3388_s26, %s3388_s26, %s3389_s27  }
  0x2a   : > { %s339_s21 = sshll.u32 %s3394_s20, 4  ;;  %s353_s3 = sshll.u32 %s3395_s24, 4  ;;  %s340_s21 = int_to_ptr.vmem [resolvable:$true] %s339_s21  ;;  %s354_s3 = int_to_ptr.vmem [resolvable:$true] %s353_s3 }
  0x2b   : > { %2774 = dma.hbm_to_vmem [thread:$0]  (!%p3503_p6), %s338_s13, 1024, %s340_s21, [#allocation12], %s3388_s26, %s3388_s26, %s3389_s27  }
  0x2c   : > { %2777 = dma.hbm_to_vmem [thread:$0]  (!%p3503_p6), %s352_s18, 256, %s354_s3, [#allocation15], %s3390_s28, %s3390_s28, %s3391_s29  }
  0x2d   : > { %s3533_s19 = sadd.s32 1, %s3384_s12   ;;  %p55_p10 = scmp.ne.s32.totalorder %s3376_s10, %s3372_s30 }
  0x2e   : > { %s39_s22 = ssub.s32 %s3384_s12, %s3533_s19  ;;  %p3546_p11 = por %p50_p9, %p49_p8 }
  0x2f   : > { %p40_p7 = scmp.eq.s32.totalorder %s39_s22, 0  ;;  %p3552_p12 = por %p56_p1, %p55_p10 }
  0x30   : > { %p231_p13 = scmp.eq.s32.totalorder %s3486_s16, 1  ;;  %p237_p0 = scmp.eq.s32.totalorder %s2633_s15, 1 }
  0x31   : > { %s3544_s26 = scalar_select %p40_p7, %s3380_s11, %s42_s25  }
  0x32   : > { %p2798_p2 = scmp.lt.s32.totalorder %s3384_s12, 2  ;;  %s367_s28 = sand.u32 1, %s3380_s11  }
  0x33   : > { %4140 = sst [smem:[#allocation28_spill]] %s3544_s26  ;;  %p3559_p4 = por %p231_p13, %p49_p8 }
  0x34   : > { %p3563_p6 = por %p237_p0, %p55_p10  ;;  %s3567_s2 = sshll.u32 %s367_s28, 3 }
  0x35   : > { %s2643_s14 = sshll.u32 %s3384_s12, 3  ;;  %s371_s24 = scalar_lea.vmem [#allocation2], %s3567_s2 }
  0x36   : > { %s375_s21 = scalar_lea.hbm %s4114_s0, %s2643_s14  ;;  %s379_s3 = sshll.u32 %s371_s24, 4  ;;  %s380_s3 = int_to_ptr.vmem [resolvable:$true] %s379_s3 }
  0x37   : > { %s377_s15 = sshll.u32 %s375_s21, 4  ;;  %p3576_p7 = pnand %p2798_p2, %p3546_p11  ;;  %s378_s15 = int_to_ptr.hbm [resolvable:$true] %s377_s15 }
  0x38   : > { %s394_s5 = scalar_lea.hbm %s4115_s1, %s2643_s14  ;;  %s386_s6 = sand.u32 1, %s3384_s12  }
  0x39   : > { %s368_s7 = scalar_lea.sflag [#allocation3], %s367_s28  ;;  %s3206_s18 = sshra.s32 %s378_s15, 4  ;;  %s3207_s18 = int_to_ptr.hbm [resolvable:$true] %s3206_s18 }
  0x3a   : > { %s3208_s20 = scalar_lea.hbm %s3207_s18, 8  ;;  %p3210_p9 = pneg %p3576_p7 }
  0x3b   : > { %p3209_p8 = scmp.ne.s32.totalorder %s3207_s18, %s3208_s20  ;;  %s3213_s24 = scalar_lea.hbm %s4114_s0, 16 }
  0x3c   : > { %p3214_p13 = scmp.lt.s32.totalorder %s3207_s18, %s4114_s0  ;;  %p3215_p0 = scmp.lt.s32.totalorder %s3213_s24, %s3208_s20 }
  0x3d   : > { %p3211_p10 = pnand %p3210_p9, %p3209_p8 }
  0x3e   : > { %p3216_p2 = por %p3215_p0, %p3214_p13 }
  0x3f   : > { %p3212_p11 = pneg %p3211_p10 }
  0x41   : > { %p3217_p5 = pnand %p3216_p2, %p3212_p11 }
  0x43   : > { %3220 = shalt.err (!%p3217_p5)
}
  0x44   : > { %2781 = dma.hbm_to_vmem [thread:$0]  (!%p3576_p7), %s378_s15, 128, %s380_s3, %s368_s7  }
  0x45   : > { %s396_s28 = sshll.u32 %s394_s5, 4  ;;  %s390_s14 = scalar_lea.vmem [#allocation5], %s3567_s2  ;;  %s397_s28 = int_to_ptr.hbm [resolvable:$true] %s396_s28 }
  0x46   : > { %s398_s26 = sshll.u32 %s390_s14, 4  ;;  %s387_s27 = scalar_lea.sflag [#allocation6], %s386_s6  ;;  %s399_s26 = int_to_ptr.vmem [resolvable:$true] %s398_s26 }
  0x47   : > { %s3236_s21 = sshra.s32 %s397_s28, 4  ;;  %s3243_s24 = scalar_lea.hbm %s4115_s1, 16  ;;  %s3237_s21 = int_to_ptr.hbm [resolvable:$true] %s3236_s21 }
  0x48   : > { %s3238_s11 = scalar_lea.hbm %s3237_s21, 8  ;;  %p3244_p5 = scmp.lt.s32.totalorder %s3237_s21, %s4115_s1 }
  0x49   : > { %p3239_p8 = scmp.ne.s32.totalorder %s3237_s21, %s3238_s11  ;;  %p3245_p13 = scmp.lt.s32.totalorder %s3243_s24, %s3238_s11 }
  0x4b   : > { %p3241_p10 = pnand %p3239_p8, %p3210_p9  ;;  %p3246_p0 = por %p3245_p13, %p3244_p5 }
  0x4d   : > { %p3242_p11 = pneg %p3241_p10 }
  0x4f   : > { %p3247_p2 = pnand %p3246_p0, %p3242_p11 }
  0x51   : > { %3250 = shalt.err (!%p3247_p2)
}
  0x52   : > { %2784 = dma.hbm_to_vmem [thread:$0]  (!%p3576_p7), %s397_s28, 128, %s399_s26, %s387_s27  }
  0x53   : > { %407 = sbr.rel (%p3491_p3) target bundleno = 5865 (0x16e9), region = 52  ;;  %s3612_s5 = sand.u32 (!%p3491_p3), 1, %s3376_s10  }
  0x54   : > { %s3615_s6 = sshll.u32 (!%p3491_p3), %s3612_s5, 3  ;;  %s410_s2 = scalar_lea.sflag (!%p3491_p3), [#allocation3], %s3612_s5 }
  0x55   : > { %s413_s11 = scalar_lea.vmem (!%p3491_p3), [#allocation2], %s3615_s6 }
  0x58   : > { %3339 = dma.done.wait (%p3552_p12), %s410_s2, 128  }
  0x59   : > { %3341 = vsyncadd (%p3552_p12), %s410_s2, 4294967168  ;;  %s419_s17 = sand.u32 1, %s3486_s16   ;;  %s423_s3 = scalar_lea.vmem [#allocation5], %s3615_s6 }
  0x5a   : > { %s420_s26 = scalar_lea.sflag [#allocation6], %s419_s17 }
  0x5b   : > { %3343 = dma.done.wait (%p3552_p12), %s420_s26, 128  }
  0x5c   : > { %3345 = vsyncadd (%p3552_p12), %s420_s26, 4294967168 }
  0x5d   : > { %3347 = dma.done.wait (%p56_p1), [#allocation6], 1024  }
  0x5e   : > { %3349 = vsyncadd (%p56_p1), [#allocation6], 4294966272 }
  0x5f   : > { %3351 = dma.done.wait (%p56_p1), [#allocation9], 1280  }
  0x60   : > { %3353 = vsyncadd (%p56_p1), [#allocation9], 4294966016 }
  0x61   : > { %3355 = dma.done.wait (%p56_p1), [#allocation12], 1280  }
  0x62   : > { %3357 = vsyncadd (%p56_p1), [#allocation12], 4294966016 }
  0x63   : > { %3359 = dma.done.wait (%p56_p1), [#allocation15], 256  }
  0x64   : > { %3361 = vsyncadd (%p56_p1), [#allocation15], 4294967040  ;;  %vm510_vm0 = vcmask 261120   ;;  %v3645_v0 = vld [vmem:[%s413_s11] sm:$0xff]  ;;  %v3396_v2 = vmov 32.0   ;;  %v3654_v14 = vld [vmem:[#allocation7 + $0x30] sm:$0xff] }
  0x65   : > { %v511_v1 = vsel %vm510_vm0, %v3645_v0, 0.0  ;;  %2944 = vrcp.f32 %v3396_v2  ;;  %559 = vmatpush.msra.mxu0 %v3654_v14  ;;  %v3657_v15 = vld [vmem:[#allocation7 + $0x20] sm:$0xff]  ;;  %v3659_v16 = vld [vmem:[#allocation7 + $0x10] sm:$0xff]  ;;  %s3397_s23 = smov 32   ;;  %s3398_s15 = smov 80   ;;  %vm584_vm5 = vcmask 64512  }
  0x66   : > { %512 = vadd.xlane.f32.xlu0 %v511_v1  ;;  %v3661_v17 = vld [vmem:[#allocation7] sm:$0xff]  ;;  %v2864_v18 = vpack.i.bf16 %v3657_v15, %v3654_v14  ;;  %s3399_s22 = smov 88   ;;  %s3400_s25 = smov 96   ;;  %vm860_vm6 = vcmask 130048   ;;  %vm862_vm7 = vcmask 195584  }
  0x67   : > { %v2869_v19 = vpack.i.bf16 %v3661_v17, %v3659_v16  ;;  %560 = vmatpush.msra.mxu0 %v3657_v15  ;;  %v3670_v20 = vld [vmem:[#allocation8] sm:$0xff]  ;;  %s3401_s28 = smov 120   ;;  %s3402_s14 = smov 72  }
  0x68   : > { %v569_v21 = vperm.slane %v3670_v20, 3  ;;  %v540_v31 = vperm.slane %v3670_v20, 0  ;;  %v542_v34 = vperm.slane %v3670_v20, 1  ;;  %v567_v40 = vperm.slane %v3670_v20, 2  ;;  %s3403_s27 = smov 112   ;;  %s3404_s21 = smov 104  }
  0x69   : > { %561 = vmatpush.msra.mxu0 %v3659_v16  ;;  %v575_v61 = vperm.slane %v3670_v20, 4  ;;  %s3405_s18 = smov 64   ;;  %s3406_s20 = smov 56  }
  0x6a   : > { %571 = vrot.lane.b32.xlu1 %v569_v21, %s3397_s23  ;;  %s3407_s24 = smov 40   ;;  %s3408_s4 = smov 48  }
  0x6b   : > { %v2945_v3 = vpop.eup %2944  ;;  %562 = vmatpush.msra.mxu0 %v3661_v17  ;;  %s3409_s7 = smov 8   ;;  %s3410_s2 = smov 24  }
  0x6c   : > { %v515_v4 = vmul.f32 32.0, %v2945_v3  ;;  %vm519_vm1 = vweird.f32 %v2945_v3  ;;  %s3411_s11 = smov 16   ;;  %s491_s17 = scalar_lea.vmem [#allocation16], %s3615_s6 }
  0x6d   : > { %s2723_s26 = sshll.u32 %s3486_s16, 3  ;;  %s3286_s16 = scalar_lea.hbm %s4122_s8, 16 }
  0x6e   : > { %v516_v5 = vsub.f32 1.0, %v515_v4 }
  0x70   : > { %v517_v6 = vmul.f32 %v2945_v3, %v516_v5 }
  0x72   : > { %v518_v7 = vadd.f32 %v2945_v3, %v517_v6 }
  0x74   : > { %v3649_v8 = vsel %vm519_vm1, %v2945_v3, %v518_v7 }
  0xd9   : > { %v513_v9 = vpop.xlane.xlu0 %512 }
  0xda   : > { %v521_v10 = vmul.f32 %v3649_v8, %v513_v9 }
  0xdc   : > { %v522_v11 = vsub.f32 %v3645_v0, %v521_v10  ;;  %v572_v37 = vpop.permute.xlu1 %571 }
  0xde   : > { %v523_v12 = vmul.f32 %v522_v11, %v522_v11 }
  0xe0   : > { %v524_v13 = vsel %vm510_vm0, %v523_v12, 0.0 }
  0xe1   : > { %525 = vadd.xlane.f32.xlu0 %v524_v13 }
 0x154   : > { %v526_v22 = vpop.xlane.xlu0 %525 }
 0x155   : > { %v527_v23 = vmul.f32 %v526_v22, %v3649_v8 }
 0x157   : > { %v528_v24 = vadd.f32 1e-06, %v527_v23 }
 0x159   : > { %2946 = vrsqrt.f32 %v528_v24  ;;  %vm535_vm3 = vweird.f32 %v528_v24 }
 0x15f   : > { %v2947_v25 = vpop.eup %2946 }
 0x160   : > { %v530_v26 = vmul.f32 %v2947_v25, %v528_v24  ;;  %vm536_vm2 = vweird.f32 %v2947_v25 }
 0x161   : > { %vm537_vm4 = vmor %vm535_vm3, %vm536_vm2 }
 0x162   : > { %v531_v27 = vmul.f32 %v2947_v25, %v530_v26 }
 0x164   : > { %v532_v28 = vmul.f32 0.5, %v531_v27 }
 0x166   : > { %v533_v29 = vsub.f32 1.5, %v532_v28 }
 0x168   : > { %v534_v30 = vmul.f32 %v2947_v25, %v533_v29 }
 0x16a   : > { %v538_v32 = vsel %vm537_vm4, %v2947_v25, %v534_v30 }
 0x16b   : > { %v539_v33 = vmul.f32 %v538_v32, %v522_v11  ;;  %v3723_v32 = vld [vmem:[%s423_s3] sm:$0xff] }
 0x16d   : > { %v541_v35 = vmul.f32 %v540_v31, %v539_v33  ;;  %v1009_v33 = vsel %vm510_vm0, %v3723_v32, 0.0 }
 0x16f   : > { %v543_v36 = vadd.f32 %v542_v34, %v541_v35 }
 0x171   : > { %2657 = vmatmul.msk.f32.vlgmr.msra.gmra.mxu0 %vm510_vm0, %v543_v36 }
 0x1ee   : > { %v3678_v38 = vpop.f32.mrf.mxu0 }
 0x1ef   : > { %v574_v39 = vadd.f32 %v572_v37, %v3678_v38  ;;  %v568_v41 = vadd.f32 %v567_v40, %v3678_v38 }
 0x1f1   : > { %717 = vrot.lane.b32.xlu0 %v574_v39, %s3398_s15  ;;  %651 = vrot.lane.b32.xlu2 %v574_v39, %s3399_s22 }
 0x1f2   : > { %582 = vrot.lane.b32.xlu1 %v574_v39, %s3400_s25 }
 0x1f9   : > { %649 = vrot.lane.b32.xlu2 %v568_v41, %s3401_s28 }
 0x1fa   : > { %783 = vrot.lane.b32.xlu1 %v574_v39, %s3402_s14 }
 0x201   : > { %715 = vrot.lane.b32.xlu2 %v568_v41, %s3403_s27 }
 0x202   : > { %781 = vrot.lane.b32.xlu1 %v568_v41, %s3404_s21 }
 0x24b   : > { %v652_v42 = vpop.permute.xlu2 %651 }
 0x24c   : > { %2661 = vmatpush.xpose.msk.msra.mxu3 %vm584_vm5, %v652_v42 }
 0x253   : > { %v650_v43 = vpop.permute.xlu2 %649 }
 0x254   : > { %2662 = vmatmul.msk.f32.vlgmr.msra.gmra.mxu3 %vm584_vm5, %v650_v43 }
 0x25b   : > { %v716_v47 = vpop.permute.xlu2 %715 }
 0x263   : > { %v718_v44 = vpop.permute.xlu0 %717 }
 0x264   : > { %v583_v45 = vpop.permute.xlu1 %582 }
 0x265   : > { %2658 = vmatpush.xpose.msk.msra.mxu1 %vm584_vm5, %v583_v45 }
 0x268   : > { %2659 = vmatmul.msk.f32.vlgmr.msra.gmra.mxu1 %vm584_vm5, %v568_v41 }
 0x269   : > { %2664 = vmatpush.xpose.msk.msrb.mxu1 %vm584_vm5, %v718_v44 }
 0x26c   : > { %v784_v46 = vpop.permute.xlu1 %783 }
 0x26d   : > { %2667 = vmatpush.xpose.msk.msrb.mxu0 %vm584_vm5, %v784_v46 }
 0x270   : > { %2665 = vmatmul.msk.f32.vlgmr.msrb.gmra.mxu1 %vm584_vm5, %v716_v47 }
 0x274   : > { %v782_v48 = vpop.permute.xlu1 %781 }
 0x275   : > { %2668 = vmatmul.msk.f32.vlgmr.msrb.gmra.mxu0 %vm584_vm5, %v782_v48 }
 0x2d7   : > { %v674_v49 = vpop.f32.mrf.mxu3 }
 0x2d8   : > { %v677_v50 = vmul.f32 0.35355338, %v674_v49 }
 0x2da   : > { %v678_v51 = vsel %vm584_vm5, %v677_v50, -inf }
 0x2db   : > { %679 = vmax.xlane.f32.xlu1 %v678_v51 }
 0x2e5   : > { %v607_v52 = vpop.f32.mrf.mxu1 }
 0x2e6   : > { %v610_v53 = vmul.f32 0.35355338, %v607_v52 }
 0x2e8   : > { %v611_v54 = vsel %vm584_vm5, %v610_v53, -inf }
 0x2e9   : > { %612 = vmax.xlane.f32.xlu2 %v611_v54 }
 0x2ed   : > { %v740_v55 = vpop.f32.mrf.mxu1 }
 0x2ee   : > { %v743_v56 = vmul.f32 0.35355338, %v740_v55 }
 0x2f0   : > { %v744_v57 = vsel %vm584_vm5, %v743_v56, -inf }
 0x2f1   : > { %745 = vmax.xlane.f32.xlu0 %v744_v57 }
 0x2f2   : > { %v806_v58 = vpop.f32.mrf.mxu0 }
 0x2f3   : > { %v809_v59 = vmul.f32 0.35355338, %v806_v58 }
 0x2f5   : > { %v810_v60 = vsel %vm584_vm5, %v809_v59, -inf }
 0x2f6   : > { %811 = vmax.xlane.f32.xlu2 %v810_v60 }
 0x30e   : > { %577 = vrot.lane.b32.xlu2 %v575_v61, %s3405_s18 }
 0x34e   : > { %v680_v4 = vpop.xlane.xlu1 %679 }
 0x34f   : > { %v681_v7 = vsub.f32 %v677_v50, %v680_v4 }
 0x351   : > { %v682_v10 = vmul.f32 1.442695, %v681_v7 }
 0x35c   : > { %v613_v62 = vpop.xlane.xlu2 %612 }
 0x35d   : > { %v614_v63 = vsub.f32 %v610_v53, %v613_v62  ;;  %v3741_v62 = vld [vmem:[#allocation10 + $0x30] sm:$0xff] }
 0x35f   : > { %v615_v1 = vmul.f32 1.442695, %v614_v63  ;;  %v3743_v63 = vld [vmem:[#allocation10 + $0x20] sm:$0xff] }
 0x361   : > { %2948 = vpow2.f32 %v615_v1  ;;  %v2884_v1 = vpack.i.bf16 %v3743_v63, %v3741_v62 }
 0x364   : > { %v746_v11 = vpop.xlane.xlu0 %745 }
 0x365   : > { %v747_v22 = vsub.f32 %v743_v56, %v746_v11 }
 0x367   : > { %v2949_v2 = vpop.eup %2948  ;;  %v748_v24 = vmul.f32 1.442695, %v747_v22 }
 0x368   : > { %v617_v3 = vsel %vm584_vm5, %v2949_v2, 0.0 }
 0x369   : > { %618 = vadd.xlane.f32.xlu1 %v617_v3  ;;  %v812_v5 = vpop.xlane.xlu2 %811  ;;  %v3750_v3 = vld [vmem:[#allocation10] sm:$0xff] }
 0x36a   : > { %v813_v6 = vsub.f32 %v809_v59, %v812_v5 }
 0x36c   : > { %v814_v9 = vmul.f32 1.442695, %v813_v6 }
 0x36e   : > { %2950 = vpow2.f32 %v814_v9 }
 0x36f   : > { %2952 = vpow2.f32 %v682_v10 }
 0x370   : > { %2954 = vpow2.f32 %v748_v24 }
 0x371   : > { %v578_v12 = vpop.permute.xlu2 %577 }
 0x372   : > { %v580_v13 = vadd.f32 %v578_v12, %v3678_v38 }
 0x374   : > { %v2951_v21 = vpop.eup %2950  ;;  %689 = vrot.lane.b32.xlu2 %v580_v13, %s3406_s20 }
 0x375   : > { %v816_v23 = vsel %vm584_vm5, %v2951_v21, 0.0  ;;  %v2953_v25 = vpop.eup %2952 }
 0x376   : > { %817 = vadd.xlane.f32.xlu0 %v816_v23  ;;  %v684_v26 = vsel %vm584_vm5, %v2953_v25, 0.0  ;;  %v2955_v27 = vpop.eup %2954 }
 0x377   : > { %v750_v28 = vsel %vm584_vm5, %v2955_v27, 0.0 }
 0x37c   : > { %821 = vrot.lane.b32.xlu2 %v580_v13, %s3407_s24 }
 0x37e   : > { %685 = vadd.xlane.f32.xlu0 %v684_v26 }
 0x382   : > { %623 = vrot.lane.b32.xlu1 %v580_v13, %s3405_s18 }
 0x386   : > { %751 = vadd.xlane.f32.xlu0 %v750_v28 }
 0x38a   : > { %2865 = vrot.lane.b32.xlu1 %v2864_v18, %s3397_s23 }
 0x392   : > { %2870 = vrot.lane.b32.xlu1 %v2869_v19, %s3397_s23 }
 0x39a   : > { %755 = vrot.lane.b32.xlu0 %v580_v13, %s3408_s4  ;;  %v3758_v13 = vld [vmem:[#allocation11] sm:$0xff] }
 0x39b   : > { %v1031_v23 = vperm.slane %v3758_v13, 0  ;;  %v1033_v26 = vperm.slane %v3758_v13, 1 }
 0x3bc   : > { %1010 = vadd.xlane.f32.xlu1 %v1009_v33 }
 0x3ce   : > { %v690_v31 = vpop.permute.xlu2 %689 }
 0x3d6   : > { %v822_v17 = vpop.permute.xlu2 %821 }
 0x3dc   : > { %v619_v29 = vpop.xlane.xlu1 %618 }
 0x3dd   : > { %2956 = vrcp.f32 %v619_v29  ;;  %v864_v29 = vperm.slane %v3670_v20, 5 }
 0x3e3   : > { %v2957_v14 = vpop.eup %2956 }
 0x3e4   : > { %v621_v16 = vmul.f32 %v2957_v14, %v2949_v2  ;;  %v3748_v2 = vld [vmem:[#allocation10 + $0x10] sm:$0xff] }
 0x3e5   : > { %v2889_v4 = vpack.i.bf16 %v3750_v3, %v3748_v2 }
 0x3e9   : > { %v818_v30 = vpop.xlane.xlu0 %817 }
 0x3f1   : > { %v686_v15 = vpop.xlane.xlu0 %685 }
 0x3f2   : > { %2958 = vrcp.f32 %v686_v15  ;;  %v1060_v15 = vperm.slane %v3758_v13, 3 }
 0x3f3   : > { %2960 = vrcp.f32 %v818_v30 }
 0x3f4   : > { %v624_v18 = vpop.permute.xlu1 %623 }
 0x3f5   : > { %644 = vmatpush.msra.mxu2 %v624_v18  ;;  %v505_v18 = vld [vmem:[#allocation7 + $0x28] sm:$0xff] }
 0x3f6   : > { %2660 = vmatmul.msk.f32.vlgmr.msra.gmra.mxu2 %vm584_vm5, %v621_v16  ;;  %v507_v16 = vld [vmem:[#allocation7 + $0x38] sm:$0xff] }
 0x3f7   : > { %710 = vmatpush.msrb.mxu2 %v690_v31 }
 0x3f8   : > { %v2959_v19 = vpop.eup %2958 }
 0x3f9   : > { %842 = vmatpush.msra.mxu2 %v822_v17  ;;  %v688_v34 = vmul.f32 %v2959_v19, %v2953_v25  ;;  %v752_v35 = vpop.xlane.xlu0 %751  ;;  %v2961_v36 = vpop.eup %2960  ;;  %v2874_v17 = vpack.i.bf16 %v505_v18, %v507_v16  ;;  %v503_v19 = vld [vmem:[#allocation7 + $0x18] sm:$0xff] }
 0x3fa   : > { %2962 = vrcp.f32 %v752_v35  ;;  %v820_v37 = vmul.f32 %v2961_v36, %v2951_v21 }
 0x3fc   : > { %v2866_v41 = vpop.permute.xlu1 %2865 }
 0x3fd   : > { %v2868_v42 = vunpack.i.h.bf16 %v2866_v41  ;;  %v2867_v43 = vunpack.i.l.bf16 %v2866_v41 }
 0x3fe   : > { %2663 = vmatmul.msk.f32.vlgmr.msrb.gmra.mxu2 %vm584_vm5, %v688_v34  ;;  %v501_v34 = vld [vmem:[#allocation7 + $0x8] sm:$0xff] }
 0x3ff   : > { %896 = vmatpush.msra.mxu1 %v2867_v43  ;;  %1050 = vmatpush.msrb.mxu2 %v3741_v62 }
 0x400   : > { %v2963_v38 = vpop.eup %2962 }
 0x401   : > { %v754_v40 = vmul.f32 %v2963_v38, %v2955_v27  ;;  %897 = vmatpush.msra.mxu1 %v2868_v42  ;;  %1051 = vmatpush.msrb.mxu2 %v3743_v63  ;;  %v1058_v42 = vperm.slane %v3758_v13, 2 }
 0x403   : > { %1052 = vmatpush.msrb.mxu2 %v3748_v2 }
 0x404   : > { %v2871_v45 = vpop.permute.xlu1 %2870 }
 0x405   : > { %v2873_v46 = vunpack.i.h.bf16 %v2871_v45  ;;  %v2872_v47 = vunpack.i.l.bf16 %v2871_v45  ;;  %1053 = vmatpush.msrb.mxu2 %v3750_v3 }
 0x406   : > { %2669 = vmatmul.msk.f32.vlgmr.msra.gmra.mxu2 %vm584_vm5, %v820_v37 }
 0x407   : > { %898 = vmatpush.msra.mxu1 %v2872_v47 }
 0x409   : > { %899 = vmatpush.msra.mxu1 %v2873_v46 }
 0x40c   : > { %v756_v39 = vpop.permute.xlu0 %755 }
 0x40d   : > { %776 = vmatpush.msrb.mxu3 %v756_v39 }
 0x40e   : > { %2666 = vmatmul.msk.f32.vlgmr.msrb.gmra.mxu3 %vm584_vm5, %v754_v40 }
 0x40f   : > { %947 = vmatpush.msra.mxu3 %v507_v16 }
 0x411   : > { %948 = vmatpush.msra.mxu3 %v505_v18 }
 0x413   : > { %949 = vmatpush.msra.mxu3 %v503_v19 }
 0x415   : > { %950 = vmatpush.msra.mxu3 %v501_v34 }
 0x42f   : > { %v1011_v51 = vpop.xlane.xlu1 %1010 }
 0x430   : > { %v1012_v52 = vmul.f32 %v1011_v51, %v3649_v8 }
 0x432   : > { %v1013_v53 = vsub.f32 %v3723_v32, %v1012_v52 }
 0x434   : > { %v1014_v54 = vmul.f32 %v1013_v53, %v1013_v53 }
 0x436   : > { %v1015_v55 = vsel %vm510_vm0, %v1014_v54, 0.0 }
 0x479   : > { %v646_v44 = vpop.f32.mrf.mxu2 }
 0x481   : > { %v712_v48 = vpop.f32.mrf.mxu2 }
 0x482   : > { %848 = vrot.lane.b32.xlu2 %v712_v48, %s3409_s7 }
 0x489   : > { %v844_v49 = vpop.f32.mrf.mxu2 }
 0x48a   : > { %856 = vrot.lane.b32.xlu0 %v844_v49, %s3410_s2 }
 0x491   : > { %v778_v50 = vpop.f32.mrf.mxu3 }
 0x492   : > { %852 = vrot.lane.b32.xlu2 %v778_v50, %s3411_s11 }
 0x4b4   : > { %1016 = vadd.xlane.f32.xlu0 %v1015_v55 }
 0x4c8   : > { %2875 = vrot.lane.b32.xlu0 %v2874_v17, %s3400_s25 }
 0x4dc   : > { %v849_v56 = vpop.permute.xlu2 %848 }
 0x4dd   : > { %v859_v58 = vsel %vm584_vm5, %v646_v44, %v849_v56  ;;  %v2879_v44 = vpack.i.bf16 %v501_v34, %v503_v19 }
 0x4ec   : > { %v853_v57 = vpop.permute.xlu2 %852 }
 0x4ed   : > { %v861_v59 = vsel %vm860_vm6, %v859_v58, %v853_v57 }
 0x4fc   : > { %v857_v60 = vpop.permute.xlu0 %856 }
 0x4fd   : > { %v863_v61 = vsel %vm862_vm7, %v861_v59, %v857_v60  ;;  %v927_v59 = vperm.slane %v3670_v20, 6 }
 0x4fe   : > { %2670 = vmatmul.msk.f32.vlgmr.msra.gmra.mxu1 %vm510_vm0, %v863_v61 }
 0x527   : > { %v1017_v5 = vpop.xlane.xlu0 %1016 }
 0x528   : > { %v1018_v6 = vmul.f32 %v1017_v5, %v3649_v8  ;;  %v929_v5 = vperm.slane %v3670_v20, 7 }
 0x52a   : > { %v1019_v7 = vadd.f32 1e-06, %v1018_v6 }
 0x52c   : > { %2964 = vrsqrt.f32 %v1019_v7  ;;  %vm1026_vm8 = vweird.f32 %v1019_v7 }
 0x532   : > { %v2965_v9 = vpop.eup %2964 }
 0x533   : > { %v1021_v10 = vmul.f32 %v2965_v9, %v1019_v7  ;;  %vm1027_vm9 = vweird.f32 %v2965_v9 }
 0x534   : > { %vm1028_vm10 = vmor %vm1026_vm8, %vm1027_vm9 }
 0x535   : > { %v1022_v11 = vmul.f32 %v2965_v9, %v1021_v10 }
 0x537   : > { %v1023_v12 = vmul.f32 0.5, %v1022_v11 }
 0x539   : > { %v1024_v21 = vsub.f32 1.5, %v1023_v12 }
 0x53a   : > { %v2876_v45 = vpop.permute.xlu0 %2875 }
 0x53b   : > { %v1025_v22 = vmul.f32 %v2965_v9, %v1024_v21  ;;  %v2878_v46 = vunpack.i.h.bf16 %v2876_v45  ;;  %v2877_v47 = vunpack.i.l.bf16 %v2876_v45 }
 0x53d   : > { %v1029_v24 = vsel %vm1028_vm10, %v2965_v9, %v1025_v22  ;;  %987 = vmatpush.msra.mxu0 %v2877_v47 }
 0x53e   : > { %v1030_v25 = vmul.f32 %v1029_v24, %v1013_v53 }
 0x53f   : > { %988 = vmatpush.msra.mxu0 %v2878_v46 }
 0x540   : > { %v1032_v27 = vmul.f32 %v1031_v23, %v1030_v25  ;;  %v3798_v25 = vld [vmem:[#allocation8 + $0x8] sm:$0x3] }
 0x542   : > { %v1034_v28 = vadd.f32 %v1033_v26, %v1032_v27  ;;  %v931_v26 = vperm.slane %v3798_v25, 0 }
 0x544   : > { %2673 = vmatmul.msk.f32.vlgmr.msrb.gmra.mxu2 %vm510_vm0, %v1034_v28 }
 0x57b   : > { %v901_v30 = vpop.f32.mrf.mxu1 }
 0x57c   : > { %v902_v31 = vadd.f32 %v901_v30, %v864_v29 }
 0x57e   : > { %v3765_v33 = vadd.f32 %v902_v31, %v3645_v0 }
 0x580   : > { %v905_v14 = vsel %vm510_vm0, %v3765_v33, 0.0 }
 0x581   : > { %906 = vadd.xlane.f32.xlu2 %v905_v14 }
 0x599   : > { %1062 = vrot.lane.b32.xlu2 %v1060_v15, %s3397_s23 }
 0x5c7   : > { %v3774_v38 = vpop.f32.mrf.mxu2 }
 0x5c8   : > { %v1059_v43 = vadd.f32 %v1058_v42, %v3774_v38 }
 0x5f4   : > { %v907_v0 = vpop.xlane.xlu2 %906 }
 0x5f5   : > { %v908_v35 = vmul.f32 %v907_v0, %v3649_v8 }
 0x5f7   : > { %v909_v36 = vsub.f32 %v3765_v33, %v908_v35 }
 0x5f9   : > { %v910_v37 = vmul.f32 %v909_v36, %v909_v36 }
 0x5fb   : > { %v911_v39 = vsel %vm510_vm0, %v910_v37, 0.0 }
 0x5fc   : > { %912 = vadd.xlane.f32.xlu1 %v911_v39  ;;  %v1063_v40 = vpop.permute.xlu2 %1062 }
 0x5fd   : > { %v1065_v41 = vadd.f32 %v1063_v40, %v3774_v38 }
 0x5ff   : > { %1073 = vrot.lane.b32.xlu0 %v1065_v41, %s3400_s25  ;;  %1141 = vrot.lane.b32.xlu2 %v1065_v41, %s3399_s22 }
 0x607   : > { %1207 = vrot.lane.b32.xlu0 %v1065_v41, %s3398_s15  ;;  %1273 = vrot.lane.b32.xlu2 %v1065_v41, %s3402_s14 }
 0x60f   : > { %1271 = vrot.lane.b32.xlu0 %v1059_v43, %s3404_s21 }
 0x615   : > { %2880 = vrot.lane.b32.xlu1 %v2879_v44, %s3400_s25 }
 0x61d   : > { %1139 = vrot.lane.b32.xlu1 %v1059_v43, %s3401_s28 }
 0x625   : > { %1205 = vrot.lane.b32.xlu1 %v1059_v43, %s3403_s27 }
 0x659   : > { %v1142_v12 = vpop.permute.xlu2 %1141 }
 0x661   : > { %v1274_v30 = vpop.permute.xlu2 %1273 }
 0x66f   : > { %v913_v48 = vpop.xlane.xlu1 %912 }
 0x670   : > { %v914_v49 = vmul.f32 %v913_v48, %v3649_v8  ;;  %v1066_v48 = vperm.slane %v3758_v13, 4 }
 0x671   : > { %v1074_v50 = vpop.permute.xlu0 %1073 }
 0x672   : > { %v915_v51 = vadd.f32 1e-06, %v914_v49  ;;  %2674 = vmatpush.xpose.msk.msrb.mxu1 %vm584_vm5, %v1074_v50 }
 0x674   : > { %2966 = vrsqrt.f32 %v915_v51  ;;  %vm922_vm12 = vweird.f32 %v915_v51 }
 0x675   : > { %2675 = vmatmul.msk.f32.vlgmr.msrb.gmra.mxu1 %vm584_vm5, %v1059_v43 }
 0x679   : > { %v1208_v52 = vpop.permute.xlu0 %1207 }
 0x67a   : > { %v2967_v53 = vpop.eup %2966  ;;  %2680 = vmatpush.xpose.msk.msra.mxu1 %vm584_vm5, %v1208_v52 }
 0x67b   : > { %v917_v54 = vmul.f32 %v2967_v53, %v915_v51  ;;  %vm923_vm11 = vweird.f32 %v2967_v53 }
 0x67c   : > { %vm924_vm13 = vmor %vm922_vm12, %vm923_vm11 }
 0x67d   : > { %v918_v55 = vmul.f32 %v2967_v53, %v917_v54 }
 0x67f   : > { %v919_v56 = vmul.f32 0.5, %v918_v55 }
 0x681   : > { %v920_v57 = vsub.f32 1.5, %v919_v56  ;;  %v1272_v18 = vpop.permute.xlu0 %1271 }
 0x683   : > { %v921_v58 = vmul.f32 %v2967_v53, %v920_v57 }
 0x685   : > { %v925_v60 = vsel %vm924_vm13, %v2967_v53, %v921_v58 }
 0x686   : > { %v926_v61 = vmul.f32 %v925_v60, %v909_v36 }
 0x687   : > { %v2881_v6 = vpop.permute.xlu1 %2880 }
 0x688   : > { %v928_v7 = vmul.f32 %v927_v59, %v926_v61  ;;  %v2883_v9 = vunpack.i.h.bf16 %v2881_v6  ;;  %v2882_v10 = vunpack.i.l.bf16 %v2881_v6 }
 0x68a   : > { %989 = vmatpush.msra.mxu0 %v2882_v10  ;;  %v930_v11 = vadd.f32 %v929_v5, %v928_v7 }
 0x68c   : > { %2671 = vmatmul.msk.f32.vlgmr.msra.gmra.mxu3 %vm510_vm0, %v930_v11  ;;  %990 = vmatpush.msra.mxu0 %v2883_v9 }
 0x68e   : > { %2677 = vmatpush.xpose.msk.msrb.mxu0 %vm584_vm5, %v1142_v12 }
 0x68f   : > { %v1140_v21 = vpop.permute.xlu1 %1139 }
 0x697   : > { %v1206_v22 = vpop.permute.xlu1 %1205 }
 0x698   : > { %2681 = vmatmul.msk.f32.vlgmr.msra.gmra.mxu1 %vm584_vm5, %v1206_v22  ;;  %v1006_v22 = vld [vmem:[#allocation10 + $0x38] sm:$0xff] }
 0x6f2   : > { %v1097_v23 = vpop.f32.mrf.mxu1 }
 0x6f3   : > { %v1100_v24 = vmul.f32 0.35355338, %v1097_v23  ;;  %v1004_v23 = vld [vmem:[#allocation10 + $0x28] sm:$0xff] }
 0x6f5   : > { %v1101_v20 = vsel %vm584_vm5, %v1100_v24, -inf }
 0x6f6   : > { %1102 = vmax.xlane.f32.xlu2 %v1101_v20  ;;  %v1000_v20 = vld [vmem:[#allocation10 + $0x8] sm:$0xff] }
 0x70f   : > { %v952_v27 = vpop.f32.mrf.mxu3 }
 0x710   : > { %v953_v28 = vadd.f32 %v952_v27, %v931_v26 }
 0x712   : > { %v955_v29 = vmax.f32 %v953_v28, 0.0 }
 0x714   : > { %2672 = vmatmul.msk.f32.vlgmr.msra.gmra.mxu0 %vm510_vm0, %v955_v29  ;;  %v2894_v29 = vpack.i.bf16 %v1004_v23, %v1006_v22 }
 0x715   : > { %2683 = vmatpush.xpose.msk.msra.mxu0 %vm584_vm5, %v1274_v30  ;;  %v1230_v31 = vpop.f32.mrf.mxu1 }
 0x716   : > { %v1233_v14 = vmul.f32 0.35355338, %v1230_v31 }
 0x718   : > { %v1234_v15 = vsel %vm584_vm5, %v1233_v14, -inf }
 0x719   : > { %1235 = vmax.xlane.f32.xlu0 %v1234_v15  ;;  %v996_v15 = vperm.slane %v3798_v25, 1 }
 0x71c   : > { %2678 = vmatmul.msk.f32.vlgmr.msrb.gmra.mxu0 %vm584_vm5, %v1140_v21 }
 0x724   : > { %2684 = vmatmul.msk.f32.vlgmr.msra.gmra.mxu0 %vm584_vm5, %v1272_v18 }
 0x769   : > { %v1103_v16 = vpop.xlane.xlu2 %1102 }
 0x76a   : > { %v1104_v17 = vsub.f32 %v1100_v24, %v1103_v16  ;;  %v1002_v24 = vld [vmem:[#allocation10 + $0x18] sm:$0xff] }
 0x76b   : > { %v2899_v31 = vpack.i.bf16 %v1000_v20, %v1002_v24 }
 0x76c   : > { %v1105_v19 = vmul.f32 1.442695, %v1104_v17 }
 0x76e   : > { %2968 = vpow2.f32 %v1105_v19 }
 0x774   : > { %v2969_v34 = vpop.eup %2968 }
 0x775   : > { %v1107_v0 = vsel %vm584_vm5, %v2969_v34, 0.0 }
 0x776   : > { %1108 = vadd.xlane.f32.xlu0 %v1107_v0 }
 0x78c   : > { %v1236_v35 = vpop.xlane.xlu0 %1235 }
 0x78d   : > { %v1237_v36 = vsub.f32 %v1233_v14, %v1236_v35 }
 0x78f   : > { %v1238_v37 = vmul.f32 1.442695, %v1237_v36 }
 0x791   : > { %2970 = vpow2.f32 %v1238_v37  ;;  %v3807_v39 = vpop.f32.mrf.mxu0 }
 0x792   : > { %v995_v14 = vadd.f32 %v3807_v39, %v3765_v33 }
 0x794   : > { %v3841_v18 = vadd.f32 %v996_v15, %v995_v14  ;;  %v1417_v15 = vperm.slane %v3758_v13, 7 }
 0x796   : > { %v1496_v16 = vsel %vm510_vm0, %v3841_v18, 0.0 }
 0x797   : > { %v2971_v40 = vpop.eup %2970 }
 0x798   : > { %v1240_v41 = vsel %vm584_vm5, %v2971_v40, 0.0 }
 0x799   : > { %v1164_v42 = vpop.f32.mrf.mxu0  ;;  %1241 = vadd.xlane.f32.xlu0 %v1240_v41 }
 0x79a   : > { %v1167_v43 = vmul.f32 0.35355338, %v1164_v42 }
 0x79c   : > { %v1168_v44 = vsel %vm584_vm5, %v1167_v43, -inf }
 0x79d   : > { %1169 = vmax.xlane.f32.xlu1 %v1168_v44 }
 0x7a1   : > { %v1296_v45 = vpop.f32.mrf.mxu0 }
 0x7a2   : > { %v1299_v46 = vmul.f32 0.35355338, %v1296_v45 }
 0x7a4   : > { %v1300_v47 = vsel %vm584_vm5, %v1299_v46, -inf }
 0x7a5   : > { %1301 = vmax.xlane.f32.xlu2 %v1300_v47 }
 0x7b6   : > { %1068 = vrot.lane.b32.xlu1 %v1066_v48, %s3405_s18  ;;  %v1352_v48 = vperm.slane %v3758_v13, 5 }
 0x7e9   : > { %v1109_v61 = vpop.xlane.xlu0 %1108 }
 0x80c   : > { %v1242_v5 = vpop.xlane.xlu0 %1241 }
 0x810   : > { %v1170_v49 = vpop.xlane.xlu1 %1169 }
 0x811   : > { %v1171_v50 = vsub.f32 %v1167_v43, %v1170_v49 }
 0x813   : > { %v1172_v51 = vmul.f32 1.442695, %v1171_v50 }
 0x815   : > { %2972 = vpow2.f32 %v1172_v51 }
 0x818   : > { %v1302_v52 = vpop.xlane.xlu2 %1301 }
 0x819   : > { %v1303_v53 = vsub.f32 %v1299_v46, %v1302_v52 }
 0x81b   : > { %v2973_v54 = vpop.eup %2972  ;;  %v1304_v55 = vmul.f32 1.442695, %v1303_v53 }
 0x81c   : > { %v1174_v56 = vsel %vm584_vm5, %v2973_v54, 0.0 }
 0x81d   : > { %2974 = vpow2.f32 %v1304_v55  ;;  %1175 = vadd.xlane.f32.xlu2 %v1174_v56 }
 0x81e   : > { %2976 = vrcp.f32 %v1109_v61 }
 0x823   : > { %v2975_v57 = vpop.eup %2974 }
 0x824   : > { %v1306_v58 = vsel %vm584_vm5, %v2975_v57, 0.0  ;;  %v2977_v6 = vpop.eup %2976 }
 0x825   : > { %1307 = vadd.xlane.f32.xlu0 %v1306_v58  ;;  %v1111_v7 = vmul.f32 %v2977_v6, %v2969_v34  ;;  %v3864_v6 = vld [vmem:[#allocation13 + $0x20] sm:$0xff] }
 0x828   : > { %v1069_v59 = vpop.permute.xlu1 %1068 }
 0x829   : > { %v1071_v60 = vadd.f32 %v1069_v59, %v3774_v38 }
 0x82b   : > { %1179 = vrot.lane.b32.xlu1 %v1071_v60, %s3406_s20 }
 0x833   : > { %1311 = vrot.lane.b32.xlu1 %v1071_v60, %s3407_s24 }
 0x835   : > { %1113 = vrot.lane.b32.xlu2 %v1071_v60, %s3405_s18 }
 0x839   : > { %1245 = vrot.lane.b32.xlu0 %v1071_v60, %s3408_s4 }
 0x83d   : > { %2885 = vrot.lane.b32.xlu2 %v2884_v1, %s3397_s23 }
 0x845   : > { %2890 = vrot.lane.b32.xlu2 %v2889_v4, %s3397_s23 }
 0x890   : > { %v1176_v38 = vpop.xlane.xlu2 %1175 }
 0x891   : > { %2978 = vrcp.f32 %v1176_v38  ;;  %v3861_v38 = vld [vmem:[#allocation13 + $0x30] sm:$0xff] }
 0x897   : > { %v2979_v11 = vpop.eup %2978 }
 0x898   : > { %v1114_v9 = vpop.permute.xlu2 %1113  ;;  %v1308_v10 = vpop.xlane.xlu0 %1307  ;;  %v1178_v62 = vmul.f32 %v2979_v11, %v2973_v54  ;;  %v3872_v11 = vld [vmem:[#allocation13] sm:$0xff] }
 0x899   : > { %1134 = vmatpush.msrb.mxu3 %v1114_v9  ;;  %2980 = vrcp.f32 %v1308_v10  ;;  %v2904_v9 = vpack.i.bf16 %v3864_v6, %v3861_v38  ;;  %v3870_v10 = vld [vmem:[#allocation13 + $0x10] sm:$0xff] }
 0x89a   : > { %2676 = vmatmul.msk.f32.vlgmr.msrb.gmra.mxu3 %vm584_vm5, %v1111_v7  ;;  %2982 = vrcp.f32 %v1242_v5 }
 0x89d   : > { %v1180_v63 = vpop.permute.xlu1 %1179 }
 0x89e   : > { %1200 = vmatpush.msra.mxu2 %v1180_v63 }
 0x89f   : > { %2679 = vmatmul.msk.f32.vlgmr.msra.gmra.mxu2 %vm584_vm5, %v1178_v62  ;;  %v2981_v1 = vpop.eup %2980  ;;  %v2909_v62 = vpack.i.bf16 %v3872_v11, %v3870_v10 }
 0x8a0   : > { %v1310_v2 = vmul.f32 %v2981_v1, %v2975_v57  ;;  %v2983_v4 = vpop.eup %2982  ;;  %v2886_v17 = vpop.permute.xlu2 %2885  ;;  %v3877_v1 = vld [vmem:[#allocation14] sm:$0xff] }
 0x8a1   : > { %v1244_v12 = vmul.f32 %v2983_v4, %v2971_v40  ;;  %v2888_v19 = vunpack.i.h.bf16 %v2886_v17  ;;  %v2887_v34 = vunpack.i.l.bf16 %v2886_v17 }
 0x8a3   : > { %1384 = vmatpush.msrb.mxu1 %v2887_v34 }
 0x8a5   : > { %v1312_v3 = vpop.permute.xlu1 %1311  ;;  %1385 = vmatpush.msrb.mxu1 %v2888_v19 }
 0x8a6   : > { %1332 = vmatpush.msrb.mxu2 %v1312_v3 }
 0x8a7   : > { %2685 = vmatmul.msk.f32.vlgmr.msrb.gmra.mxu2 %vm584_vm5, %v1310_v2  ;;  %v1579_v2 = vperm.slane %v3877_v1, 5 }
 0x8a8   : > { %v2891_v0 = vpop.permute.xlu2 %2890  ;;  %1566 = vmatpush.msra.mxu2 %v3861_v38 }
 0x8a9   : > { %v2893_v35 = vunpack.i.h.bf16 %v2891_v0  ;;  %v2892_v36 = vunpack.i.l.bf16 %v2891_v0 }
 0x8aa   : > { %1567 = vmatpush.msra.mxu2 %v3864_v6 }
 0x8ab   : > { %v1246_v21 = vpop.permute.xlu0 %1245  ;;  %1386 = vmatpush.msrb.mxu1 %v2892_v36 }
 0x8ac   : > { %1266 = vmatpush.msra.mxu3 %v1246_v21  ;;  %1568 = vmatpush.msra.mxu2 %v3870_v10 }
 0x8ad   : > { %2682 = vmatmul.msk.f32.vlgmr.msra.gmra.mxu3 %vm584_vm5, %v1244_v12  ;;  %1387 = vmatpush.msrb.mxu1 %v2893_v35  ;;  %v1518_v35 = vperm.slane %v3877_v1, 0 }
 0x8ae   : > { %1435 = vmatpush.msrb.mxu3 %v1006_v22  ;;  %1569 = vmatpush.msra.mxu2 %v3872_v11 }
 0x8b0   : > { %1436 = vmatpush.msrb.mxu3 %v1004_v23 }
 0x8b2   : > { %1437 = vmatpush.msrb.mxu3 %v1002_v24 }
 0x8b4   : > { %1438 = vmatpush.msrb.mxu3 %v1000_v20 }
 0x91d   : > { %v1136_v27 = vpop.f32.mrf.mxu3 }
 0x922   : > { %v1202_v26 = vpop.f32.mrf.mxu2 }
 0x923   : > { %1338 = vrot.lane.b32.xlu1 %v1202_v26, %s3409_s7 }
 0x92a   : > { %v1334_v28 = vpop.f32.mrf.mxu2 }
 0x92b   : > { %1346 = vrot.lane.b32.xlu1 %v1334_v28, %s3410_s2 }
 0x930   : > { %v1268_v30 = vpop.f32.mrf.mxu3 }
 0x931   : > { %1342 = vrot.lane.b32.xlu0 %v1268_v30, %s3411_s11 }
 0x933   : > { %2895 = vrot.lane.b32.xlu1 %v2894_v29, %s3400_s25  ;;  %v1415_v29 = vperm.slane %v3758_v13, 6  ;;  %v1008_v13 = vld [vmem:[#allocation11 + $0x8] sm:$0x3] }
 0x93b   : > { %2900 = vrot.lane.b32.xlu1 %v2899_v31, %s3400_s25 }
 0x965   : > { %1497 = vadd.xlane.f32.xlu1 %v1496_v16 }
 0x995   : > { %v1339_v37 = vpop.permute.xlu1 %1338 }
 0x996   : > { %v1349_v25 = vsel %vm584_vm5, %v1136_v27, %v1339_v37 }
 0x99d   : > { %v1347_v33 = vpop.permute.xlu1 %1346 }
 0x9a3   : > { %v1343_v39 = vpop.permute.xlu0 %1342 }
 0x9a4   : > { %v1350_v40 = vsel %vm860_vm6, %v1349_v25, %v1343_v39 }
 0x9a5   : > { %v1351_v41 = vsel %vm862_vm7, %v1350_v40, %v1347_v33  ;;  %v2896_v42 = vpop.permute.xlu1 %2895  ;;  %v1520_v33 = vperm.slane %v3877_v1, 1  ;;  %v1419_v40 = vperm.slane %v1008_v13, 0 }
 0x9a6   : > { %2686 = vmatmul.msk.f32.vlgmr.msrb.gmra.mxu1 %vm510_vm0, %v1351_v41  ;;  %v2898_v43 = vunpack.i.h.bf16 %v2896_v42  ;;  %v2897_v44 = vunpack.i.l.bf16 %v2896_v42 }
 0x9a8   : > { %1475 = vmatpush.msrb.mxu0 %v2897_v44  ;;  %v1484_v44 = vperm.slane %v1008_v13, 1 }
 0x9aa   : > { %1476 = vmatpush.msrb.mxu0 %v2898_v43 }
 0x9ad   : > { %v2901_v45 = vpop.permute.xlu1 %2900 }
 0x9ae   : > { %v2903_v46 = vunpack.i.h.bf16 %v2901_v45  ;;  %v2902_v47 = vunpack.i.l.bf16 %v2901_v45 }
 0x9b0   : > { %1477 = vmatpush.msrb.mxu0 %v2902_v47 }
 0x9b2   : > { %1478 = vmatpush.msrb.mxu0 %v2903_v46 }
 0x9d8   : > { %v1498_v53 = vpop.xlane.xlu1 %1497 }
 0x9d9   : > { %v1499_v56 = vmul.f32 %v1498_v53, %v3649_v8 }
 0x9db   : > { %v1500_v59 = vsub.f32 %v3841_v18, %v1499_v56 }
 0xa23   : > { %v1389_v49 = vpop.f32.mrf.mxu1 }
 0xa24   : > { %v1390_v50 = vadd.f32 %v1389_v49, %v1352_v48 }
 0xa26   : > { %v3851_v51 = vadd.f32 %v1390_v50, %v3723_v32  ;;  %v1501_v32 = vmul.f32 %v1500_v59, %v1500_v59 }
 0xa28   : > { %v1393_v52 = vsel %vm510_vm0, %v3851_v51, 0.0  ;;  %v1502_v61 = vsel %vm510_vm0, %v1501_v32, 0.0 }
 0xa29   : > { %1394 = vadd.xlane.f32.xlu2 %v1393_v52 }
 0xa9c   : > { %v1395_v54 = vpop.xlane.xlu2 %1394 }
 0xa9d   : > { %v1396_v55 = vmul.f32 %v1395_v54, %v3649_v8 }
 0xa9f   : > { %v1397_v57 = vsub.f32 %v3851_v51, %v1396_v55 }
 0xaa1   : > { %v1398_v58 = vmul.f32 %v1397_v57, %v1397_v57 }
 0xaa3   : > { %v1399_v60 = vsel %vm510_vm0, %v1398_v58, 0.0 }
 0xaa4   : > { %1400 = vadd.xlane.f32.xlu0 %v1399_v60 }
 0xaac   : > { %1503 = vadd.xlane.f32.xlu0 %v1502_v61 }
 0xac0   : > { %1581 = vrot.lane.b32.xlu0 %v1579_v2, %s3397_s23  ;;  %v1546_v2 = vperm.slane %v3877_v1, 3 }
 0xb17   : > { %v1401_v5 = vpop.xlane.xlu0 %1400 }
 0xb18   : > { %v1402_v7 = vmul.f32 %v1401_v5, %v3649_v8  ;;  %v1544_v5 = vperm.slane %v3877_v1, 2 }
 0xb1a   : > { %v1403_v63 = vadd.f32 1e-06, %v1402_v7 }
 0xb1c   : > { %2984 = vrsqrt.f32 %v1403_v63  ;;  %vm1410_vm15 = vweird.f32 %v1403_v63 }
 0xb1f   : > { %v1504_v3 = vpop.xlane.xlu0 %1503 }
 0xb20   : > { %v1505_v4 = vmul.f32 %v1504_v3, %v3649_v8 }
 0xb22   : > { %v2985_v12 = vpop.eup %2984  ;;  %v1506_v21 = vadd.f32 1e-06, %v1505_v4 }
 0xb23   : > { %v1405_v22 = vmul.f32 %v2985_v12, %v1403_v63  ;;  %vm1411_vm14 = vweird.f32 %v2985_v12 }
 0xb24   : > { %2986 = vrsqrt.f32 %v1506_v21  ;;  %vm1412_vm1 = vmor %vm1410_vm15, %vm1411_vm14  ;;  %vm1513_vm3 = vweird.f32 %v1506_v21 }
 0xb25   : > { %v1406_v23 = vmul.f32 %v2985_v12, %v1405_v22 }
 0xb27   : > { %v1407_v24 = vmul.f32 0.5, %v1406_v23 }
 0xb29   : > { %v1408_v20 = vsub.f32 1.5, %v1407_v24  ;;  %v1577_v24 = vperm.slane %v3877_v1, 4 }
 0xb2a   : > { %v2987_v26 = vpop.eup %2986 }
 0xb2b   : > { %v1409_v27 = vmul.f32 %v2985_v12, %v1408_v20  ;;  %v1508_v28 = vmul.f32 %v2987_v26, %v1506_v21  ;;  %vm1514_vm2 = vweird.f32 %v2987_v26 }
 0xb2c   : > { %vm1515_vm4 = vmor %vm1513_vm3, %vm1514_vm2 }
 0xb2d   : > { %v1413_v30 = vsel %vm1412_vm1, %v2985_v12, %v1409_v27  ;;  %v1509_v31 = vmul.f32 %v2987_v26, %v1508_v28 }
 0xb2e   : > { %v1414_v14 = vmul.f32 %v1413_v30, %v1397_v57  ;;  %v1585_v30 = vperm.slane %v3877_v1, 6 }
 0xb2f   : > { %v1510_v16 = vmul.f32 0.5, %v1509_v31 }
 0xb30   : > { %v1416_v17 = vmul.f32 %v1415_v29, %v1414_v14 }
 0xb31   : > { %v1511_v19 = vsub.f32 1.5, %v1510_v16 }
 0xb32   : > { %v1418_v34 = vadd.f32 %v1417_v15, %v1416_v17  ;;  %v1582_v21 = vpop.permute.xlu0 %1581 }
 0xb33   : > { %v1512_v0 = vmul.f32 %v2987_v26, %v1511_v19 }
 0xb34   : > { %2687 = vmatmul.msk.f32.vlgmr.msrb.gmra.mxu3 %vm510_vm0, %v1418_v34 }
 0xb35   : > { %v1516_v36 = vsel %vm1515_vm4, %v2987_v26, %v1512_v0 }
 0xb36   : > { %v1517_v37 = vmul.f32 %v1516_v36, %v1500_v59 }
 0xb38   : > { %v1519_v25 = vmul.f32 %v1518_v35, %v1517_v37 }
 0xb3a   : > { %v1521_v39 = vadd.f32 %v1520_v33, %v1519_v25 }
 0xb3c   : > { %2689 = vmatmul.msk.f32.vlgmr.msra.gmra.mxu2 %vm510_vm0, %v1521_v39 }
 0xbb7   : > { %v1440_v41 = vpop.f32.mrf.mxu3 }
 0xbb8   : > { %v1441_v42 = vadd.f32 %v1440_v41, %v1419_v40 }
 0xbba   : > { %v1443_v43 = vmax.f32 %v1441_v42, 0.0 }
 0xbbc   : > { %2688 = vmatmul.msk.f32.vlgmr.msrb.gmra.mxu0 %vm510_vm0, %v1443_v43 }
 0xbbf   : > { %v3902_v12 = vpop.f32.mrf.mxu2 }
 0xbc0   : > { %v1578_v26 = vadd.f32 %v1577_v24, %v3902_v12  ;;  %v3927_v0 = vadd.f32 %v1582_v21, %v3902_v12 }
 0xc39   : > { %v1480_v45 = vpop.f32.mrf.mxu0 }
 0xc3a   : > { %v1483_v46 = vadd.f32 %v1480_v45, %v3851_v51 }
 0xc3c   : > { %v3891_v47 = vadd.f32 %v1484_v44, %v1483_v46 }
 0xc3e   : > { %v1522_v48 = vsel %vm510_vm0, %v3891_v47, 0.0 }
 0xc3f   : > { %1523 = vadd.xlane.f32.xlu2 %v1522_v48 }
 0xcb2   : > { %v1524_v49 = vpop.xlane.xlu2 %1523 }
 0xcb3   : > { %v1525_v50 = vmul.f32 %v1524_v49, %v3649_v8 }
 0xcb5   : > { %v1526_v52 = vsub.f32 %v3891_v47, %v1525_v50 }
 0xcb7   : > { %v1527_v53 = vmul.f32 %v1526_v52, %v1526_v52 }
 0xcb9   : > { %v1528_v54 = vsel %vm510_vm0, %v1527_v53, 0.0 }
 0xcba   : > { %1529 = vadd.xlane.f32.xlu2 %v1528_v54 }
 0xd2d   : > { %v1530_v55 = vpop.xlane.xlu2 %1529 }
 0xd2e   : > { %v1531_v56 = vmul.f32 %v1530_v55, %v3649_v8 }
 0xd30   : > { %v1532_v57 = vadd.f32 1e-06, %v1531_v56 }
 0xd32   : > { %2988 = vrsqrt.f32 %v1532_v57  ;;  %vm1539_vm9 = vweird.f32 %v1532_v57 }
 0xd38   : > { %v2989_v51 = vpop.eup %2988 }
 0xd39   : > { %v1534_v58 = vmul.f32 %v2989_v51, %v1532_v57  ;;  %vm1540_vm8 = vweird.f32 %v2989_v51 }
 0xd3a   : > { %vm1541_vm10 = vmor %vm1539_vm9, %vm1540_vm8 }
 0xd3b   : > { %v1535_v59 = vmul.f32 %v2989_v51, %v1534_v58 }
 0xd3d   : > { %v1536_v60 = vmul.f32 0.5, %v1535_v59 }
 0xd3f   : > { %v1537_v32 = vsub.f32 1.5, %v1536_v60 }
 0xd41   : > { %v1538_v61 = vmul.f32 %v2989_v51, %v1537_v32 }
 0xd43   : > { %v1542_v7 = vsel %vm1541_vm10, %v2989_v51, %v1538_v61 }
 0xd44   : > { %v1543_v63 = vmul.f32 %v1542_v7, %v1526_v52 }
 0xd46   : > { %v1545_v3 = vmul.f32 %v1544_v5, %v1543_v63 }
 0xd48   : > { %v1547_v4 = vadd.f32 %v1546_v2, %v1545_v3 }
 0xd4a   : > { %2690 = vmatmul.msk.f32.gmra.mxu2 %vm510_vm0, %v1547_v4 }
 0xdcd   : > { %v3904_v22 = vpop.f32.mrf.mxu2 }
 0xdce   : > { %v1592_v23 = vadd.f32 %v1582_v21, %v3904_v22  ;;  %v3946_v52 = vadd.f32 %v1577_v24, %v3904_v22 }
 0xdd0   : > { %1595 = vrot.lane.b32.xlu2 %v1592_v23, %s3400_s25 }
 0xe2a   : > { %v1596_v20 = vpop.permute.xlu2 %1595 }
 0xe2b   : > { %2691 = vmatpush.xpose.msk.msra.mxu1 %vm584_vm5, %v1596_v20 }
 0xe2e   : > { %2692 = vmatmul.msk.f32.vlgmr.msra.gmra.mxu1 %vm584_vm5, %v1578_v26 }
 0xeab   : > { %v1619_v27 = vpop.f32.mrf.mxu1 }
 0xeac   : > { %v1622_v28 = vmul.f32 0.35355338, %v1619_v27 }
 0xeae   : > { %v1623_v29 = vsel %vm584_vm5, %v1622_v28, -inf }
 0xeaf   : > { %1624 = vmax.xlane.f32.xlu1 %v1623_v29 }
 0xec8   : > { %1587 = vrot.lane.b32.xlu1 %v1585_v30, %s3405_s18 }
 0xed0   : > { %1729 = vrot.lane.b32.xlu1 %v1592_v23, %s3398_s15 }
 0xed8   : > { %1661 = vrot.lane.b32.xlu1 %v1578_v26, %s3401_s28 }
 0xee0   : > { %1793 = vrot.lane.b32.xlu1 %v1578_v26, %s3404_s21 }
 0xf22   : > { %v1625_v31 = vpop.xlane.xlu1 %1624 }
 0xf23   : > { %v1626_v14 = vsub.f32 %v1622_v28, %v1625_v31 }
 0xf25   : > { %v1627_v15 = vmul.f32 1.442695, %v1626_v14 }
 0xf27   : > { %2990 = vpow2.f32 %v1627_v15 }
 0xf2d   : > { %v2991_v16 = vpop.eup %2990 }
 0xf2e   : > { %v1629_v17 = vsel %vm584_vm5, %v2991_v16, 0.0 }
 0xf2f   : > { %1630 = vadd.xlane.f32.xlu0 %v1629_v17 }
 0xf3a   : > { %v3919_v19 = vpop.permute.xlu1 %1587 }
 0xf3b   : > { %v1593_v34 = vadd.f32 %v3919_v19, %v3904_v22  ;;  %v1590_v6 = vadd.f32 %v3919_v19, %v3902_v12 }
 0xf3d   : > { %1635 = vrot.lane.b32.xlu2 %v1593_v34, %s3405_s18 }
 0xf42   : > { %v1730_v35 = vpop.permute.xlu1 %1729 }
 0xf43   : > { %1701 = vrot.lane.b32.xlu0 %v1593_v34, %s3406_s20 }
 0xf45   : > { %1663 = vrot.lane.b32.xlu2 %v1592_v23, %s3399_s22 }
 0xf4a   : > { %v1662_v33 = vpop.permute.xlu1 %1661 }
 0xf4b   : > { %1915 = vrot.lane.b32.xlu0 %v3927_v0, %s3400_s25 }
 0xf4d   : > { %1795 = vrot.lane.b32.xlu2 %v1592_v23, %s3402_s14 }
 0xf52   : > { %v1794_v40 = vpop.permute.xlu1 %1793 }
 0xf53   : > { %1983 = vrot.lane.b32.xlu0 %v3927_v0, %s3399_s22  ;;  %s2433_s22 = sshll.u32 %s491_s17, 4  ;;  %s2434_s22 = int_to_ptr.vmem [resolvable:$true] %s2433_s22 }
 0xf55   : > { %1727 = vrot.lane.b32.xlu2 %v1578_v26, %s3403_s27 }
 0xf97   : > { %v1636_v36 = vpop.permute.xlu2 %1635 }
 0xf98   : > { %1656 = vmatpush.msra.mxu3 %v1636_v36 }
 0xf9a   : > { %2697 = vmatpush.xpose.msk.msrb.mxu3 %vm584_vm5, %v1730_v35 }
 0xf9f   : > { %v1664_v37 = vpop.permute.xlu2 %1663 }
 0xfa0   : > { %2694 = vmatpush.xpose.msk.msra.mxu0 %vm584_vm5, %v1664_v37 }
 0xfa2   : > { %v1631_v25 = vpop.xlane.xlu0 %1630 }
 0xfa3   : > { %2992 = vrcp.f32 %v1631_v25  ;;  %2695 = vmatmul.msk.f32.vlgmr.msra.gmra.mxu0 %vm584_vm5, %v1662_v33 }
 0xfa7   : > { %v1796_v39 = vpop.permute.xlu2 %1795 }
 0xfa8   : > { %2700 = vmatpush.xpose.msk.msrb.mxu2 %vm584_vm5, %v1796_v39 }
 0xfa9   : > { %v2993_v13 = vpop.eup %2992 }
 0xfaa   : > { %v1633_v41 = vmul.f32 %v2993_v13, %v2991_v16 }
 0xfab   : > { %2701 = vmatmul.msk.f32.vlgmr.msrb.gmra.mxu2 %vm584_vm5, %v1794_v40 }
 0xfac   : > { %2693 = vmatmul.msk.f32.vlgmr.msra.gmra.mxu3 %vm584_vm5, %v1633_v41 }
 0xfaf   : > { %v1728_v42 = vpop.permute.xlu2 %1727 }
 0xfb4   : > { %2698 = vmatmul.msk.f32.vlgmr.msrb.gmra.mxu3 %vm584_vm5, %v1728_v42 }
 0xfb5   : > { %v1702_v43 = vpop.permute.xlu0 %1701 }
 0xfb6   : > { %1722 = vmatpush.msrb.mxu1 %v1702_v43 }
 0xfbd   : > { %v1916_v57 = vpop.permute.xlu0 %1915 }
 0xfc5   : > { %v1984_v21 = vpop.permute.xlu0 %1983 }
0x1020   : > { %v1686_v44 = vpop.f32.mrf.mxu0 }
0x1021   : > { %v1689_v45 = vmul.f32 0.35355338, %v1686_v44 }
0x1023   : > { %v1690_v46 = vsel %vm584_vm5, %v1689_v45, -inf }
0x1024   : > { %1691 = vmax.xlane.f32.xlu2 %v1690_v46 }
0x102e   : > { %v1818_v48 = vpop.f32.mrf.mxu2 }
0x102f   : > { %v1821_v49 = vmul.f32 0.35355338, %v1818_v48  ;;  %v3957_v32 = vpop.f32.mrf.mxu3 }
0x1031   : > { %v1822_v50 = vsel %vm584_vm5, %v1821_v49, -inf }
0x1032   : > { %1823 = vmax.xlane.f32.xlu1 %v1822_v50 }
0x1037   : > { %v1752_v63 = vpop.f32.mrf.mxu3 }
0x1038   : > { %v1755_v2 = vmul.f32 0.35355338, %v1752_v63 }
0x103a   : > { %v1756_v3 = vsel %vm584_vm5, %v1755_v2, -inf }
0x103c   : > { %1767 = vrot.lane.b32.xlu2 %v1593_v34, %s3408_s4 }
0x1044   : > { %1981 = vrot.lane.b32.xlu2 %v3946_v52, %s3401_s28  ;;  %s2416_s28 = scalar_lea.sflag [#allocation4], %s3612_s5 }
0x104b   : > { %1833 = vrot.lane.b32.xlu1 %v1593_v34, %s3407_s24 }
0x104c   : > { %2115 = vrot.lane.b32.xlu2 %v3927_v0, %s3402_s14 }
0x1053   : > { %2047 = vrot.lane.b32.xlu1 %v3946_v52, %s3403_s27 }
0x1097   : > { %v1692_v53 = vpop.xlane.xlu2 %1691 }
0x1098   : > { %v1693_v54 = vsub.f32 %v1689_v45, %v1692_v53 }
0x109a   : > { %v1694_v55 = vmul.f32 1.442695, %v1693_v54 }
0x109c   : > { %2994 = vpow2.f32 %v1694_v55 }
0x109f   : > { %v1768_v56 = vpop.permute.xlu2 %1767 }
0x10a0   : > { %1788 = vmatpush.msrb.mxu0 %v1768_v56 }
0x10a2   : > { %2704 = vmatpush.xpose.msk.msra.mxu0 %vm584_vm5, %v1916_v57  ;;  %v2995_v51 = vpop.eup %2994 }
0x10a3   : > { %v1696_v58 = vsel %vm584_vm5, %v2995_v51, 0.0 }
0x10a4   : > { %1697 = vadd.xlane.f32.xlu0 %v1696_v58 }
0x10a5   : > { %v1824_v59 = vpop.xlane.xlu1 %1823 }
0x10a6   : > { %v1825_v60 = vsub.f32 %v1821_v49, %v1824_v59 }
0x10a7   : > { %v1982_v20 = vpop.permute.xlu2 %1981 }
0x10a8   : > { %v1826_v61 = vmul.f32 1.442695, %v1825_v60 }
0x10aa   : > { %2996 = vpow2.f32 %v1826_v61 }
0x10af   : > { %v2116_v31 = vpop.permute.xlu2 %2115 }
0x10b0   : > { %v2997_v5 = vpop.eup %2996 }
0x10b1   : > { %v1828_v7 = vsel %vm584_vm5, %v2997_v5, 0.0 }
0x10b2   : > { %1829 = vadd.xlane.f32.xlu0 %v1828_v7 }
0x10ba   : > { %1757 = vmax.xlane.f32.xlu0 %v1756_v3 }
0x10bd   : > { %v1834_v4 = vpop.permute.xlu1 %1833 }
0x10be   : > { %1854 = vmatpush.msra.mxu1 %v1834_v4 }
0x10c5   : > { %v2048_v40 = vpop.permute.xlu1 %2047 }
0x10ce   : > { %2049 = vrot.lane.b32.xlu0 %v3927_v0, %s3398_s15  ;;  %s2431_s15 = scalar_lea.hbm %s4122_s8, %s2723_s26 }
0x1117   : > { %v1698_v22 = vpop.xlane.xlu0 %1697 }
0x1118   : > { %2998 = vrcp.f32 %v1698_v22 }
0x111e   : > { %v2999_v23 = vpop.eup %2998 }
0x111f   : > { %v1700_v24 = vmul.f32 %v2999_v23, %v2995_v51 }
0x1121   : > { %2696 = vmatmul.msk.f32.vlgmr.msrb.gmra.mxu1 %vm584_vm5, %v1700_v24 }
0x1122   : > { %2707 = vmatpush.xpose.msk.msrb.mxu1 %vm584_vm5, %v1984_v21 }
0x1125   : > { %v1830_v26 = vpop.xlane.xlu0 %1829 }
0x1126   : > { %3000 = vrcp.f32 %v1830_v26 }
0x112c   : > { %v3001_v27 = vpop.eup %3000 }
0x112d   : > { %v1832_v28 = vmul.f32 %v3001_v27, %v2997_v5  ;;  %v1758_v29 = vpop.xlane.xlu0 %1757 }
0x112e   : > { %v1759_v30 = vsub.f32 %v1755_v2, %v1758_v29 }
0x112f   : > { %2702 = vmatmul.msk.f32.vlgmr.msra.gmra.mxu1 %vm584_vm5, %v1832_v28 }
0x1130   : > { %v1760_v14 = vmul.f32 1.442695, %v1759_v30  ;;  %2713 = vmatpush.xpose.msk.msra.mxu1 %vm584_vm5, %v2116_v31 }
0x1132   : > { %3002 = vpow2.f32 %v1760_v14 }
0x1137   : > { %2708 = vmatmul.msk.f32.vlgmr.msrb.gmra.mxu1 %vm584_vm5, %v1982_v20 }
0x1138   : > { %v3003_v15 = vpop.eup %3002 }
0x1139   : > { %v1762_v16 = vsel %vm584_vm5, %v3003_v15, 0.0 }
0x113a   : > { %1763 = vadd.xlane.f32.xlu0 %v1762_v16 }
0x1140   : > { %v2050_v34 = vpop.permute.xlu0 %2049 }
0x114e   : > { %2113 = vrot.lane.b32.xlu0 %v3946_v52, %s3404_s21 }
0x119e   : > { %v1724_v17 = vpop.f32.mrf.mxu1 }
0x119f   : > { %1860 = vrot.lane.b32.xlu0 %v1724_v17, %s3409_s7 }
0x11ac   : > { %v1856_v0 = vpop.f32.mrf.mxu1 }
0x11ad   : > { %v1764_v35 = vpop.xlane.xlu0 %1763 }
0x11ae   : > { %3004 = vrcp.f32 %v1764_v35 }
0x11b4   : > { %v3005_v36 = vpop.eup %3004  ;;  %v2006_v37 = vpop.f32.mrf.mxu1 }
0x11b5   : > { %v1766_v33 = vmul.f32 %v3005_v36, %v3003_v15  ;;  %v2009_v25 = vmul.f32 0.35355338, %v2006_v37  ;;  %v1874_v36 = vperm.slane %v3877_v1, 7 }
0x11b7   : > { %2699 = vmatmul.msk.f32.vlgmr.msrb.gmra.mxu0 %vm584_vm5, %v1766_v33  ;;  %v2010_v39 = vsel %vm584_vm5, %v2009_v25, -inf }
0x11b8   : > { %2710 = vmatpush.xpose.msk.msrb.mxu0 %vm584_vm5, %v2050_v34  ;;  %2011 = vmax.xlane.f32.xlu1 %v2010_v39 }
0x11bf   : > { %2705 = vmatmul.msk.f32.vlgmr.msra.gmra.mxu0 %vm584_vm5, %v3946_v52 }
0x11c0   : > { %v2114_v13 = vpop.permute.xlu0 %2113 }
0x11c1   : > { %2714 = vmatmul.msk.f32.vlgmr.msra.gmra.mxu1 %vm584_vm5, %v2114_v13 }
0x11c7   : > { %2711 = vmatmul.msk.f32.vlgmr.msrb.gmra.mxu0 %vm584_vm5, %v2048_v40 }
0x11d1   : > { %2905 = vrot.lane.b32.xlu1 %v2904_v9, %s3397_s23 }
0x1211   : > { %v1861_v19 = vpop.permute.xlu0 %1860 }
0x1212   : > { %v1871_v26 = vsel %vm584_vm5, %v3957_v32, %v1861_v19  ;;  %v1491_v19 = vld [vmem:[#allocation13 + $0x28] sm:$0xff] }
0x122b   : > { %v2012_v9 = vpop.xlane.xlu1 %2011 }
0x122c   : > { %v2013_v55 = vsub.f32 %v2009_v25, %v2012_v9 }
0x122e   : > { %v2014_v56 = vmul.f32 1.442695, %v2013_v55 }
0x1230   : > { %3006 = vpow2.f32 %v2014_v56 }
0x1234   : > { %v1790_v41 = vpop.f32.mrf.mxu0 }
0x1235   : > { %1864 = vrot.lane.b32.xlu1 %v1790_v41, %s3411_s11 }
0x1236   : > { %v3007_v57 = vpop.eup %3006 }
0x1237   : > { %v2016_v12 = vsel %vm584_vm5, %v3007_v57, 0.0 }
0x123c   : > { %v1939_v42 = vpop.f32.mrf.mxu0 }
0x123d   : > { %1868 = vrot.lane.b32.xlu1 %v1856_v0, %s3410_s2  ;;  %v1942_v48 = vmul.f32 0.35355338, %v1939_v42 }
0x123e   : > { %v2138_v43 = vpop.f32.mrf.mxu1 }
0x123f   : > { %v2141_v44 = vmul.f32 0.35355338, %v2138_v43  ;;  %v1943_v38 = vsel %vm584_vm5, %v1942_v48, -inf }
0x1241   : > { %v2142_v45 = vsel %vm584_vm5, %v2141_v44, -inf }
0x1242   : > { %2143 = vmax.xlane.f32.xlu2 %v2142_v45 }
0x1243   : > { %v2906_v52 = vpop.permute.xlu1 %2905 }
0x1244   : > { %v2072_v46 = vpop.f32.mrf.mxu0  ;;  %v2908_v53 = vunpack.i.h.bf16 %v2906_v52  ;;  %v2907_v54 = vunpack.i.l.bf16 %v2906_v52 }
0x1245   : > { %v2075_v49 = vmul.f32 0.35355338, %v2072_v46 }
0x1246   : > { %1906 = vmatpush.msra.mxu3 %v2907_v54  ;;  %2209 = vmatpush.msra.mxu0 %v2907_v54 }
0x1247   : > { %v2076_v50 = vsel %vm584_vm5, %v2075_v49, -inf }
0x1248   : > { %2077 = vmax.xlane.f32.xlu0 %v2076_v50  ;;  %1907 = vmatpush.msra.mxu3 %v2908_v53 }
0x1249   : > { %2210 = vmatpush.msra.mxu0 %v2908_v53 }
0x124a   : > { %1944 = vmax.xlane.f32.xlu2 %v1943_v38 }
0x125c   : > { %1955 = vrot.lane.b32.xlu0 %v1590_v6, %s3405_s18 }
0x1262   : > { %2910 = vrot.lane.b32.xlu2 %v2909_v62, %s3397_s23 }
0x128b   : > { %2017 = vadd.xlane.f32.xlu2 %v2016_v12  ;;  %v1493_v12 = vld [vmem:[#allocation13 + $0x38] sm:$0xff] }
0x12a7   : > { %v1865_v59 = vpop.permute.xlu1 %1864 }
0x12a8   : > { %v1872_v27 = vsel %vm860_vm6, %v1871_v26, %v1865_v59 }
0x12af   : > { %v1869_v23 = vpop.permute.xlu1 %1868 }
0x12b0   : > { %v1873_v29 = vsel %vm862_vm7, %v1872_v27, %v1869_v23 }
0x12b5   : > { %v2144_v51 = vpop.xlane.xlu2 %2143 }
0x12b6   : > { %v2145_v58 = vsub.f32 %v2141_v44, %v2144_v51  ;;  %v1489_v51 = vld [vmem:[#allocation13 + $0x18] sm:$0xff] }
0x12b8   : > { %v2146_v10 = vmul.f32 1.442695, %v2145_v58  ;;  %v1487_v58 = vld [vmem:[#allocation13 + $0x8] sm:$0xff] }
0x12ba   : > { %3008 = vpow2.f32 %v2146_v10 }
0x12bb   : > { %v2078_v11 = vpop.xlane.xlu0 %2077 }
0x12bc   : > { %v2079_v62 = vsub.f32 %v2075_v49, %v2078_v11 }
0x12bd   : > { %v1945_v60 = vpop.xlane.xlu2 %1944 }
0x12be   : > { %v2080_v61 = vmul.f32 1.442695, %v2079_v62  ;;  %v1946_v5 = vsub.f32 %v1942_v48, %v1945_v60 }
0x12c0   : > { %v3009_v7 = vpop.eup %3008  ;;  %3010 = vpow2.f32 %v2080_v61  ;;  %v1947_v63 = vmul.f32 1.442695, %v1946_v5 }
0x12c1   : > { %v2148_v2 = vsel %vm584_vm5, %v3009_v7, 0.0 }
0x12c2   : > { %3012 = vpow2.f32 %v1947_v63  ;;  %2149 = vadd.xlane.f32.xlu2 %v2148_v2 }
0x12c5   : > { %v2911_v3 = vpop.permute.xlu2 %2910 }
0x12c6   : > { %v3011_v4 = vpop.eup %3010  ;;  %v2913_v21 = vunpack.i.h.bf16 %v2911_v3  ;;  %v2912_v22 = vunpack.i.l.bf16 %v2911_v3 }
0x12c7   : > { %v2082_v24 = vsel %vm584_vm5, %v3011_v4, 0.0 }
0x12c8   : > { %v3013_v20 = vpop.eup %3012  ;;  %1908 = vmatpush.msra.mxu3 %v2912_v22  ;;  %2083 = vadd.xlane.f32.xlu1 %v2082_v24 }
0x12c9   : > { %v1949_v28 = vsel %vm584_vm5, %v3013_v20, 0.0  ;;  %2211 = vmatpush.msra.mxu0 %v2912_v22 }
0x12ca   : > { %1950 = vadd.xlane.f32.xlu0 %v1949_v28  ;;  %1909 = vmatpush.msra.mxu3 %v2913_v21 }
0x12cb   : > { %2703 = vmatmul.msk.f32.vlgmr.msra.gmra.mxu3 %vm510_vm0, %v1873_v29  ;;  %2212 = vmatpush.msra.mxu0 %v2913_v21  ;;  %v2914_v29 = vpack.i.bf16 %v1491_v19, %v1493_v12 }
0x12ce   : > { %v1956_v30 = vpop.permute.xlu0 %1955 }
0x12cf   : > { %1976 = vmatpush.msra.mxu2 %v1956_v30 }
0x12da   : > { %2021 = vrot.lane.b32.xlu2 %v1590_v6, %s3406_s20 }
0x12de   : > { %2153 = vrot.lane.b32.xlu0 %v1590_v6, %s3407_s24 }
0x12e1   : > { %2087 = vrot.lane.b32.xlu1 %v1590_v6, %s3408_s4 }
0x12fe   : > { %v2018_v32 = vpop.xlane.xlu2 %2017 }
0x12ff   : > { %3014 = vrcp.f32 %v2018_v32 }
0x1305   : > { %v3015_v14 = vpop.eup %3014 }
0x1306   : > { %v2020_v15 = vmul.f32 %v3015_v14, %v3007_v57 }
0x1335   : > { %v2150_v31 = vpop.xlane.xlu2 %2149 }
0x133b   : > { %v2084_v35 = vpop.xlane.xlu1 %2083 }
0x133d   : > { %v2022_v16 = vpop.permute.xlu2 %2021  ;;  %v1951_v17 = vpop.xlane.xlu0 %1950 }
0x133e   : > { %3016 = vrcp.f32 %v1951_v17  ;;  %2042 = vmatpush.msrb.mxu3 %v2022_v16 }
0x133f   : > { %2709 = vmatmul.msk.f32.vlgmr.msrb.gmra.mxu3 %vm584_vm5, %v2020_v15  ;;  %3018 = vrcp.f32 %v2150_v31  ;;  %v2919_v31 = vpack.i.bf16 %v1487_v58, %v1489_v51 }
0x1340   : > { %3020 = vrcp.f32 %v2084_v35 }
0x1344   : > { %v3017_v34 = vpop.eup %3016 }
0x1345   : > { %v1953_v0 = vmul.f32 %v3017_v34, %v3013_v20  ;;  %v3019_v37 = vpop.eup %3018 }
0x1346   : > { %v3021_v39 = vpop.eup %3020  ;;  %v2152_v13 = vmul.f32 %v3019_v37, %v3009_v7  ;;  %v4030_v7 = vld [vmem:[#allocation14 + $0x8] sm:$0xff] }
0x1347   : > { %2706 = vmatmul.msk.f32.vlgmr.msra.gmra.mxu2 %vm584_vm5, %v1953_v0  ;;  %v2086_v42 = vmul.f32 %v3021_v39, %v3011_v4  ;;  %v2240_v3 = vperm.slane %v4030_v7, 0  ;;  %v2242_v22 = vperm.slane %v4030_v7, 1 }
0x134e   : > { %v1911_v33 = vpop.f32.mrf.mxu3 }
0x134f   : > { %v1912_v25 = vadd.f32 %v1911_v33, %v1874_v36 }
0x1350   : > { %v2154_v40 = vpop.permute.xlu0 %2153 }
0x1351   : > { %v4013_v41 = vadd.f32 %v1912_v25, %v3841_v18  ;;  %2174 = vmatpush.msra.mxu3 %v2154_v40 }
0x1352   : > { %2715 = vmatmul.msk.f32.vlgmr.msra.gmra.mxu3 %vm584_vm5, %v2152_v13 }
0x1353   : > { %v2088_v43 = vpop.permute.xlu1 %2087  ;;  %v2218_v44 = vsel %vm510_vm0, %v4013_v41, 0.0 }
0x1354   : > { %2219 = vadd.xlane.f32.xlu1 %v2218_v44  ;;  %2108 = vmatpush.msrb.mxu2 %v2088_v43  ;;  %v2334_v44 = vperm.slane %v4030_v7, 4 }
0x1355   : > { %2712 = vmatmul.msk.f32.vlgmr.msrb.gmra.mxu2 %vm584_vm5, %v2086_v42 }
0x1356   : > { %2260 = vmatpush.msra.mxu2 %v1493_v12 }
0x1358   : > { %2261 = vmatpush.msra.mxu2 %v1491_v19 }
0x135a   : > { %2262 = vmatpush.msra.mxu2 %v1489_v51 }
0x135c   : > { %2263 = vmatpush.msra.mxu2 %v1487_v58 }
0x13c2   : > { %v2044_v45 = vpop.f32.mrf.mxu3 }
0x13c3   : > { %2180 = vrot.lane.b32.xlu0 %v2044_v45, %s3409_s7 }
0x13c7   : > { %v2220_v49 = vpop.xlane.xlu1 %2219 }
0x13c8   : > { %v2221_v50 = vmul.f32 %v2220_v49, %v3649_v8 }
0x13ca   : > { %v1978_v46 = vpop.f32.mrf.mxu2  ;;  %v2222_v38 = vsub.f32 %v4013_v41, %v2221_v50 }
0x13cc   : > { %v2223_v6 = vmul.f32 %v2222_v38, %v2222_v38 }
0x13ce   : > { %v2224_v9 = vsel %vm510_vm0, %v2223_v6, 0.0 }
0x13d5   : > { %v2176_v48 = vpop.f32.mrf.mxu3 }
0x13d6   : > { %2188 = vrot.lane.b32.xlu2 %v2176_v48, %s3410_s2  ;;  %v2244_v48 = vperm.slane %v4030_v7, 2 }
0x13d8   : > { %v2110_v18 = vpop.f32.mrf.mxu2 }
0x13d9   : > { %2184 = vrot.lane.b32.xlu0 %v2110_v18, %s3411_s11 }
0x13ff   : > { %2225 = vadd.xlane.f32.xlu2 %v2224_v9 }
0x1417   : > { %2920 = vrot.lane.b32.xlu2 %v2919_v31, %s3405_s18 }
0x141f   : > { %2935 = vrot.lane.b32.xlu2 %v2919_v31, %s3400_s25 }
0x1430   : > { %v2189_v55 = vpop.permute.xlu2 %2188 }
0x1435   : > { %v2181_v52 = vpop.permute.xlu0 %2180 }
0x1436   : > { %v2191_v53 = vsel %vm584_vm5, %v1978_v46, %v2181_v52 }
0x144b   : > { %v2185_v54 = vpop.permute.xlu0 %2184 }
0x144c   : > { %v2192_v56 = vsel %vm860_vm6, %v2191_v53, %v2185_v54 }
0x144d   : > { %v2193_v57 = vsel %vm862_vm7, %v2192_v56, %v2189_v55 }
0x144e   : > { %2716 = vmatmul.msk.f32.vlgmr.msra.gmra.mxu0 %vm510_vm0, %v2193_v57 }
0x1472   : > { %v2226_v10 = vpop.xlane.xlu2 %2225 }
0x1473   : > { %v2227_v11 = vmul.f32 %v2226_v10, %v3649_v8 }
0x1475   : > { %v2228_v62 = vadd.f32 1e-06, %v2227_v11  ;;  %v2338_v11 = vperm.slane %v4030_v7, 6 }
0x1477   : > { %3022 = vrsqrt.f32 %v2228_v62  ;;  %vm2235_vm6 = vweird.f32 %v2228_v62 }
0x147a   : > { %v2921_v34 = vpop.permute.xlu2 %2920 }
0x147b   : > { %v2922_v0 = vunpack.i.l.bf16 %v2921_v34  ;;  %v2923_v35 = vunpack.i.h.bf16 %v2921_v34 }
0x147d   : > { %v3023_v59 = vpop.eup %3022 }
0x147e   : > { %v2230_v60 = vmul.f32 %v3023_v59, %v2228_v62  ;;  %vm2236_vm5 = vweird.f32 %v3023_v59  ;;  %v2309_v62 = vperm.slane %v4030_v7, 3 }
0x147f   : > { %vm2237_vm7 = vmor %vm2235_vm6, %vm2236_vm5 }
0x1480   : > { %v2231_v61 = vmul.f32 %v3023_v59, %v2230_v60 }
0x1482   : > { %v2232_v5 = vmul.f32 0.5, %v2231_v61  ;;  %v2936_v49 = vpop.permute.xlu2 %2935 }
0x1483   : > { %v2937_v52 = vunpack.i.l.bf16 %v2936_v49  ;;  %v2938_v55 = vunpack.i.h.bf16 %v2936_v49 }
0x1484   : > { %v2233_v63 = vsub.f32 1.5, %v2232_v5 }
0x1486   : > { %v2234_v2 = vmul.f32 %v3023_v59, %v2233_v63 }
0x1488   : > { %v2238_v4 = vsel %vm2237_vm7, %v3023_v59, %v2234_v2 }
0x1489   : > { %v2239_v21 = vmul.f32 %v2238_v4, %v2222_v38 }
0x148b   : > { %v2241_v23 = vmul.f32 %v2240_v3, %v2239_v21 }
0x148d   : > { %v2243_v24 = vadd.f32 %v2242_v22, %v2241_v23 }
0x148f   : > { %2717 = vmatmul.msk.f32.vlgmr.msra.gmra.mxu2 %vm510_vm0, %v2243_v24 }
0x14cb   : > { %v2214_v20 = vpop.f32.mrf.mxu0 }
0x14cc   : > { %v2215_v26 = vadd.f32 %v2214_v20, %v1874_v36 }
0x14ce   : > { %v4038_v27 = vadd.f32 %v2215_v26, %v3891_v47 }
0x14d0   : > { %v2312_v28 = vsel %vm510_vm0, %v4038_v27, 0.0 }
0x14d1   : > { %2313 = vadd.xlane.f32.xlu0 %v2312_v28 }
0x14e5   : > { %2915 = vrot.lane.b32.xlu0 %v2914_v29, %s3405_s18 }
0x14ed   : > { %2930 = vrot.lane.b32.xlu0 %v2914_v29, %s3397_s23 }
0x14f5   : > { %2940 = vrot.lane.b32.xlu0 %v2919_v31, %s3397_s23 }
0x1512   : > { %v2265_v50 = vpop.f32.mrf.mxu2 }
0x1513   : > { %v2266_v54 = vadd.f32 %v2265_v50, %v2244_v48 }
0x1515   : > { %v2268_v56 = vmax.f32 %v2266_v54, 0.0 }
0x1544   : > { %v2314_v30 = vpop.xlane.xlu0 %2313 }
0x1545   : > { %v2315_v32 = vmul.f32 %v2314_v30, %v3649_v8 }
0x1547   : > { %v2316_v14 = vsub.f32 %v4038_v27, %v2315_v32 }
0x1549   : > { %v2317_v1 = vmul.f32 %v2316_v14, %v2316_v14 }
0x154b   : > { %v2318_v15 = vsel %vm510_vm0, %v2317_v1, 0.0 }
0x154c   : > { %2319 = vadd.xlane.f32.xlu1 %v2318_v15 }
0x1557   : > { %v2916_v47 = vpop.permute.xlu0 %2915 }
0x1558   : > { %v2917_v16 = vunpack.i.l.bf16 %v2916_v47  ;;  %v2918_v17 = vunpack.i.h.bf16 %v2916_v47 }
0x155a   : > { %2366 = vmatpush.msrb.mxu3 %v2917_v16 }
0x155c   : > { %2367 = vmatpush.msrb.mxu3 %v2918_v17 }
0x155e   : > { %2368 = vmatpush.msrb.mxu3 %v2922_v0 }
0x155f   : > { %v2931_v57 = vpop.permute.xlu0 %2930 }
0x1560   : > { %2369 = vmatpush.msrb.mxu3 %v2923_v35  ;;  %v2933_v12 = vunpack.i.h.bf16 %v2931_v57  ;;  %v2932_v19 = vunpack.i.l.bf16 %v2931_v57 }
0x1562   : > { %2402 = vmatpush.msrb.mxu0 %v2932_v19 }
0x1564   : > { %2403 = vmatpush.msrb.mxu0 %v2933_v12 }
0x1565   : > { %2925 = vrot.lane.b32.xlu1 %v2914_v29, %s3400_s25  ;;  %s2435_s25 = sshll.u32 %s2431_s15, 4  ;;  %s2436_s25 = int_to_ptr.hbm [resolvable:$true] %s2435_s25 }
0x1566   : > { %s3280_s14 = sshra.s32 %s2436_s25, 4  ;;  %s3281_s14 = int_to_ptr.hbm [resolvable:$true] %s3280_s14 }
0x1567   : > { %v2941_v51 = vpop.permute.xlu0 %2940  ;;  %s3282_s27 = scalar_lea.hbm %s3281_s14, 8  ;;  %p3287_p7 = scmp.lt.s32.totalorder %s3281_s14, %s4122_s8 }
0x1568   : > { %v2942_v58 = vunpack.i.l.bf16 %v2941_v51  ;;  %v2943_v10 = vunpack.i.h.bf16 %v2941_v51  ;;  %p3283_p1 = scmp.ne.s32.totalorder %s3281_s14, %s3282_s27  ;;  %p3288_p9 = scmp.lt.s32.totalorder %s3286_s16, %s3282_s27 }
0x156a   : > { %2404 = vmatpush.msrb.mxu0 %v2942_v58  ;;  %p3284_p3 = pnand %p3283_p1, %p3559_p4  ;;  %p3289_p8 = por %p3288_p9, %p3287_p7 }
0x156c   : > { %2405 = vmatpush.msrb.mxu0 %v2943_v10  ;;  %p3285_p12 = pneg %p3284_p3 }
0x156e   : > { %p3290_p10 = pnand %p3289_p8, %p3285_p12 }
0x15bf   : > { %v2320_v36 = vpop.xlane.xlu1 %2319 }
0x15c0   : > { %v2321_v37 = vmul.f32 %v2320_v36, %v3649_v8  ;;  %v2336_v8 = vperm.slane %v4030_v7, 5 }
0x15c2   : > { %v2322_v33 = vadd.f32 1e-06, %v2321_v37 }
0x15c4   : > { %3024 = vrsqrt.f32 %v2322_v33  ;;  %vm2329_vm12 = vweird.f32 %v2322_v33 }
0x15ca   : > { %v3025_v25 = vpop.eup %3024 }
0x15cb   : > { %v2324_v39 = vmul.f32 %v3025_v25, %v2322_v33  ;;  %vm2330_vm11 = vweird.f32 %v3025_v25 }
0x15cc   : > { %vm2331_vm13 = vmor %vm2329_vm12, %vm2330_vm11 }
0x15cd   : > { %v2325_v13 = vmul.f32 %v3025_v25, %v2324_v39 }
0x15cf   : > { %v2326_v40 = vmul.f32 0.5, %v2325_v13 }
0x15d1   : > { %v2327_v42 = vsub.f32 1.5, %v2326_v40 }
0x15d3   : > { %v2328_v43 = vmul.f32 %v3025_v25, %v2327_v42 }
0x15d5   : > { %v2332_v45 = vsel %vm2331_vm13, %v3025_v25, %v2328_v43 }
0x15d6   : > { %v2333_v46 = vmul.f32 %v2332_v45, %v2316_v14 }
0x15d7   : > { %v2926_v18 = vpop.permute.xlu1 %2925 }
0x15d8   : > { %v2335_v38 = vmul.f32 %v2334_v44, %v2333_v46  ;;  %v2928_v6 = vunpack.i.h.bf16 %v2926_v18  ;;  %v2927_v9 = vunpack.i.l.bf16 %v2926_v18 }
0x15da   : > { %2300 = vmatpush.msrb.mxu1 %v2927_v9  ;;  %v2337_v53 = vadd.f32 %v2336_v8, %v2335_v38 }
0x15dc   : > { %2301 = vmatpush.msrb.mxu1 %v2928_v6  ;;  %2719 = vmatmul.msk.f32.vlgmr.msrb.gmra.mxu3 %vm510_vm0, %v2337_v53 }
0x15de   : > { %2302 = vmatpush.msrb.mxu1 %v2937_v52 }
0x15e0   : > { %2303 = vmatpush.msrb.mxu1 %v2938_v55 }
0x15e1   : > { %2718 = vmatmul.msk.f32.vlgmr.msrb.gmra.mxu1 %vm510_vm0, %v2268_v56 }
0x165e   : > { %v2305_v59 = vpop.f32.mrf.mxu1 }
0x165f   : > { %v2308_v60 = vadd.f32 %v2305_v59, %v4013_v41  ;;  %v2371_v61 = vpop.f32.mrf.mxu3 }
0x1660   : > { %v2372_v5 = vadd.f32 %v2371_v61, %v2338_v11 }
0x1661   : > { %v2310_v63 = vadd.f32 %v2309_v62, %v2308_v60 }
0x1662   : > { %v2374_v2 = vmax.f32 %v2372_v5, 0.0 }
0x1663   : > { %2413 = vst.msk [vmem:[%s491_s17] sm:$0xff] %vm510_vm0, %v2310_v63 }
0x1664   : > { %2720 = vmatmul.msk.f32.vlgmr.msrb.gmra.mxu0 %vm510_vm0, %v2374_v2 }
0x1665   : > { %3293 = shalt.err (!%p3290_p10)
}
0x1666   : > { %2755 = dma.vmem_to_hbm [thread:$0]  (%p3559_p4), %s2434_s22, 128, %s2436_s25, %s2416_s28   ;;  %v2411_v41 = vperm.slane %v4030_v7, 7 }
0x1667   : > { %s2445_s2 = scalar_lea.hbm %s4123_s9, %s2723_s26  ;;  %s498_s11 = scalar_lea.vmem [#allocation17], %s3615_s6 }
0x1668   : > { %s2447_s17 = sshll.u32 %s498_s11, 4  ;;  %s2449_s3 = sshll.u32 %s2445_s2, 4  ;;  %s2448_s17 = int_to_ptr.vmem [resolvable:$true] %s2447_s17  ;;  %s2450_s3 = int_to_ptr.hbm [resolvable:$true] %s2449_s3 }
0x1669   : > { %s2421_s23 = scalar_lea.sflag [#allocation18], %s3612_s5  ;;  %s3308_s15 = sshra.s32 %s2450_s3, 4  ;;  %s3309_s15 = int_to_ptr.hbm [resolvable:$true] %s3308_s15 }
0x166a   : > { %s3310_s22 = scalar_lea.hbm %s3309_s15, 8  ;;  %s3314_s6 = scalar_lea.hbm %s4123_s9, 16 }
0x166b   : > { %p3311_p11 = scmp.ne.s32.totalorder %s3309_s15, %s3310_s22  ;;  %p3315_p0 = scmp.lt.s32.totalorder %s3309_s15, %s4123_s9 }
0x166c   : > { %p3316_p2 = scmp.lt.s32.totalorder %s3314_s6, %s3310_s22 }
0x166d   : > { %p3312_p5 = pnand %p3311_p11, %p3559_p4 }
0x166e   : > { %p3317_p1 = por %p3316_p2, %p3315_p0 }
0x166f   : > { %p3313_p13 = pneg %p3312_p5 }
0x1671   : > { %p3318_p3 = pnand %p3317_p1, %p3313_p13 }
0x16e1   : > { %v2407_v3 = vpop.f32.mrf.mxu0 }
0x16e2   : > { %v2410_v4 = vadd.f32 %v2407_v3, %v4038_v27 }
0x16e4   : > { %v2412_v21 = vadd.f32 %v2411_v41, %v2410_v4 }
0x16e6   : > { %2414 = vst.msk [vmem:[%s498_s11] sm:$0xff] %vm510_vm0, %v2412_v21 }
0x16e7   : > { %3321 = shalt.err (!%p3318_p3)
}
0x16e8   : > { %2756 = dma.vmem_to_hbm [thread:$0]  (%p3559_p4), %s2448_s17, 128, %s2450_s3, %s2421_s23  }
0x16e9 PF: > { %s2461_s5 = sand.u32 1, %s3372_s30   ;;  %p4146_p12 = scmp.ge.s32.totalorder %s3384_s12, 2 }
0x16ea   : > { %s2462_s27 = scalar_lea.sflag [#allocation4], %s2461_s5 }
0x16eb   : > { %p2786_p7 = pnand %p4146_p12, %p3563_p6 }
0x16ed   : > { %p2787_p9 = pneg %p2786_p7 }
0x16ef   : > { %3363 = dma.done.wait (%p2787_p9), %s2462_s27, 128  }
0x16f0   : > { %3365 = vsyncadd (%p2787_p9), %s2462_s27, 4294967168  ;;  %s2472_s21 = scalar_lea.sflag [#allocation18], %s2461_s5 }
0x16f1   : > { %3367 = dma.done.wait (%p2787_p9), %s2472_s21, 128  }
0x16f2   : > { %3369 = vsyncadd (%p2787_p9), %s2472_s21, 4294967168  ;;  %s4147_s18 = sld [smem:[#allocation27_spill]]  ;;  %p32_p4 = scmp.ge.s32.totalorder %s3533_s19, 4  }
0x16f3   : > { %s4148_s11 = sld [smem:[#allocation28_spill]]  ;;  %s4149_s30 = smov %s3376_s10 }
0x16f4   : > { %s4151_s12 = smov %s3533_s19  ;;  %34 = sbr.rel (!%p32_p4) target bundleno = 19 (0x13), region = 151 }
0x16f8   : > { %s4150_s10 = smov %s4147_s18 }
0x16f9   :  { %2478 = vsyncpa [#allocation3], 1 }
0x16fa   :  { %2480 = vsyncpa [#allocation3 + $0x1], 1 }
0x16fb   :  { %2481 = vsyncpa [#allocation6], 1 }
0x16fc   :  { %2483 = vsyncpa [#allocation6 + $0x1], 1 }
0x16fd   :  { %2484 = vsyncpa [#allocation9], 1 }
0x16fe   :  { %2485 = vsyncpa [#allocation12], 1 }
0x16ff   :  { %2486 = vsyncpa [#allocation15], 1 }
0x1700   :  { %2487 = vsyncpa [#allocation4], 1 }
0x1701   :  { %2489 = vsyncpa [#allocation4 + $0x1], 1 }
0x1702   :  { %2490 = vsyncpa [#allocation18], 1 }
0x1703   :  { %2492 = vsyncpa [#allocation18 + $0x1], 1 }

</bundles_post_ra>
